<compile_context>
chip_gen: v7x
topology: tpu7x:2x2x1
jax: 0.10.0
libtpu: 0.0.40
codegen_flags: <defaults>
</compile_context>

<pallas_src>
import jax
import jax.numpy as jnp
from jax.experimental import pallas as pl
from jax.experimental.pallas import tpu as pltpu

LEAKY_SLOPE = 0.01        # nn.LeakyReLU default negative_slope
BN_EPS = 1e-5             # nn.BatchNorm1d default eps
CW = 64                   # channel lane width (real Cout is 32/64, padded to 64)
MAX_BATCH_BLOCK = 8       # items folded into M per grid step

SPEC1 = dict(conv1=(64, 8, 24), pool1=(8, 8, 4), convk=8, pool2=(4, 4, 2))
SPEC2 = dict(conv1=(512, 64, 24), pool1=(4, 4, 2), convk=6, pool2=(2, 2, 1))


def _rup(x, m):
    return ((x + m - 1) // m) * m


# --------------------------- static branch config ---------------------------

def _branch_cfg(L, cin, conv1, pool1, convk, pool2):
    """All compile-time sizes for one branch (per-item row strides etc.)."""
    k1, s1, p1 = conv1
    assert k1 % s1 == 0
    L1 = (L + 2 * p1 - k1) // s1 + 1
    assert L1 >= 1, "input length too short for this branch"
    R1 = _rup(L1, 8)                 # conv1 output rows per item (= slab rows)
    K1 = k1 * cin                    # conv1 im2col contracted size

    kp, sp, pp = pool1
    P1 = (L1 + 2 * pp - kp) // sp + 1
    cover1 = sp * (P1 - 1) + kp      # padded positions read by pool1
    P1R = -(-cover1 // sp)
    while (sp * P1R) % 8:
        P1R += 1
    FP1 = sp * P1R                   # per-item stride in the pool1 scratch

    G = convk // 2                   # tap-pair groups per stride-1 conv
    Ls, Fs = [], []
    lin = P1
    for _ in range(3):               # convs 2..4: stride 1, padding 4
        Fs.append(_rup(lin + 8, 8))  # per-item stride in the conv staging
        lin = lin + 2 * 4 - convk + 1
        Ls.append(lin)

    kq, sq, pq = pool2
    P2 = (lin + 2 * pq - kq) // sq + 1
    cover2 = sq * (P2 - 1) + kq
    P2R = -(-cover2 // sq)
    while (sq * P2R) % 8:
        P2R += 1
    FP2 = sq * P2R

    return dict(conv1=conv1, pool1=pool1, convk=convk, pool2=pool2,
                L1=L1, R1=R1, K1=K1, P1=P1, P1R=P1R, FP1=FP1,
                G=G, Ls=tuple(Ls), Fs=tuple(Fs),
                P2=P2, P2R=P2R, FP2=FP2)


# ------------------------------ kernel builder -------------------------------

def _lrelu(y):
    return jnp.where(y >= 0.0, y, LEAKY_SLOPE * y)


def _make_kernel(cfg1, cfg2, BB, out_rows):
    """Kernel processing BB batch items per grid step, batch folded into M."""

    def maxpool(pscr, h, s_prev, lin, pool, p_valid, p_rows, fp):
        # Window axis on the sublane axis; elementwise max over strided row
        # views of the per-item-padded pool scratch (-inf is the pool padding).
        k, s, pad = pool
        d = min(lin, s * (p_valid - 1) + k - pad)   # data rows the pool reads
        neg_head = jnp.full((pad, CW), -jnp.inf, jnp.float32)
        tail = fp - pad - d
        if tail > 0:
            neg_tail = jnp.full((tail, CW), -jnp.inf, jnp.float32)
        for b in range(BB):
            base = b * fp
            pscr[pl.ds(base, pad), :] = neg_head
            if tail > 0:
                pscr[pl.ds(base + pad + d, tail), :] = neg_tail
            pscr[pl.ds(base + pad, d), :] = h[b * s_prev:b * s_prev + d, :]
        n = BB * p_rows
        res = pscr[pl.ds(0, n, stride=s), :]
        for kk in range(1, k):
            res = jnp.maximum(res, pscr[pl.ds(kk, n, stride=s), :])
        return res                                   # (BB*p_rows, CW) f32

    def conv_s1(cscr, h, s_prev, lin, f, groups, w_ref, li, bias):
        # "Dual-half" staging: lanes [0:CW] hold x[r], lanes [CW:2CW] hold x[r+1]
        # so a slice at row 2g is the tap pair (2g, 2g+1) concatenated on K.
        zpad = jnp.zeros((4, 2 * CW), jnp.float32)
        for b in range(BB):
            base = b * f
            cscr[pl.ds(base, 4), :] = zpad                      # left zero pad
            cscr[pl.ds(base + 3 + lin, 4), :] = zpad            # right zero pad
            src = h[b * s_prev:b * s_prev + lin, :]
            cscr[pl.ds(base + 4, lin), 0:CW] = src
            cscr[pl.ds(base + 3, lin), CW:2 * CW] = src
        n = BB * f
        slab = jnp.concatenate(
            [cscr[pl.ds(2 * g, n), :] for g in range(groups)],
            axis=1).astype(jnp.bfloat16)                        # (n, groups*128)
        y = jnp.dot(slab, w_ref[li], preferred_element_type=jnp.float32)
        return _lrelu(y + bias)                                 # (n, CW) f32

    def branch(cfg, slab_ref, w1_ref, wa_ref, b_ref, bias_base, pscr, cscr):
        # conv1 (+ folded-BN bias + LeakyReLU): single dot on the im2col slab.
        y = jnp.dot(slab_ref[...], w1_ref[...],
                    preferred_element_type=jnp.float32)         # (BB*R1, CW)
        h = _lrelu(y + b_ref[bias_base:bias_base + 1, :])
        # pool1 (the Dropout that follows it is an eval-mode identity)
        h = maxpool(pscr, h, cfg["R1"], cfg["L1"], cfg["pool1"],
                    cfg["P1"], cfg["P1R"], cfg["FP1"])
        # convs 2..4 (stride 1, padding 4)
        s_prev, lin = cfg["P1R"], cfg["P1"]
        for li in range(3):
            bias = b_ref[bias_base + 1 + li:bias_base + 2 + li, :]
            h = conv_s1(cscr, h, s_prev, lin, cfg["Fs"][li], cfg["G"],
                        wa_ref, li, bias)
            s_prev, lin = cfg["Fs"][li], cfg["Ls"][li]
        # final pool
        return maxpool(pscr, h, s_prev, lin, cfg["pool2"],
                       cfg["P2"], cfg["P2R"], cfg["FP2"])

    def kernel(s1_ref, s2_ref, w11_ref, wa1_ref, w12_ref, wa2_ref, b_ref,
               o_ref, pscr, cscr):
        r1 = branch(cfg1, s1_ref, w11_ref, wa1_ref, b_ref, 0, pscr, cscr)
        r2 = branch(cfg2, s2_ref, w12_ref, wa2_ref, b_ref, 4, pscr, cscr)
        p1, p2 = cfg1["P2"], cfg2["P2"]
        q1, q2 = cfg1["P2R"], cfg2["P2R"]
        pad_rows = out_rows - p1 - p2
        zrow = jnp.zeros((pad_rows, CW), jnp.float32) if pad_rows > 0 else None
        for b in range(BB):
            o_ref[b, 0:p1, :] = r1[b * q1:b * q1 + p1, :]
            o_ref[b, p1:p1 + p2, :] = r2[b * q2:b * q2 + p2, :]
            if pad_rows > 0:
                o_ref[b, p1 + p2:out_rows, :] = zrow

    return kernel


# ------------------------ wrapper-side input packing -------------------------

def _conv1_slab(x, k, s, p, rows):
    """Full im2col for the strided first conv: (B, Cin, L) -> (B*rows, k*Cin)
    bf16.  Row j of item b holds the padded positions [j*s, j*s + k) of all
    channels in (tap, channel, within-tap) order."""
    B, C, L = x.shape
    ntap = k // s
    m_need = max(rows + ntap - 1, -(-(L + 2 * p) // s))
    pad_r = m_need * s - L - p
    xp = jnp.pad(x, ((0, 0), (0, 0), (p, pad_r)))
    ph = xp.reshape(B, C, m_need, s).transpose(0, 2, 1, 3)        # (B, m, C, s)
    slab = jnp.stack([ph[:, t:t + rows] for t in range(ntap)], axis=2)
    slab = slab.reshape(B, rows, ntap * C * s).reshape(B * rows, ntap * C * s)
    return slab.astype(jnp.bfloat16)


# ------------------------- one-time parameter packing ------------------------

def _pack_conv1_w(w, scale, stride):
    """(Cout, Cin, k) -> (k*Cin, CW) bf16 in (tap, channel, within-tap) order,
    BN scale folded in, Cout zero-padded to CW."""
    cout, cin, k = w.shape
    ntap = k // stride
    ws = w * scale[:, None, None]
    wq = ws.reshape(cout, cin, ntap, stride).transpose(2, 1, 3, 0)
    wq = wq.reshape(ntap * cin * stride, cout)
    wq = jnp.pad(wq, ((0, 0), (0, CW - cout)))
    return wq.astype(jnp.bfloat16)


def _pack_s1_w(w, scale):
    """(Cout, Cin, k) -> (k*CW, CW) bf16: tap pairs packed into dense 128-wide
    K groups matching the dual-half activation staging; BN scale folded in."""
    cout, cin, k = w.shape
    assert k % 2 == 0
    ws = (w * scale[:, None, None]).transpose(2, 1, 0)            # (k, Cin, Cout)
    ws = jnp.pad(ws, ((0, 0), (0, CW - cin), (0, CW - cout)))     # (k, CW, CW)
    return ws.reshape(k * CW, CW).astype(jnp.bfloat16)


def _pack_biases(biases):
    rows = [jnp.pad(b.astype(jnp.float32), (0, CW - b.shape[0])) for b in biases]
    return jnp.stack(rows, axis=0)                                # (8, CW) f32


def prepare_packed_params(params):
    """Pack weights/biases ONCE (outside the per-call jitted forward)."""
    f1, f2 = params["f1"], params["f2"]
    w11 = _pack_conv1_w(f1["w1"], f1["bn1"][0], SPEC1["conv1"][1])
    w12 = _pack_conv1_w(f2["w1"], f2["bn1"][0], SPEC2["conv1"][1])
    wa1 = jnp.stack([_pack_s1_w(f1[f"w{i}"], f1[f"bn{i}"][0]) for i in (2, 3, 4)])
    wa2 = jnp.stack([_pack_s1_w(f2[f"w{i}"], f2[f"bn{i}"][0]) for i in (2, 3, 4)])
    bias = _pack_biases([f1["bn1"][1], f1["bn2"][1], f1["bn3"][1], f1["bn4"][1],
                         f2["bn1"][1], f2["bn2"][1], f2["bn3"][1], f2["bn4"][1]])
    return dict(w11=w11, wa1=wa1, w12=w12, wa2=wa2, bias=bias)


# --------------------------------- forward -----------------------------------

def temporal_feature_multimodel(x, packed):
    """Eval-mode forward of Temporal_feature_multimodel."""
    if x.ndim == 2:
        x = x[:, None, :]
    x = x.astype(jnp.float32)
    B, Cin, L = x.shape

    cfg1 = _branch_cfg(L, Cin, **SPEC1)
    cfg2 = _branch_cfg(L, Cin, **SPEC2)

    BB = min(B, MAX_BATCH_BLOCK)
    Bpad = _rup(B, BB)
    if Bpad != B:
        x = jnp.pad(x, ((0, Bpad - B), (0, 0), (0, 0)))

    slab1 = _conv1_slab(x, *SPEC1["conv1"], cfg1["R1"])
    slab2 = _conv1_slab(x, *SPEC2["conv1"], cfg2["R1"])

    Lcat = cfg1["P2"] + cfg2["P2"]
    out_rows = _rup(Lcat, 8)
    fp_max = max(cfg1["FP1"], cfg1["FP2"], cfg2["FP1"], cfg2["FP2"])
    fc_max = max(max(cfg1["Fs"]), max(cfg2["Fs"]))

    kernel = _make_kernel(cfg1, cfg2, BB, out_rows)
    out = pl.pallas_call(
        kernel,
        grid=(Bpad // BB,),
        out_shape=jax.ShapeDtypeStruct((Bpad, out_rows, CW), jnp.float32),
        in_specs=[
            pl.BlockSpec((BB * cfg1["R1"], cfg1["K1"]), lambda i: (i, 0)),
            pl.BlockSpec((BB * cfg2["R1"], cfg2["K1"]), lambda i: (i, 0)),
            pl.BlockSpec(packed["w11"].shape, lambda i: (0, 0)),
            pl.BlockSpec(packed["wa1"].shape, lambda i: (0, 0, 0)),
            pl.BlockSpec(packed["w12"].shape, lambda i: (0, 0)),
            pl.BlockSpec(packed["wa2"].shape, lambda i: (0, 0, 0)),
            pl.BlockSpec(packed["bias"].shape, lambda i: (0, 0)),
        ],
        out_specs=pl.BlockSpec((BB, out_rows, CW), lambda i: (i, 0, 0)),
        scratch_shapes=[
            pltpu.VMEM((BB * fp_max + 8, CW), jnp.float32),      # pool scratch
            pltpu.VMEM((BB * fc_max + 8, 2 * CW), jnp.float32),  # conv staging
        ],
        compiler_params=pltpu.CompilerParams(
            dimension_semantics=("parallel",)),
    )(slab1, slab2, packed["w11"], packed["wa1"], packed["w12"],
      packed["wa2"], packed["bias"])

    y = out[:B, :Lcat, :]                       # (B, Lcat, 64)  NLC
    return jnp.transpose(y, (0, 2, 1))          # (B, 64, Lcat)  NCL like PyTorch
    # TODO(synk): training-mode Dropout / BatchNorm batch statistics are not
    # implemented (eval-mode semantics only).


# ------------------------- parameter initialization -------------------------

def _bn_affine(cout, tag):
    """Deterministic BatchNorm1d inference affine: scale = gamma/sqrt(var+eps),
    bias = beta - mean*scale."""
    i = jnp.arange(cout, dtype=jnp.float32)
    gamma = 1.0 + 0.01 * i
    beta = 0.001 * i - 0.01 * tag
    mean = 0.02 * jnp.sin(0.37 * i + tag)
    var = 1.0 + 0.1 * jnp.cos(0.19 * i + tag) ** 2
    scale = gamma / jnp.sqrt(var + BN_EPS)
    bias = beta - mean * scale
    return scale, bias


def init_params(channels, key):
    ks = jax.random.split(key, 8)

    def cw(k, cout, cin, ksz):
        return jax.random.normal(k, (cout, cin, ksz), jnp.float32) / jnp.sqrt(cin * ksz)

    f1 = {
        "w1": cw(ks[0], 32, channels, 64), "bn1": _bn_affine(32, 1.0),
        "w2": cw(ks[1], 64, 32, 8),        "bn2": _bn_affine(64, 2.0),
        "w3": cw(ks[2], 64, 64, 8),        "bn3": _bn_affine(64, 3.0),
        "w4": cw(ks[3], 64, 64, 8),        "bn4": _bn_affine(64, 4.0),
    }
    f2 = {
        "w1": cw(ks[4], 32, channels, 512), "bn1": _bn_affine(32, 5.0),
        "w2": cw(ks[5], 64, 32, 6),         "bn2": _bn_affine(64, 6.0),
        "w3": cw(ks[6], 64, 64, 6),         "bn3": _bn_affine(64, 7.0),
        "w4": cw(ks[7], 64, 64, 6),         "bn4": _bn_affine(64, 8.0),
    }
    return {"f1": f1, "f2": f2}


if __name__ == "__main__":
    key = jax.random.PRNGKey(0)
    kx, kp = jax.random.split(key)

    B, C, L = 2, 4, 1024          # L must be >= 464 for the kernel-512 branch
    x = jax.random.normal(kx, (B, C, L), jnp.float32)
    params = init_params(C, kp)
    packed = prepare_packed_params(params)   # packed once, outside the jit

    fwd = jax.jit(temporal_feature_multimodel)
    out = jax.block_until_ready(fwd(x, packed))

    # branch1 -> (B, 64, 5), branch2 -> (B, 64, 7), concat on length -> (B, 64, 12)
    assert out.shape == (B, 64, 12), out.shape
    assert bool(jnp.all(jnp.isfinite(out)))
    print("KERNEL_OK")
</pallas_src>

<mosaic_0001>
module attributes {stable_mosaic.version = 11 : i64} {
  func.func @kernel(%arg0: i32, %arg1: memref<256x256xbf16, #tpu.memory_space<vmem>>, %arg2: memref<32x2048xbf16, #tpu.memory_space<vmem>>, %arg3: memref<256x64xbf16, #tpu.memory_space<vmem>>, %arg4: memref<3x512x64xbf16, #tpu.memory_space<vmem>>, %arg5: memref<2048x64xbf16, #tpu.memory_space<vmem>>, %arg6: memref<3x384x64xbf16, #tpu.memory_space<vmem>>, %arg7: memref<8x64xf32, #tpu.memory_space<vmem>>, %arg8: memref<2x16x64xf32, #tpu.memory_space<vmem>>, %arg9: memref<264x64xf32, #tpu.memory_space<vmem>>, %arg10: memref<72x128xf32, #tpu.memory_space<vmem>>) attributes {dimension_semantics = [#tpu.dimension_semantics<parallel>], iteration_bounds = array<i64: 1>, scalar_prefetch = 0 : i64, scratch_operands = 2 : i64, tpu.core_type = #tpu.core_type<tc>, window_params = [{transform_indices = @transform_0, window_bounds = array<i64: 256, 256>}, {transform_indices = @transform_1, window_bounds = array<i64: 32, 2048>}, {pipeline_mode = #tpu.pipeline_mode<synchronous>, transform_indices = @transform_2, window_bounds = array<i64: 256, 64>}, {pipeline_mode = #tpu.pipeline_mode<synchronous>, transform_indices = @transform_3, window_bounds = array<i64: 3, 512, 64>}, {pipeline_mode = #tpu.pipeline_mode<synchronous>, transform_indices = @transform_4, window_bounds = array<i64: 2048, 64>}, {pipeline_mode = #tpu.pipeline_mode<synchronous>, transform_indices = @transform_5, window_bounds = array<i64: 3, 384, 64>}, {pipeline_mode = #tpu.pipeline_mode<synchronous>, transform_indices = @transform_6, window_bounds = array<i64: 8, 64>}, {transform_indices = @transform_7, window_bounds = array<i64: 2, 16, 64>}]} {
    %c0 = arith.constant 0 : index
    %c0_0 = arith.constant 0 : index
    %0 = vector.load %arg1[%c0, %c0_0] : memref<256x256xbf16, #tpu.memory_space<vmem>>, vector<256x256xbf16>
    %c0_1 = arith.constant 0 : index
    %c0_2 = arith.constant 0 : index
    %1 = vector.load %arg3[%c0_1, %c0_2] : memref<256x64xbf16, #tpu.memory_space<vmem>>, vector<256x64xbf16>
    %cst = arith.constant dense<0.000000e+00> : vector<256x64xf32>
    %2 = tpu.matmul %0, %1, %cst {dimension_numbers = #tpu.dot_dimension_numbers<[1], [0], [0], [1], [0, 0, 1, 1], [], []>} : vector<256x256xbf16>, vector<256x64xbf16>, vector<256x64xf32> -> vector<256x64xf32>
    %c0_3 = arith.constant 0 : index
    %c0_4 = arith.constant 0 : index
    %3 = vector.load %arg7[%c0_3, %c0_4] : memref<8x64xf32, #tpu.memory_space<vmem>>, vector<1x64xf32>
    %4 = vector.broadcast %3 : vector<1x64xf32> to vector<256x64xf32>
    %5 = arith.addf %2, %4 : vector<256x64xf32>
    %cst_5 = arith.constant 0.000000e+00 : f32
    %6 = vector.broadcast %cst_5 : f32 to vector<256x64xf32>
    %7 = arith.cmpf oge, %5, %6 : vector<256x64xf32>
    %cst_6 = arith.constant 0.00999999977 : f32
    %8 = vector.broadcast %cst_6 : f32 to vector<256x64xf32>
    %9 = arith.mulf %8, %5 : vector<256x64xf32>
    %10 = arith.select %7, %5, %9 : vector<256x64xi1>, vector<256x64xf32>
    %cst_7 = arith.constant 0xFF800000 : f32
    %11 = vector.broadcast %cst_7 : f32 to vector<4x64xf32>
    %c0_8 = arith.constant 0 : index
    %c0_9 = arith.constant 0 : index
    %12 = vector.load %arg9[%c0_8, %c0_9] : memref<264x64xf32, #tpu.memory_space<vmem>>, vector<4x64xf32>
    tpu.vector_store %arg9[%c0_8, %c0_9], %11 {strides = array<i32>} : memref<264x64xf32, #tpu.memory_space<vmem>>, vector<4x64xf32>,
    %13 = vector.extract_strided_slice %10 {offsets = [0, 0], sizes = [124, 64], strides = [1, 1]} : vector<256x64xf32> to vector<124x64xf32>
    %c4 = arith.constant 4 : index
    %c0_10 = arith.constant 0 : index
    %14 = vector.load %arg9[%c4, %c0_10] : memref<264x64xf32, #tpu.memory_space<vmem>>, vector<124x64xf32>
    tpu.vector_store %arg9[%c4, %c0_10], %13 {strides = array<i32>} : memref<264x64xf32, #tpu.memory_space<vmem>>, vector<124x64xf32>,
    %c128 = arith.constant 128 : index
    %c0_11 = arith.constant 0 : index
    %15 = vector.load %arg9[%c128, %c0_11] : memref<264x64xf32, #tpu.memory_space<vmem>>, vector<4x64xf32>
    tpu.vector_store %arg9[%c128, %c0_11], %11 {strides = array<i32>} : memref<264x64xf32, #tpu.memory_space<vmem>>, vector<4x64xf32>,
    %16 = vector.extract_strided_slice %10 {offsets = [128, 0], sizes = [124, 64], strides = [1, 1]} : vector<256x64xf32> to vector<124x64xf32>
    %c132 = arith.constant 132 : index
    %c0_12 = arith.constant 0 : index
    %17 = vector.load %arg9[%c132, %c0_12] : memref<264x64xf32, #tpu.memory_space<vmem>>, vector<124x64xf32>
    tpu.vector_store %arg9[%c132, %c0_12], %16 {strides = array<i32>} : memref<264x64xf32, #tpu.memory_space<vmem>>, vector<124x64xf32>,
    %c0_13 = arith.constant 0 : index
    %c0_14 = arith.constant 0 : index
    %18 = tpu.strided_load %arg9[%c0_13, %c0_14] {strides = array<i32: 8, 1>} : memref<264x64xf32, #tpu.memory_space<vmem>>, vector<32x64xf32>
    %c1 = arith.constant 1 : index
    %c0_15 = arith.constant 0 : index
    %19 = tpu.strided_load %arg9[%c1, %c0_15] {strides = array<i32: 8, 1>} : memref<264x64xf32, #tpu.memory_space<vmem>>, vector<32x64xf32>
    %20 = arith.maximumf %18, %19 : vector<32x64xf32>
    %c2 = arith.constant 2 : index
    %c0_16 = arith.constant 0 : index
    %21 = tpu.strided_load %arg9[%c2, %c0_16] {strides = array<i32: 8, 1>} : memref<264x64xf32, #tpu.memory_space<vmem>>, vector<32x64xf32>
    %22 = arith.maximumf %20, %21 : vector<32x64xf32>
    %c3 = arith.constant 3 : index
    %c0_17 = arith.constant 0 : index
    %23 = tpu.strided_load %arg9[%c3, %c0_17] {strides = array<i32: 8, 1>} : memref<264x64xf32, #tpu.memory_space<vmem>>, vector<32x64xf32>
    %24 = arith.maximumf %22, %23 : vector<32x64xf32>
    %c4_18 = arith.constant 4 : index
    %c0_19 = arith.constant 0 : index
    %25 = tpu.strided_load %arg9[%c4_18, %c0_19] {strides = array<i32: 8, 1>} : memref<264x64xf32, #tpu.memory_space<vmem>>, vector<32x64xf32>
    %26 = arith.maximumf %24, %25 : vector<32x64xf32>
    %c5 = arith.constant 5 : index
    %c0_20 = arith.constant 0 : index
    %27 = tpu.strided_load %arg9[%c5, %c0_20] {strides = array<i32: 8, 1>} : memref<264x64xf32, #tpu.memory_space<vmem>>, vector<32x64xf32>
    %28 = arith.maximumf %26, %27 : vector<32x64xf32>
    %c6 = arith.constant 6 : index
    %c0_21 = arith.constant 0 : index
    %29 = tpu.strided_load %arg9[%c6, %c0_21] {strides = array<i32: 8, 1>} : memref<264x64xf32, #tpu.memory_space<vmem>>, vector<32x64xf32>
    %30 = arith.maximumf %28, %29 : vector<32x64xf32>
    %c7 = arith.constant 7 : index
    %c0_22 = arith.constant 0 : index
    %31 = tpu.strided_load %arg9[%c7, %c0_22] {strides = array<i32: 8, 1>} : memref<264x64xf32, #tpu.memory_space<vmem>>, vector<32x64xf32>
    %32 = arith.maximumf %30, %31 : vector<32x64xf32>
    %c1_23 = arith.constant 1 : index
    %c0_24 = arith.constant 0 : index
    %33 = vector.load %arg7[%c1_23, %c0_24] : memref<8x64xf32, #tpu.memory_space<vmem>>, vector<1x64xf32>
    %cst_25 = arith.constant 0.000000e+00 : f32
    %34 = vector.broadcast %cst_25 : f32 to vector<4x128xf32>
    %c0_26 = arith.constant 0 : index
    %c0_27 = arith.constant 0 : index
    %35 = vector.load %arg10[%c0_26, %c0_27] : memref<72x128xf32, #tpu.memory_space<vmem>>, vector<4x128xf32>
    tpu.vector_store %arg10[%c0_26, %c0_27], %34 {strides = array<i32>} : memref<72x128xf32, #tpu.memory_space<vmem>>, vector<4x128xf32>,
    %c19 = arith.constant 19 : index
    %c0_28 = arith.constant 0 : index
    %36 = vector.load %arg10[%c19, %c0_28] : memref<72x128xf32, #tpu.memory_space<vmem>>, vector<4x128xf32>
    tpu.vector_store %arg10[%c19, %c0_28], %34 {strides = array<i32>} : memref<72x128xf32, #tpu.memory_space<vmem>>, vector<4x128xf32>,
    %37 = vector.extract_strided_slice %32 {offsets = [0, 0], sizes = [16, 64], strides = [1, 1]} : vector<32x64xf32> to vector<16x64xf32>
    %c4_29 = arith.constant 4 : index
    %c0_30 = arith.constant 0 : index
    %38 = vector.load %arg10[%c4_29, %c0_30] : memref<72x128xf32, #tpu.memory_space<vmem>>, vector<16x64xf32>
    tpu.vector_store %arg10[%c4_29, %c0_30], %37 {strides = array<i32>} : memref<72x128xf32, #tpu.memory_space<vmem>>, vector<16x64xf32>,
    %c3_31 = arith.constant 3 : index
    %c64 = arith.constant 64 : index
    %39 = vector.load %arg10[%c3_31, %c64] : memref<72x128xf32, #tpu.memory_space<vmem>>, vector<16x64xf32>
    tpu.vector_store %arg10[%c3_31, %c64], %37 {strides = array<i32>} : memref<72x128xf32, #tpu.memory_space<vmem>>, vector<16x64xf32>,
    %c24 = arith.constant 24 : index
    %c0_32 = arith.constant 0 : index
    %40 = vector.load %arg10[%c24, %c0_32] : memref<72x128xf32, #tpu.memory_space<vmem>>, vector<4x128xf32>
    tpu.vector_store %arg10[%c24, %c0_32], %34 {strides = array<i32>} : memref<72x128xf32, #tpu.memory_space<vmem>>, vector<4x128xf32>,
    %c43 = arith.constant 43 : index
    %c0_33 = arith.constant 0 : index
    %41 = vector.load %arg10[%c43, %c0_33] : memref<72x128xf32, #tpu.memory_space<vmem>>, vector<4x128xf32>
    tpu.vector_store %arg10[%c43, %c0_33], %34 {strides = array<i32>} : memref<72x128xf32, #tpu.memory_space<vmem>>, vector<4x128xf32>,
    %42 = vector.extract_strided_slice %32 {offsets = [16, 0], sizes = [16, 64], strides = [1, 1]} : vector<32x64xf32> to vector<16x64xf32>
    %c28 = arith.constant 28 : index
    %c0_34 = arith.constant 0 : index
    %43 = vector.load %arg10[%c28, %c0_34] : memref<72x128xf32, #tpu.memory_space<vmem>>, vector<16x64xf32>
    tpu.vector_store %arg10[%c28, %c0_34], %42 {strides = array<i32>} : memref<72x128xf32, #tpu.memory_space<vmem>>, vector<16x64xf32>,
    %c27 = arith.constant 27 : index
    %c64_35 = arith.constant 64 : index
    %44 = vector.load %arg10[%c27, %c64_35] : memref<72x128xf32, #tpu.memory_space<vmem>>, vector<16x64xf32>
    tpu.vector_store %arg10[%c27, %c64_35], %42 {strides = array<i32>} : memref<72x128xf32, #tpu.memory_space<vmem>>, vector<16x64xf32>,
    %c0_36 = arith.constant 0 : index
    %c0_37 = arith.constant 0 : index
    %45 = vector.load %arg10[%c0_36, %c0_37] : memref<72x128xf32, #tpu.memory_space<vmem>>, vector<48x128xf32>
    %c2_38 = arith.constant 2 : index
    %c0_39 = arith.constant 0 : index
    %46 = vector.load %arg10[%c2_38, %c0_39] : memref<72x128xf32, #tpu.memory_space<vmem>>, vector<48x128xf32>
    %c4_40 = arith.constant 4 : index
    %c0_41 = arith.constant 0 : index
    %47 = vector.load %arg10[%c4_40, %c0_41] : memref<72x128xf32, #tpu.memory_space<vmem>>, vector<48x128xf32>
    %c6_42 = arith.constant 6 : index
    %c0_43 = arith.constant 0 : index
    %48 = vector.load %arg10[%c6_42, %c0_43] : memref<72x128xf32, #tpu.memory_space<vmem>>, vector<48x128xf32>
    %49 = tpu.concatenate %45, %46, %47, %48 in 1 : vector<48x128xf32>, vector<48x128xf32>, vector<48x128xf32>, vector<48x128xf32> -> vector<48x512xf32>
    %50 = arith.truncf %49 : vector<48x512xf32> to vector<48x512xbf16>
    %c0_44 = arith.constant 0 : index
    %c0_45 = arith.constant 0 : index
    %c0_46 = arith.constant 0 : index
    %51 = vector.load %arg4[%c0_44, %c0_45, %c0_46] : memref<3x512x64xbf16, #tpu.memory_space<vmem>>, vector<1x512x64xbf16>
    %52 = vector.shape_cast %51 : vector<1x512x64xbf16> to vector<512x64xbf16>
    %cst_47 = arith.constant dense<0.000000e+00> : vector<48x64xf32>
    %53 = tpu.matmul %50, %52, %cst_47 {dimension_numbers = #tpu.dot_dimension_numbers<[1], [0], [0], [1], [0, 0, 1, 1], [], []>} : vector<48x512xbf16>, vector<512x64xbf16>, vector<48x64xf32> -> vector<48x64xf32>
    %54 = vector.broadcast %33 : vector<1x64xf32> to vector<48x64xf32>
    %55 = arith.addf %53, %54 : vector<48x64xf32>
    %cst_48 = arith.constant 0.000000e+00 : f32
    %56 = vector.broadcast %cst_48 : f32 to vector<48x64xf32>
    %57 = arith.cmpf oge, %55, %56 : vector<48x64xf32>
    %cst_49 = arith.constant 0.00999999977 : f32
    %58 = vector.broadcast %cst_49 : f32 to vector<48x64xf32>
    %59 = arith.mulf %58, %55 : vector<48x64xf32>
    %60 = arith.select %57, %55, %59 : vector<48x64xi1>, vector<48x64xf32>
    %c2_50 = arith.constant 2 : index
    %c0_51 = arith.constant 0 : index
    %61 = vector.load %arg7[%c2_50, %c0_51] : memref<8x64xf32, #tpu.memory_space<vmem>>, vector<1x64xf32>
    %cst_52 = arith.constant 0.000000e+00 : f32
    %62 = vector.broadcast %cst_52 : f32 to vector<4x128xf32>
    %c0_53 = arith.constant 0 : index
    %c0_54 = arith.constant 0 : index
    %63 = vector.load %arg10[%c0_53, %c0_54] : memref<72x128xf32, #tpu.memory_space<vmem>>, vector<4x128xf32>
    tpu.vector_store %arg10[%c0_53, %c0_54], %62 {strides = array<i32>} : memref<72x128xf32, #tpu.memory_space<vmem>>, vector<4x128xf32>,
    %c20 = arith.constant 20 : index
    %c0_55 = arith.constant 0 : index
    %64 = vector.load %arg10[%c20, %c0_55] : memref<72x128xf32, #tpu.memory_space<vmem>>, vector<4x128xf32>
    tpu.vector_store %arg10[%c20, %c0_55], %62 {strides = array<i32>} : memref<72x128xf32, #tpu.memory_space<vmem>>, vector<4x128xf32>,
    %65 = vector.extract_strided_slice %60 {offsets = [0, 0], sizes = [17, 64], strides = [1, 1]} : vector<48x64xf32> to vector<17x64xf32>
    %c4_56 = arith.constant 4 : index
    %c0_57 = arith.constant 0 : index
    %66 = vector.load %arg10[%c4_56, %c0_57] : memref<72x128xf32, #tpu.memory_space<vmem>>, vector<17x64xf32>
    tpu.vector_store %arg10[%c4_56, %c0_57], %65 {strides = array<i32>} : memref<72x128xf32, #tpu.memory_space<vmem>>, vector<17x64xf32>,
    %c3_58 = arith.constant 3 : index
    %c64_59 = arith.constant 64 : index
    %67 = vector.load %arg10[%c3_58, %c64_59] : memref<72x128xf32, #tpu.memory_space<vmem>>, vector<17x64xf32>
    tpu.vector_store %arg10[%c3_58, %c64_59], %65 {strides = array<i32>} : memref<72x128xf32, #tpu.memory_space<vmem>>, vector<17x64xf32>,
    %c32 = arith.constant 32 : index
    %c0_60 = arith.constant 0 : index
    %68 = vector.load %arg10[%c32, %c0_60] : memref<72x128xf32, #tpu.memory_space<vmem>>, vector<4x128xf32>
    tpu.vector_store %arg10[%c32, %c0_60], %62 {strides = array<i32>} : memref<72x128xf32, #tpu.memory_space<vmem>>, vector<4x128xf32>,
    %c52 = arith.constant 52 : index
    %c0_61 = arith.constant 0 : index
    %69 = vector.load %arg10[%c52, %c0_61] : memref<72x128xf32, #tpu.memory_space<vmem>>, vector<4x128xf32>
    tpu.vector_store %arg10[%c52, %c0_61], %62 {strides = array<i32>} : memref<72x128xf32, #tpu.memory_space<vmem>>, vector<4x128xf32>,
    %70 = vector.extract_strided_slice %60 {offsets = [24, 0], sizes = [17, 64], strides = [1, 1]} : vector<48x64xf32> to vector<17x64xf32>
    %c36 = arith.constant 36 : index
    %c0_62 = arith.constant 0 : index
    %71 = vector.load %arg10[%c36, %c0_62] : memref<72x128xf32, #tpu.memory_space<vmem>>, vector<17x64xf32>
    tpu.vector_store %arg10[%c36, %c0_62], %70 {strides = array<i32>} : memref<72x128xf32, #tpu.memory_space<vmem>>, vector<17x64xf32>,
    %c35 = arith.constant 35 : index
    %c64_63 = arith.constant 64 : index
    %72 = vector.load %arg10[%c35, %c64_63] : memref<72x128xf32, #tpu.memory_space<vmem>>, vector<17x64xf32>
    tpu.vector_store %arg10[%c35, %c64_63], %70 {strides = array<i32>} : memref<72x128xf32, #tpu.memory_space<vmem>>, vector<17x64xf32>,
    %c0_64 = arith.constant 0 : index
    %c0_65 = arith.constant 0 : index
    %73 = vector.load %arg10[%c0_64, %c0_65] : memref<72x128xf32, #tpu.memory_space<vmem>>, vector<64x128xf32>
    %c2_66 = arith.constant 2 : index
    %c0_67 = arith.constant 0 : index
    %74 = vector.load %arg10[%c2_66, %c0_67] : memref<72x128xf32, #tpu.memory_space<vmem>>, vector<64x128xf32>
    %c4_68 = arith.constant 4 : index
    %c0_69 = arith.constant 0 : index
    %75 = vector.load %arg10[%c4_68, %c0_69] : memref<72x128xf32, #tpu.memory_space<vmem>>, vector<64x128xf32>
    %c6_70 = arith.constant 6 : index
    %c0_71 = arith.constant 0 : index
    %76 = vector.load %arg10[%c6_70, %c0_71] : memref<72x128xf32, #tpu.memory_space<vmem>>, vector<64x128xf32>
    %77 = tpu.concatenate %73, %74, %75, %76 in 1 : vector<64x128xf32>, vector<64x128xf32>, vector<64x128xf32>, vector<64x128xf32> -> vector<64x512xf32>
    %78 = arith.truncf %77 : vector<64x512xf32> to vector<64x512xbf16>
    %c1_72 = arith.constant 1 : index
    %c0_73 = arith.constant 0 : index
    %c0_74 = arith.constant 0 : index
    %79 = vector.load %arg4[%c1_72, %c0_73, %c0_74] : memref<3x512x64xbf16, #tpu.memory_space<vmem>>, vector<1x512x64xbf16>
    %80 = vector.shape_cast %79 : vector<1x512x64xbf16> to vector<512x64xbf16>
    %cst_75 = arith.constant dense<0.000000e+00> : vector<64x64xf32>
    %81 = tpu.matmul %78, %80, %cst_75 {dimension_numbers = #tpu.dot_dimension_numbers<[1], [0], [0], [1], [0, 0, 1, 1], [], []>} : vector<64x512xbf16>, vector<512x64xbf16>, vector<64x64xf32> -> vector<64x64xf32>
    %82 = vector.broadcast %61 : vector<1x64xf32> to vector<64x64xf32>
    %83 = arith.addf %81, %82 : vector<64x64xf32>
    %cst_76 = arith.constant 0.000000e+00 : f32
    %84 = vector.broadcast %cst_76 : f32 to vector<64x64xf32>
    %85 = arith.cmpf oge, %83, %84 : vector<64x64xf32>
    %cst_77 = arith.constant 0.00999999977 : f32
    %86 = vector.broadcast %cst_77 : f32 to vector<64x64xf32>
    %87 = arith.mulf %86, %83 : vector<64x64xf32>
    %88 = arith.select %85, %83, %87 : vector<64x64xi1>, vector<64x64xf32>
    %c3_78 = arith.constant 3 : index
    %c0_79 = arith.constant 0 : index
    %89 = vector.load %arg7[%c3_78, %c0_79] : memref<8x64xf32, #tpu.memory_space<vmem>>, vector<1x64xf32>
    %cst_80 = arith.constant 0.000000e+00 : f32
    %90 = vector.broadcast %cst_80 : f32 to vector<4x128xf32>
    %c0_81 = arith.constant 0 : index
    %c0_82 = arith.constant 0 : index
    %91 = vector.load %arg10[%c0_81, %c0_82] : memref<72x128xf32, #tpu.memory_space<vmem>>, vector<4x128xf32>
    tpu.vector_store %arg10[%c0_81, %c0_82], %90 {strides = array<i32>} : memref<72x128xf32, #tpu.memory_space<vmem>>, vector<4x128xf32>,
    %c21 = arith.constant 21 : index
    %c0_83 = arith.constant 0 : index
    %92 = vector.load %arg10[%c21, %c0_83] : memref<72x128xf32, #tpu.memory_space<vmem>>, vector<4x128xf32>
    tpu.vector_store %arg10[%c21, %c0_83], %90 {strides = array<i32>} : memref<72x128xf32, #tpu.memory_space<vmem>>, vector<4x128xf32>,
    %93 = vector.extract_strided_slice %88 {offsets = [0, 0], sizes = [18, 64], strides = [1, 1]} : vector<64x64xf32> to vector<18x64xf32>
    %c4_84 = arith.constant 4 : index
    %c0_85 = arith.constant 0 : index
    %94 = vector.load %arg10[%c4_84, %c0_85] : memref<72x128xf32, #tpu.memory_space<vmem>>, vector<18x64xf32>
    tpu.vector_store %arg10[%c4_84, %c0_85], %93 {strides = array<i32>} : memref<72x128xf32, #tpu.memory_space<vmem>>, vector<18x64xf32>,
    %c3_86 = arith.constant 3 : index
    %c64_87 = arith.constant 64 : index
    %95 = vector.load %arg10[%c3_86, %c64_87] : memref<72x128xf32, #tpu.memory_space<vmem>>, vector<18x64xf32>
    tpu.vector_store %arg10[%c3_86, %c64_87], %93 {strides = array<i32>} : memref<72x128xf32, #tpu.memory_space<vmem>>, vector<18x64xf32>,
    %c32_88 = arith.constant 32 : index
    %c0_89 = arith.constant 0 : index
    %96 = vector.load %arg10[%c32_88, %c0_89] : memref<72x128xf32, #tpu.memory_space<vmem>>, vector<4x128xf32>
    tpu.vector_store %arg10[%c32_88, %c0_89], %90 {strides = array<i32>} : memref<72x128xf32, #tpu.memory_space<vmem>>, vector<4x128xf32>,
    %c53 = arith.constant 53 : index
    %c0_90 = arith.constant 0 : index
    %97 = vector.load %arg10[%c53, %c0_90] : memref<72x128xf32, #tpu.memory_space<vmem>>, vector<4x128xf32>
    tpu.vector_store %arg10[%c53, %c0_90], %90 {strides = array<i32>} : memref<72x128xf32, #tpu.memory_space<vmem>>, vector<4x128xf32>,
    %98 = vector.extract_strided_slice %88 {offsets = [32, 0], sizes = [18, 64], strides = [1, 1]} : vector<64x64xf32> to vector<18x64xf32>
    %c36_91 = arith.constant 36 : index
    %c0_92 = arith.constant 0 : index
    %99 = vector.load %arg10[%c36_91, %c0_92] : memref<72x128xf32, #tpu.memory_space<vmem>>, vector<18x64xf32>
    tpu.vector_store %arg10[%c36_91, %c0_92], %98 {strides = array<i32>} : memref<72x128xf32, #tpu.memory_space<vmem>>, vector<18x64xf32>,
    %c35_93 = arith.constant 35 : index
    %c64_94 = arith.constant 64 : index
    %100 = vector.load %arg10[%c35_93, %c64_94] : memref<72x128xf32, #tpu.memory_space<vmem>>, vector<18x64xf32>
    tpu.vector_store %arg10[%c35_93, %c64_94], %98 {strides = array<i32>} : memref<72x128xf32, #tpu.memory_space<vmem>>, vector<18x64xf32>,
    %c0_95 = arith.constant 0 : index
    %c0_96 = arith.constant 0 : index
    %101 = vector.load %arg10[%c0_95, %c0_96] : memref<72x128xf32, #tpu.memory_space<vmem>>, vector<64x128xf32>
    %c2_97 = arith.constant 2 : index
    %c0_98 = arith.constant 0 : index
    %102 = vector.load %arg10[%c2_97, %c0_98] : memref<72x128xf32, #tpu.memory_space<vmem>>, vector<64x128xf32>
    %c4_99 = arith.constant 4 : index
    %c0_100 = arith.constant 0 : index
    %103 = vector.load %arg10[%c4_99, %c0_100] : memref<72x128xf32, #tpu.memory_space<vmem>>, vector<64x128xf32>
    %c6_101 = arith.constant 6 : index
    %c0_102 = arith.constant 0 : index
    %104 = vector.load %arg10[%c6_101, %c0_102] : memref<72x128xf32, #tpu.memory_space<vmem>>, vector<64x128xf32>
    %105 = tpu.concatenate %101, %102, %103, %104 in 1 : vector<64x128xf32>, vector<64x128xf32>, vector<64x128xf32>, vector<64x128xf32> -> vector<64x512xf32>
    %106 = arith.truncf %105 : vector<64x512xf32> to vector<64x512xbf16>
    %c2_103 = arith.constant 2 : index
    %c0_104 = arith.constant 0 : index
    %c0_105 = arith.constant 0 : index
    %107 = vector.load %arg4[%c2_103, %c0_104, %c0_105] : memref<3x512x64xbf16, #tpu.memory_space<vmem>>, vector<1x512x64xbf16>
    %108 = vector.shape_cast %107 : vector<1x512x64xbf16> to vector<512x64xbf16>
    %cst_106 = arith.constant dense<0.000000e+00> : vector<64x64xf32>
    %109 = tpu.matmul %106, %108, %cst_106 {dimension_numbers = #tpu.dot_dimension_numbers<[1], [0], [0], [1], [0, 0, 1, 1], [], []>} : vector<64x512xbf16>, vector<512x64xbf16>, vector<64x64xf32> -> vector<64x64xf32>
    %110 = vector.broadcast %89 : vector<1x64xf32> to vector<64x64xf32>
    %111 = arith.addf %109, %110 : vector<64x64xf32>
    %cst_107 = arith.constant 0.000000e+00 : f32
    %112 = vector.broadcast %cst_107 : f32 to vector<64x64xf32>
    %113 = arith.cmpf oge, %111, %112 : vector<64x64xf32>
    %cst_108 = arith.constant 0.00999999977 : f32
    %114 = vector.broadcast %cst_108 : f32 to vector<64x64xf32>
    %115 = arith.mulf %114, %111 : vector<64x64xf32>
    %116 = arith.select %113, %111, %115 : vector<64x64xi1>, vector<64x64xf32>
    %cst_109 = arith.constant 0xFF800000 : f32
    %117 = vector.broadcast %cst_109 : f32 to vector<2x64xf32>
    %cst_110 = arith.constant 0xFF800000 : f32
    %118 = vector.broadcast %cst_110 : f32 to vector<4x64xf32>
    %c0_111 = arith.constant 0 : index
    %c0_112 = arith.constant 0 : index
    %119 = vector.load %arg9[%c0_111, %c0_112] : memref<264x64xf32, #tpu.memory_space<vmem>>, vector<2x64xf32>
    tpu.vector_store %arg9[%c0_111, %c0_112], %117 {strides = array<i32>} : memref<264x64xf32, #tpu.memory_space<vmem>>, vector<2x64xf32>,
    %c20_113 = arith.constant 20 : index
    %c0_114 = arith.constant 0 : index
    %120 = vector.load %arg9[%c20_113, %c0_114] : memref<264x64xf32, #tpu.memory_space<vmem>>, vector<4x64xf32>
    tpu.vector_store %arg9[%c20_113, %c0_114], %118 {strides = array<i32>} : memref<264x64xf32, #tpu.memory_space<vmem>>, vector<4x64xf32>,
    %121 = vector.extract_strided_slice %116 {offsets = [0, 0], sizes = [18, 64], strides = [1, 1]} : vector<64x64xf32> to vector<18x64xf32>
    %c2_115 = arith.constant 2 : index
    %c0_116 = arith.constant 0 : index
    %122 = vector.load %arg9[%c2_115, %c0_116] : memref<264x64xf32, #tpu.memory_space<vmem>>, vector<18x64xf32>
    tpu.vector_store %arg9[%c2_115, %c0_116], %121 {strides = array<i32>} : memref<264x64xf32, #tpu.memory_space<vmem>>, vector<18x64xf32>,
    %c24_117 = arith.constant 24 : index
    %c0_118 = arith.constant 0 : index
    %123 = vector.load %arg9[%c24_117, %c0_118] : memref<264x64xf32, #tpu.memory_space<vmem>>, vector<2x64xf32>
    tpu.vector_store %arg9[%c24_117, %c0_118], %117 {strides = array<i32>} : memref<264x64xf32, #tpu.memory_space<vmem>>, vector<2x64xf32>,
    %c44 = arith.constant 44 : index
    %c0_119 = arith.constant 0 : index
    %124 = vector.load %arg9[%c44, %c0_119] : memref<264x64xf32, #tpu.memory_space<vmem>>, vector<4x64xf32>
    tpu.vector_store %arg9[%c44, %c0_119], %118 {strides = array<i32>} : memref<264x64xf32, #tpu.memory_space<vmem>>, vector<4x64xf32>,
    %125 = vector.extract_strided_slice %116 {offsets = [32, 0], sizes = [18, 64], strides = [1, 1]} : vector<64x64xf32> to vector<18x64xf32>
    %c26 = arith.constant 26 : index
    %c0_120 = arith.constant 0 : index
    %126 = vector.load %arg9[%c26, %c0_120] : memref<264x64xf32, #tpu.memory_space<vmem>>, vector<18x64xf32>
    tpu.vector_store %arg9[%c26, %c0_120], %125 {strides = array<i32>} : memref<264x64xf32, #tpu.memory_space<vmem>>, vector<18x64xf32>,
    %c0_121 = arith.constant 0 : index
    %c0_122 = arith.constant 0 : index
    %127 = tpu.strided_load %arg9[%c0_121, %c0_122] {strides = array<i32: 4, 1>} : memref<264x64xf32, #tpu.memory_space<vmem>>, vector<12x64xf32>
    %c1_123 = arith.constant 1 : index
    %c0_124 = arith.constant 0 : index
    %128 = tpu.strided_load %arg9[%c1_123, %c0_124] {strides = array<i32: 4, 1>} : memref<264x64xf32, #tpu.memory_space<vmem>>, vector<12x64xf32>
    %129 = arith.maximumf %127, %128 : vector<12x64xf32>
    %c2_125 = arith.constant 2 : index
    %c0_126 = arith.constant 0 : index
    %130 = tpu.strided_load %arg9[%c2_125, %c0_126] {strides = array<i32: 4, 1>} : memref<264x64xf32, #tpu.memory_space<vmem>>, vector<12x64xf32>
    %131 = arith.maximumf %129, %130 : vector<12x64xf32>
    %c3_127 = arith.constant 3 : index
    %c0_128 = arith.constant 0 : index
    %132 = tpu.strided_load %arg9[%c3_127, %c0_128] {strides = array<i32: 4, 1>} : memref<264x64xf32, #tpu.memory_space<vmem>>, vector<12x64xf32>
    %133 = arith.maximumf %131, %132 : vector<12x64xf32>
    %c0_129 = arith.constant 0 : index
    %c0_130 = arith.constant 0 : index
    %134 = vector.load %arg2[%c0_129, %c0_130] : memref<32x2048xbf16, #tpu.memory_space<vmem>>, vector<32x2048xbf16>
    %c0_131 = arith.constant 0 : index
    %c0_132 = arith.constant 0 : index
    %135 = vector.load %arg5[%c0_131, %c0_132] : memref<2048x64xbf16, #tpu.memory_space<vmem>>, vector<2048x64xbf16>
    %cst_133 = arith.constant dense<0.000000e+00> : vector<32x64xf32>
    %136 = tpu.matmul %134, %135, %cst_133 {dimension_numbers = #tpu.dot_dimension_numbers<[1], [0], [0], [1], [0, 0, 1, 1], [], []>} : vector<32x2048xbf16>, vector<2048x64xbf16>, vector<32x64xf32> -> vector<32x64xf32>
    %c4_134 = arith.constant 4 : index
    %c0_135 = arith.constant 0 : index
    %137 = vector.load %arg7[%c4_134, %c0_135] : memref<8x64xf32, #tpu.memory_space<vmem>>, vector<1x64xf32>
    %138 = vector.broadcast %137 : vector<1x64xf32> to vector<32x64xf32>
    %139 = arith.addf %136, %138 : vector<32x64xf32>
    %cst_136 = arith.constant 0.000000e+00 : f32
    %140 = vector.broadcast %cst_136 : f32 to vector<32x64xf32>
    %141 = arith.cmpf oge, %139, %140 : vector<32x64xf32>
    %cst_137 = arith.constant 0.00999999977 : f32
    %142 = vector.broadcast %cst_137 : f32 to vector<32x64xf32>
    %143 = arith.mulf %142, %139 : vector<32x64xf32>
    %144 = arith.select %141, %139, %143 : vector<32x64xi1>, vector<32x64xf32>
    %cst_138 = arith.constant 0xFF800000 : f32
    %145 = vector.broadcast %cst_138 : f32 to vector<2x64xf32>
    %cst_139 = arith.constant 0xFF800000 : f32
    %146 = vector.broadcast %cst_139 : f32 to vector<5x64xf32>
    %c0_140 = arith.constant 0 : index
    %c0_141 = arith.constant 0 : index
    %147 = vector.load %arg9[%c0_140, %c0_141] : memref<264x64xf32, #tpu.memory_space<vmem>>, vector<2x64xf32>
    tpu.vector_store %arg9[%c0_140, %c0_141], %145 {strides = array<i32>} : memref<264x64xf32, #tpu.memory_space<vmem>>, vector<2x64xf32>,
    %c11 = arith.constant 11 : index
    %c0_142 = arith.constant 0 : index
    %148 = vector.load %arg9[%c11, %c0_142] : memref<264x64xf32, #tpu.memory_space<vmem>>, vector<5x64xf32>
    tpu.vector_store %arg9[%c11, %c0_142], %146 {strides = array<i32>} : memref<264x64xf32, #tpu.memory_space<vmem>>, vector<5x64xf32>,
    %149 = vector.extract_strided_slice %144 {offsets = [0, 0], sizes = [9, 64], strides = [1, 1]} : vector<32x64xf32> to vector<9x64xf32>
    %c2_143 = arith.constant 2 : index
    %c0_144 = arith.constant 0 : index
    %150 = vector.load %arg9[%c2_143, %c0_144] : memref<264x64xf32, #tpu.memory_space<vmem>>, vector<9x64xf32>
    tpu.vector_store %arg9[%c2_143, %c0_144], %149 {strides = array<i32>} : memref<264x64xf32, #tpu.memory_space<vmem>>, vector<9x64xf32>,
    %c16 = arith.constant 16 : index
    %c0_145 = arith.constant 0 : index
    %151 = vector.load %arg9[%c16, %c0_145] : memref<264x64xf32, #tpu.memory_space<vmem>>, vector<2x64xf32>
    tpu.vector_store %arg9[%c16, %c0_145], %145 {strides = array<i32>} : memref<264x64xf32, #tpu.memory_space<vmem>>, vector<2x64xf32>,
    %c27_146 = arith.constant 27 : index
    %c0_147 = arith.constant 0 : index
    %152 = vector.load %arg9[%c27_146, %c0_147] : memref<264x64xf32, #tpu.memory_space<vmem>>, vector<5x64xf32>
    tpu.vector_store %arg9[%c27_146, %c0_147], %146 {strides = array<i32>} : memref<264x64xf32, #tpu.memory_space<vmem>>, vector<5x64xf32>,
    %153 = vector.extract_strided_slice %144 {offsets = [16, 0], sizes = [9, 64], strides = [1, 1]} : vector<32x64xf32> to vector<9x64xf32>
    %c18 = arith.constant 18 : index
    %c0_148 = arith.constant 0 : index
    %154 = vector.load %arg9[%c18, %c0_148] : memref<264x64xf32, #tpu.memory_space<vmem>>, vector<9x64xf32>
    tpu.vector_store %arg9[%c18, %c0_148], %153 {strides = array<i32>} : memref<264x64xf32, #tpu.memory_space<vmem>>, vector<9x64xf32>,
    %c0_149 = arith.constant 0 : index
    %c0_150 = arith.constant 0 : index
    %155 = tpu.strided_load %arg9[%c0_149, %c0_150] {strides = array<i32: 4, 1>} : memref<264x64xf32, #tpu.memory_space<vmem>>, vector<8x64xf32>
    %c1_151 = arith.constant 1 : index
    %c0_152 = arith.constant 0 : index
    %156 = tpu.strided_load %arg9[%c1_151, %c0_152] {strides = array<i32: 4, 1>} : memref<264x64xf32, #tpu.memory_space<vmem>>, vector<8x64xf32>
    %157 = arith.maximumf %155, %156 : vector<8x64xf32>
    %c2_153 = arith.constant 2 : index
    %c0_154 = arith.constant 0 : index
    %158 = tpu.strided_load %arg9[%c2_153, %c0_154] {strides = array<i32: 4, 1>} : memref<264x64xf32, #tpu.memory_space<vmem>>, vector<8x64xf32>
    %159 = arith.maximumf %157, %158 : vector<8x64xf32>
    %c3_155 = arith.constant 3 : index
    %c0_156 = arith.constant 0 : index
    %160 = tpu.strided_load %arg9[%c3_155, %c0_156] {strides = array<i32: 4, 1>} : memref<264x64xf32, #tpu.memory_space<vmem>>, vector<8x64xf32>
    %161 = arith.maximumf %159, %160 : vector<8x64xf32>
    %c5_157 = arith.constant 5 : index
    %c0_158 = arith.constant 0 : index
    %162 = vector.load %arg7[%c5_157, %c0_158] : memref<8x64xf32, #tpu.memory_space<vmem>>, vector<1x64xf32>
    %cst_159 = arith.constant 0.000000e+00 : f32
    %163 = vector.broadcast %cst_159 : f32 to vector<4x128xf32>
    %c0_160 = arith.constant 0 : index
    %c0_161 = arith.constant 0 : index
    %164 = vector.load %arg10[%c0_160, %c0_161] : memref<72x128xf32, #tpu.memory_space<vmem>>, vector<4x128xf32>
    tpu.vector_store %arg10[%c0_160, %c0_161], %163 {strides = array<i32>} : memref<72x128xf32, #tpu.memory_space<vmem>>, vector<4x128xf32>,
    %c6_162 = arith.constant 6 : index
    %c0_163 = arith.constant 0 : index
    %165 = vector.load %arg10[%c6_162, %c0_163] : memref<72x128xf32, #tpu.memory_space<vmem>>, vector<4x128xf32>
    tpu.vector_store %arg10[%c6_162, %c0_163], %163 {strides = array<i32>} : memref<72x128xf32, #tpu.memory_space<vmem>>, vector<4x128xf32>,
    %166 = vector.extract_strided_slice %161 {offsets = [0, 0], sizes = [3, 64], strides = [1, 1]} : vector<8x64xf32> to vector<3x64xf32>
    %c4_164 = arith.constant 4 : index
    %c0_165 = arith.constant 0 : index
    %167 = vector.load %arg10[%c4_164, %c0_165] : memref<72x128xf32, #tpu.memory_space<vmem>>, vector<3x64xf32>
    tpu.vector_store %arg10[%c4_164, %c0_165], %166 {strides = array<i32>} : memref<72x128xf32, #tpu.memory_space<vmem>>, vector<3x64xf32>,
    %c3_166 = arith.constant 3 : index
    %c64_167 = arith.constant 64 : index
    %168 = vector.load %arg10[%c3_166, %c64_167] : memref<72x128xf32, #tpu.memory_space<vmem>>, vector<3x64xf32>
    tpu.vector_store %arg10[%c3_166, %c64_167], %166 {strides = array<i32>} : memref<72x128xf32, #tpu.memory_space<vmem>>, vector<3x64xf32>,
    %c16_168 = arith.constant 16 : index
    %c0_169 = arith.constant 0 : index
    %169 = vector.load %arg10[%c16_168, %c0_169] : memref<72x128xf32, #tpu.memory_space<vmem>>, vector<4x128xf32>
    tpu.vector_store %arg10[%c16_168, %c0_169], %163 {strides = array<i32>} : memref<72x128xf32, #tpu.memory_space<vmem>>, vector<4x128xf32>,
    %c22 = arith.constant 22 : index
    %c0_170 = arith.constant 0 : index
    %170 = vector.load %arg10[%c22, %c0_170] : memref<72x128xf32, #tpu.memory_space<vmem>>, vector<4x128xf32>
    tpu.vector_store %arg10[%c22, %c0_170], %163 {strides = array<i32>} : memref<72x128xf32, #tpu.memory_space<vmem>>, vector<4x128xf32>,
    %171 = vector.extract_strided_slice %161 {offsets = [4, 0], sizes = [3, 64], strides = [1, 1]} : vector<8x64xf32> to vector<3x64xf32>
    %c20_171 = arith.constant 20 : index
    %c0_172 = arith.constant 0 : index
    %172 = vector.load %arg10[%c20_171, %c0_172] : memref<72x128xf32, #tpu.memory_space<vmem>>, vector<3x64xf32>
    tpu.vector_store %arg10[%c20_171, %c0_172], %171 {strides = array<i32>} : memref<72x128xf32, #tpu.memory_space<vmem>>, vector<3x64xf32>,
    %c19_173 = arith.constant 19 : index
    %c64_174 = arith.constant 64 : index
    %173 = vector.load %arg10[%c19_173, %c64_174] : memref<72x128xf32, #tpu.memory_space<vmem>>, vector<3x64xf32>
    tpu.vector_store %arg10[%c19_173, %c64_174], %171 {strides = array<i32>} : memref<72x128xf32, #tpu.memory_space<vmem>>, vector<3x64xf32>,
    %c0_175 = arith.constant 0 : index
    %c0_176 = arith.constant 0 : index
    %174 = vector.load %arg10[%c0_175, %c0_176] : memref<72x128xf32, #tpu.memory_space<vmem>>, vector<32x128xf32>
    %c2_177 = arith.constant 2 : index
    %c0_178 = arith.constant 0 : index
    %175 = vector.load %arg10[%c2_177, %c0_178] : memref<72x128xf32, #tpu.memory_space<vmem>>, vector<32x128xf32>
    %c4_179 = arith.constant 4 : index
    %c0_180 = arith.constant 0 : index
    %176 = vector.load %arg10[%c4_179, %c0_180] : memref<72x128xf32, #tpu.memory_space<vmem>>, vector<32x128xf32>
    %177 = tpu.concatenate %174, %175, %176 in 1 : vector<32x128xf32>, vector<32x128xf32>, vector<32x128xf32> -> vector<32x384xf32>
    %178 = arith.truncf %177 : vector<32x384xf32> to vector<32x384xbf16>
    %c0_181 = arith.constant 0 : index
    %c0_182 = arith.constant 0 : index
    %c0_183 = arith.constant 0 : index
    %179 = vector.load %arg6[%c0_181, %c0_182, %c0_183] : memref<3x384x64xbf16, #tpu.memory_space<vmem>>, vector<1x384x64xbf16>
    %180 = vector.shape_cast %179 : vector<1x384x64xbf16> to vector<384x64xbf16>
    %cst_184 = arith.constant dense<0.000000e+00> : vector<32x64xf32>
    %181 = tpu.matmul %178, %180, %cst_184 {dimension_numbers = #tpu.dot_dimension_numbers<[1], [0], [0], [1], [0, 0, 1, 1], [], []>} : vector<32x384xbf16>, vector<384x64xbf16>, vector<32x64xf32> -> vector<32x64xf32>
    %182 = vector.broadcast %162 : vector<1x64xf32> to vector<32x64xf32>
    %183 = arith.addf %181, %182 : vector<32x64xf32>
    %cst_185 = arith.constant 0.000000e+00 : f32
    %184 = vector.broadcast %cst_185 : f32 to vector<32x64xf32>
    %185 = arith.cmpf oge, %183, %184 : vector<32x64xf32>
    %cst_186 = arith.constant 0.00999999977 : f32
    %186 = vector.broadcast %cst_186 : f32 to vector<32x64xf32>
    %187 = arith.mulf %186, %183 : vector<32x64xf32>
    %188 = arith.select %185, %183, %187 : vector<32x64xi1>, vector<32x64xf32>
    %c6_187 = arith.constant 6 : index
    %c0_188 = arith.constant 0 : index
    %189 = vector.load %arg7[%c6_187, %c0_188] : memref<8x64xf32, #tpu.memory_space<vmem>>, vector<1x64xf32>
    %cst_189 = arith.constant 0.000000e+00 : f32
    %190 = vector.broadcast %cst_189 : f32 to vector<4x128xf32>
    %c0_190 = arith.constant 0 : index
    %c0_191 = arith.constant 0 : index
    %191 = vector.load %arg10[%c0_190, %c0_191] : memref<72x128xf32, #tpu.memory_space<vmem>>, vector<4x128xf32>
    tpu.vector_store %arg10[%c0_190, %c0_191], %190 {strides = array<i32>} : memref<72x128xf32, #tpu.memory_space<vmem>>, vector<4x128xf32>,
    %c9 = arith.constant 9 : index
    %c0_192 = arith.constant 0 : index
    %192 = vector.load %arg10[%c9, %c0_192] : memref<72x128xf32, #tpu.memory_space<vmem>>, vector<4x128xf32>
    tpu.vector_store %arg10[%c9, %c0_192], %190 {strides = array<i32>} : memref<72x128xf32, #tpu.memory_space<vmem>>, vector<4x128xf32>,
    %193 = vector.extract_strided_slice %188 {offsets = [0, 0], sizes = [6, 64], strides = [1, 1]} : vector<32x64xf32> to vector<6x64xf32>
    %c4_193 = arith.constant 4 : index
    %c0_194 = arith.constant 0 : index
    %194 = vector.load %arg10[%c4_193, %c0_194] : memref<72x128xf32, #tpu.memory_space<vmem>>, vector<6x64xf32>
    tpu.vector_store %arg10[%c4_193, %c0_194], %193 {strides = array<i32>} : memref<72x128xf32, #tpu.memory_space<vmem>>, vector<6x64xf32>,
    %c3_195 = arith.constant 3 : index
    %c64_196 = arith.constant 64 : index
    %195 = vector.load %arg10[%c3_195, %c64_196] : memref<72x128xf32, #tpu.memory_space<vmem>>, vector<6x64xf32>
    tpu.vector_store %arg10[%c3_195, %c64_196], %193 {strides = array<i32>} : memref<72x128xf32, #tpu.memory_space<vmem>>, vector<6x64xf32>,
    %c16_197 = arith.constant 16 : index
    %c0_198 = arith.constant 0 : index
    %196 = vector.load %arg10[%c16_197, %c0_198] : memref<72x128xf32, #tpu.memory_space<vmem>>, vector<4x128xf32>
    tpu.vector_store %arg10[%c16_197, %c0_198], %190 {strides = array<i32>} : memref<72x128xf32, #tpu.memory_space<vmem>>, vector<4x128xf32>,
    %c25 = arith.constant 25 : index
    %c0_199 = arith.constant 0 : index
    %197 = vector.load %arg10[%c25, %c0_199] : memref<72x128xf32, #tpu.memory_space<vmem>>, vector<4x128xf32>
    tpu.vector_store %arg10[%c25, %c0_199], %190 {strides = array<i32>} : memref<72x128xf32, #tpu.memory_space<vmem>>, vector<4x128xf32>,
    %198 = vector.extract_strided_slice %188 {offsets = [16, 0], sizes = [6, 64], strides = [1, 1]} : vector<32x64xf32> to vector<6x64xf32>
    %c20_200 = arith.constant 20 : index
    %c0_201 = arith.constant 0 : index
    %199 = vector.load %arg10[%c20_200, %c0_201] : memref<72x128xf32, #tpu.memory_space<vmem>>, vector<6x64xf32>
    tpu.vector_store %arg10[%c20_200, %c0_201], %198 {strides = array<i32>} : memref<72x128xf32, #tpu.memory_space<vmem>>, vector<6x64xf32>,
    %c19_202 = arith.constant 19 : index
    %c64_203 = arith.constant 64 : index
    %200 = vector.load %arg10[%c19_202, %c64_203] : memref<72x128xf32, #tpu.memory_space<vmem>>, vector<6x64xf32>
    tpu.vector_store %arg10[%c19_202, %c64_203], %198 {strides = array<i32>} : memref<72x128xf32, #tpu.memory_space<vmem>>, vector<6x64xf32>,
    %c0_204 = arith.constant 0 : index
    %c0_205 = arith.constant 0 : index
    %201 = vector.load %arg10[%c0_204, %c0_205] : memref<72x128xf32, #tpu.memory_space<vmem>>, vector<32x128xf32>
    %c2_206 = arith.constant 2 : index
    %c0_207 = arith.constant 0 : index
    %202 = vector.load %arg10[%c2_206, %c0_207] : memref<72x128xf32, #tpu.memory_space<vmem>>, vector<32x128xf32>
    %c4_208 = arith.constant 4 : index
    %c0_209 = arith.constant 0 : index
    %203 = vector.load %arg10[%c4_208, %c0_209] : memref<72x128xf32, #tpu.memory_space<vmem>>, vector<32x128xf32>
    %204 = tpu.concatenate %201, %202, %203 in 1 : vector<32x128xf32>, vector<32x128xf32>, vector<32x128xf32> -> vector<32x384xf32>
    %205 = arith.truncf %204 : vector<32x384xf32> to vector<32x384xbf16>
    %c1_210 = arith.constant 1 : index
    %c0_211 = arith.constant 0 : index
    %c0_212 = arith.constant 0 : index
    %206 = vector.load %arg6[%c1_210, %c0_211, %c0_212] : memref<3x384x64xbf16, #tpu.memory_space<vmem>>, vector<1x384x64xbf16>
    %207 = vector.shape_cast %206 : vector<1x384x64xbf16> to vector<384x64xbf16>
    %cst_213 = arith.constant dense<0.000000e+00> : vector<32x64xf32>
    %208 = tpu.matmul %205, %207, %cst_213 {dimension_numbers = #tpu.dot_dimension_numbers<[1], [0], [0], [1], [0, 0, 1, 1], [], []>} : vector<32x384xbf16>, vector<384x64xbf16>, vector<32x64xf32> -> vector<32x64xf32>
    %209 = vector.broadcast %189 : vector<1x64xf32> to vector<32x64xf32>
    %210 = arith.addf %208, %209 : vector<32x64xf32>
    %cst_214 = arith.constant 0.000000e+00 : f32
    %211 = vector.broadcast %cst_214 : f32 to vector<32x64xf32>
    %212 = arith.cmpf oge, %210, %211 : vector<32x64xf32>
    %cst_215 = arith.constant 0.00999999977 : f32
    %213 = vector.broadcast %cst_215 : f32 to vector<32x64xf32>
    %214 = arith.mulf %213, %210 : vector<32x64xf32>
    %215 = arith.select %212, %210, %214 : vector<32x64xi1>, vector<32x64xf32>
    %c7_216 = arith.constant 7 : index
    %c0_217 = arith.constant 0 : index
    %216 = vector.load %arg7[%c7_216, %c0_217] : memref<8x64xf32, #tpu.memory_space<vmem>>, vector<1x64xf32>
    %cst_218 = arith.constant 0.000000e+00 : f32
    %217 = vector.broadcast %cst_218 : f32 to vector<4x128xf32>
    %c0_219 = arith.constant 0 : index
    %c0_220 = arith.constant 0 : index
    %218 = vector.load %arg10[%c0_219, %c0_220] : memref<72x128xf32, #tpu.memory_space<vmem>>, vector<4x128xf32>
    tpu.vector_store %arg10[%c0_219, %c0_220], %217 {strides = array<i32>} : memref<72x128xf32, #tpu.memory_space<vmem>>, vector<4x128xf32>,
    %c12 = arith.constant 12 : index
    %c0_221 = arith.constant 0 : index
    %219 = vector.load %arg10[%c12, %c0_221] : memref<72x128xf32, #tpu.memory_space<vmem>>, vector<4x128xf32>
    tpu.vector_store %arg10[%c12, %c0_221], %217 {strides = array<i32>} : memref<72x128xf32, #tpu.memory_space<vmem>>, vector<4x128xf32>,
    %220 = vector.extract_strided_slice %215 {offsets = [0, 0], sizes = [9, 64], strides = [1, 1]} : vector<32x64xf32> to vector<9x64xf32>
    %c4_222 = arith.constant 4 : index
    %c0_223 = arith.constant 0 : index
    %221 = vector.load %arg10[%c4_222, %c0_223] : memref<72x128xf32, #tpu.memory_space<vmem>>, vector<9x64xf32>
    tpu.vector_store %arg10[%c4_222, %c0_223], %220 {strides = array<i32>} : memref<72x128xf32, #tpu.memory_space<vmem>>, vector<9x64xf32>,
    %c3_224 = arith.constant 3 : index
    %c64_225 = arith.constant 64 : index
    %222 = vector.load %arg10[%c3_224, %c64_225] : memref<72x128xf32, #tpu.memory_space<vmem>>, vector<9x64xf32>
    tpu.vector_store %arg10[%c3_224, %c64_225], %220 {strides = array<i32>} : memref<72x128xf32, #tpu.memory_space<vmem>>, vector<9x64xf32>,
    %c24_226 = arith.constant 24 : index
    %c0_227 = arith.constant 0 : index
    %223 = vector.load %arg10[%c24_226, %c0_227] : memref<72x128xf32, #tpu.memory_space<vmem>>, vector<4x128xf32>
    tpu.vector_store %arg10[%c24_226, %c0_227], %217 {strides = array<i32>} : memref<72x128xf32, #tpu.memory_space<vmem>>, vector<4x128xf32>,
    %c36_228 = arith.constant 36 : index
    %c0_229 = arith.constant 0 : index
    %224 = vector.load %arg10[%c36_228, %c0_229] : memref<72x128xf32, #tpu.memory_space<vmem>>, vector<4x128xf32>
    tpu.vector_store %arg10[%c36_228, %c0_229], %217 {strides = array<i32>} : memref<72x128xf32, #tpu.memory_space<vmem>>, vector<4x128xf32>,
    %225 = vector.extract_strided_slice %215 {offsets = [16, 0], sizes = [9, 64], strides = [1, 1]} : vector<32x64xf32> to vector<9x64xf32>
    %c28_230 = arith.constant 28 : index
    %c0_231 = arith.constant 0 : index
    %226 = vector.load %arg10[%c28_230, %c0_231] : memref<72x128xf32, #tpu.memory_space<vmem>>, vector<9x64xf32>
    tpu.vector_store %arg10[%c28_230, %c0_231], %225 {strides = array<i32>} : memref<72x128xf32, #tpu.memory_space<vmem>>, vector<9x64xf32>,
    %c27_232 = arith.constant 27 : index
    %c64_233 = arith.constant 64 : index
    %227 = vector.load %arg10[%c27_232, %c64_233] : memref<72x128xf32, #tpu.memory_space<vmem>>, vector<9x64xf32>
    tpu.vector_store %arg10[%c27_232, %c64_233], %225 {strides = array<i32>} : memref<72x128xf32, #tpu.memory_space<vmem>>, vector<9x64xf32>,
    %c0_234 = arith.constant 0 : index
    %c0_235 = arith.constant 0 : index
    %228 = vector.load %arg10[%c0_234, %c0_235] : memref<72x128xf32, #tpu.memory_space<vmem>>, vector<48x128xf32>
    %c2_236 = arith.constant 2 : index
    %c0_237 = arith.constant 0 : index
    %229 = vector.load %arg10[%c2_236, %c0_237] : memref<72x128xf32, #tpu.memory_space<vmem>>, vector<48x128xf32>
    %c4_238 = arith.constant 4 : index
    %c0_239 = arith.constant 0 : index
    %230 = vector.load %arg10[%c4_238, %c0_239] : memref<72x128xf32, #tpu.memory_space<vmem>>, vector<48x128xf32>
    %231 = tpu.concatenate %228, %229, %230 in 1 : vector<48x128xf32>, vector<48x128xf32>, vector<48x128xf32> -> vector<48x384xf32>
    %232 = arith.truncf %231 : vector<48x384xf32> to vector<48x384xbf16>
    %c2_240 = arith.constant 2 : index
    %c0_241 = arith.constant 0 : index
    %c0_242 = arith.constant 0 : index
    %233 = vector.load %arg6[%c2_240, %c0_241, %c0_242] : memref<3x384x64xbf16, #tpu.memory_space<vmem>>, vector<1x384x64xbf16>
    %234 = vector.shape_cast %233 : vector<1x384x64xbf16> to vector<384x64xbf16>
    %cst_243 = arith.constant dense<0.000000e+00> : vector<48x64xf32>
    %235 = tpu.matmul %232, %234, %cst_243 {dimension_numbers = #tpu.dot_dimension_numbers<[1], [0], [0], [1], [0, 0, 1, 1], [], []>} : vector<48x384xbf16>, vector<384x64xbf16>, vector<48x64xf32> -> vector<48x64xf32>
    %236 = vector.broadcast %216 : vector<1x64xf32> to vector<48x64xf32>
    %237 = arith.addf %235, %236 : vector<48x64xf32>
    %cst_244 = arith.constant 0.000000e+00 : f32
    %238 = vector.broadcast %cst_244 : f32 to vector<48x64xf32>
    %239 = arith.cmpf oge, %237, %238 : vector<48x64xf32>
    %cst_245 = arith.constant 0.00999999977 : f32
    %240 = vector.broadcast %cst_245 : f32 to vector<48x64xf32>
    %241 = arith.mulf %240, %237 : vector<48x64xf32>
    %242 = arith.select %239, %237, %241 : vector<48x64xi1>, vector<48x64xf32>
    %cst_246 = arith.constant 0xFF800000 : f32
    %243 = vector.broadcast %cst_246 : f32 to vector<1x64xf32>
    %cst_247 = arith.constant 0xFF800000 : f32
    %244 = vector.broadcast %cst_247 : f32 to vector<3x64xf32>
    %c0_248 = arith.constant 0 : index
    %c0_249 = arith.constant 0 : index
    %245 = vector.load %arg9[%c0_248, %c0_249] : memref<264x64xf32, #tpu.memory_space<vmem>>, vector<1x64xf32>
    tpu.vector_store %arg9[%c0_248, %c0_249], %243 {strides = array<i32>} : memref<264x64xf32, #tpu.memory_space<vmem>>, vector<1x64xf32>,
    %c13 = arith.constant 13 : index
    %c0_250 = arith.constant 0 : index
    %246 = vector.load %arg9[%c13, %c0_250] : memref<264x64xf32, #tpu.memory_space<vmem>>, vector<3x64xf32>
    tpu.vector_store %arg9[%c13, %c0_250], %244 {strides = array<i32>} : memref<264x64xf32, #tpu.memory_space<vmem>>, vector<3x64xf32>,
    %247 = vector.extract_strided_slice %242 {offsets = [0, 0], sizes = [12, 64], strides = [1, 1]} : vector<48x64xf32> to vector<12x64xf32>
    %c1_251 = arith.constant 1 : index
    %c0_252 = arith.constant 0 : index
    %248 = vector.load %arg9[%c1_251, %c0_252] : memref<264x64xf32, #tpu.memory_space<vmem>>, vector<12x64xf32>
    tpu.vector_store %arg9[%c1_251, %c0_252], %247 {strides = array<i32>} : memref<264x64xf32, #tpu.memory_space<vmem>>, vector<12x64xf32>,
    %c16_253 = arith.constant 16 : index
    %c0_254 = arith.constant 0 : index
    %249 = vector.load %arg9[%c16_253, %c0_254] : memref<264x64xf32, #tpu.memory_space<vmem>>, vector<1x64xf32>
    tpu.vector_store %arg9[%c16_253, %c0_254], %243 {strides = array<i32>} : memref<264x64xf32, #tpu.memory_space<vmem>>, vector<1x64xf32>,
    %c29 = arith.constant 29 : index
    %c0_255 = arith.constant 0 : index
    %250 = vector.load %arg9[%c29, %c0_255] : memref<264x64xf32, #tpu.memory_space<vmem>>, vector<3x64xf32>
    tpu.vector_store %arg9[%c29, %c0_255], %244 {strides = array<i32>} : memref<264x64xf32, #tpu.memory_space<vmem>>, vector<3x64xf32>,
    %251 = vector.extract_strided_slice %242 {offsets = [24, 0], sizes = [12, 64], strides = [1, 1]} : vector<48x64xf32> to vector<12x64xf32>
    %c17 = arith.constant 17 : index
    %c0_256 = arith.constant 0 : index
    %252 = vector.load %arg9[%c17, %c0_256] : memref<264x64xf32, #tpu.memory_space<vmem>>, vector<12x64xf32>
    tpu.vector_store %arg9[%c17, %c0_256], %251 {strides = array<i32>} : memref<264x64xf32, #tpu.memory_space<vmem>>, vector<12x64xf32>,
    %c0_257 = arith.constant 0 : index
    %c0_258 = arith.constant 0 : index
    %253 = tpu.strided_load %arg9[%c0_257, %c0_258] {strides = array<i32: 2, 1>} : memref<264x64xf32, #tpu.memory_space<vmem>>, vector<16x64xf32>
    %c1_259 = arith.constant 1 : index
    %c0_260 = arith.constant 0 : index
    %254 = tpu.strided_load %arg9[%c1_259, %c0_260] {strides = array<i32: 2, 1>} : memref<264x64xf32, #tpu.memory_space<vmem>>, vector<16x64xf32>
    %255 = arith.maximumf %253, %254 : vector<16x64xf32>
    %cst_261 = arith.constant 0.000000e+00 : f32
    %256 = vector.broadcast %cst_261 : f32 to vector<4x64xf32>
    %257 = vector.extract_strided_slice %133 {offsets = [0, 0], sizes = [5, 64], strides = [1, 1]} : vector<12x64xf32> to vector<5x64xf32>
    %c0_262 = arith.constant 0 : index
    %c0_263 = arith.constant 0 : index
    %c0_264 = arith.constant 0 : index
    %258 = vector.load %arg8[%c0_262, %c0_263, %c0_264] : memref<2x16x64xf32, #tpu.memory_space<vmem>>, vector<1x5x64xf32>
    %259 = vector.shape_cast %258 : vector<1x5x64xf32> to vector<5x64xf32>
    %260 = vector.shape_cast %257 : vector<5x64xf32> to vector<1x5x64xf32>
    tpu.vector_store %arg8[%c0_262, %c0_263, %c0_264], %260 {strides = array<i32>} : memref<2x16x64xf32, #tpu.memory_space<vmem>>, vector<1x5x64xf32>,
    %261 = vector.extract_strided_slice %255 {offsets = [0, 0], sizes = [7, 64], strides = [1, 1]} : vector<16x64xf32> to vector<7x64xf32>
    %c0_265 = arith.constant 0 : index
    %c5_266 = arith.constant 5 : index
    %c0_267 = arith.constant 0 : index
    %262 = vector.load %arg8[%c0_265, %c5_266, %c0_267] : memref<2x16x64xf32, #tpu.memory_space<vmem>>, vector<1x7x64xf32>
    %263 = vector.shape_cast %262 : vector<1x7x64xf32> to vector<7x64xf32>
    %264 = vector.shape_cast %261 : vector<7x64xf32> to vector<1x7x64xf32>
    tpu.vector_store %arg8[%c0_265, %c5_266, %c0_267], %264 {strides = array<i32>} : memref<2x16x64xf32, #tpu.memory_space<vmem>>, vector<1x7x64xf32>,
    %c0_268 = arith.constant 0 : index
    %c12_269 = arith.constant 12 : index
    %c0_270 = arith.constant 0 : index
    %265 = vector.load %arg8[%c0_268, %c12_269, %c0_270] : memref<2x16x64xf32, #tpu.memory_space<vmem>>, vector<1x4x64xf32>
    %266 = vector.shape_cast %265 : vector<1x4x64xf32> to vector<4x64xf32>
    %267 = vector.shape_cast %256 : vector<4x64xf32> to vector<1x4x64xf32>
    tpu.vector_store %arg8[%c0_268, %c12_269, %c0_270], %267 {strides = array<i32>} : memref<2x16x64xf32, #tpu.memory_space<vmem>>, vector<1x4x64xf32>,
    %268 = vector.extract_strided_slice %133 {offsets = [6, 0], sizes = [5, 64], strides = [1, 1]} : vector<12x64xf32> to vector<5x64xf32>
    %c1_271 = arith.constant 1 : index
    %c0_272 = arith.constant 0 : index
    %c0_273 = arith.constant 0 : index
    %269 = vector.load %arg8[%c1_271, %c0_272, %c0_273] : memref<2x16x64xf32, #tpu.memory_space<vmem>>, vector<1x5x64xf32>
    %270 = vector.shape_cast %269 : vector<1x5x64xf32> to vector<5x64xf32>
    %271 = vector.shape_cast %268 : vector<5x64xf32> to vector<1x5x64xf32>
    tpu.vector_store %arg8[%c1_271, %c0_272, %c0_273], %271 {strides = array<i32>} : memref<2x16x64xf32, #tpu.memory_space<vmem>>, vector<1x5x64xf32>,
    %272 = vector.extract_strided_slice %255 {offsets = [8, 0], sizes = [7, 64], strides = [1, 1]} : vector<16x64xf32> to vector<7x64xf32>
    %c1_274 = arith.constant 1 : index
    %c5_275 = arith.constant 5 : index
    %c0_276 = arith.constant 0 : index
    %273 = vector.load %arg8[%c1_274, %c5_275, %c0_276] : memref<2x16x64xf32, #tpu.memory_space<vmem>>, vector<1x7x64xf32>
    %274 = vector.shape_cast %273 : vector<1x7x64xf32> to vector<7x64xf32>
    %275 = vector.shape_cast %272 : vector<7x64xf32> to vector<1x7x64xf32>
    tpu.vector_store %arg8[%c1_274, %c5_275, %c0_276], %275 {strides = array<i32>} : memref<2x16x64xf32, #tpu.memory_space<vmem>>, vector<1x7x64xf32>,
    %c1_277 = arith.constant 1 : index
    %c12_278 = arith.constant 12 : index
    %c0_279 = arith.constant 0 : index
    %276 = vector.load %arg8[%c1_277, %c12_278, %c0_279] : memref<2x16x64xf32, #tpu.memory_space<vmem>>, vector<1x4x64xf32>
    %277 = vector.shape_cast %276 : vector<1x4x64xf32> to vector<4x64xf32>
    %278 = vector.shape_cast %256 : vector<4x64xf32> to vector<1x4x64xf32>
    tpu.vector_store %arg8[%c1_277, %c12_278, %c0_279], %278 {strides = array<i32>} : memref<2x16x64xf32, #tpu.memory_space<vmem>>, vector<1x4x64xf32>,
    return
  }
  func.func @transform_0(%arg0: i32) -> (i32, i32) {
    %c0_i32 = arith.constant 0 : i32
    %c0_i32_0 = arith.constant 0 : i32
    return %arg0, %c0_i32 : i32, i32
  }
  func.func @transform_1(%arg0: i32) -> (i32, i32) {
    %c0_i32 = arith.constant 0 : i32
    %c0_i32_0 = arith.constant 0 : i32
    return %arg0, %c0_i32 : i32, i32
  }
  func.func @transform_2(%arg0: i32) -> (i32, i32) {
    %c0_i32 = arith.constant 0 : i32
    %c0_i32_0 = arith.constant 0 : i32
    %c0_i32_1 = arith.constant 0 : i32
    return %c0_i32, %c0_i32_0 : i32, i32
  }
  func.func @transform_3(%arg0: i32) -> (i32, i32, i32) {
    %c0_i32 = arith.constant 0 : i32
    %c0_i32_0 = arith.constant 0 : i32
    %c0_i32_1 = arith.constant 0 : i32
    %c0_i32_2 = arith.constant 0 : i32
    return %c0_i32, %c0_i32_0, %c0_i32_1 : i32, i32, i32
  }
  func.func @transform_4(%arg0: i32) -> (i32, i32) {
    %c0_i32 = arith.constant 0 : i32
    %c0_i32_0 = arith.constant 0 : i32
    %c0_i32_1 = arith.constant 0 : i32
    return %c0_i32, %c0_i32_0 : i32, i32
  }
  func.func @transform_5(%arg0: i32) -> (i32, i32, i32) {
    %c0_i32 = arith.constant 0 : i32
    %c0_i32_0 = arith.constant 0 : i32
    %c0_i32_1 = arith.constant 0 : i32
    %c0_i32_2 = arith.constant 0 : i32
    return %c0_i32, %c0_i32_0, %c0_i32_1 : i32, i32, i32
  }
  func.func @transform_6(%arg0: i32) -> (i32, i32) {
    %c0_i32 = arith.constant 0 : i32
    %c0_i32_0 = arith.constant 0 : i32
    %c0_i32_1 = arith.constant 0 : i32
    return %c0_i32, %c0_i32_0 : i32, i32
  }
  func.func @transform_7(%arg0: i32) -> (i32, i32, i32) {
    %c0_i32 = arith.constant 0 : i32
    %c0_i32_0 = arith.constant 0 : i32
    %c0_i32_1 = arith.constant 0 : i32
    return %arg0, %c0_i32, %c0_i32_0 : i32, i32, i32
  }
}

</mosaic_0001>

<bundles_post_ra>
// kernel: temporal_feature_multimodel.1
= control target key start
LH: loop header
LB: loop body
LE: loop exit
PB: predicated region body
PF: predicated region fallthrough
CT: control target
= control target key end

     0   :  { %vm609_vm0 = vcmask 519168   ;;  %v6731_v44 = vmov -inf   ;;  %v6732_v49 = vmov 0.0   ;;  %vm611_vm2 = vcmask 523264   ;;  %s6733_s30 = smov 64   ;;  %s8281_s2 = inlined_call_operand.vmem [shape: bf16[256,64], index: 2, kind: input, shape index: {}]   ;;  %s8282_s0 = inlined_call_operand.vmem [shape: bf16[256,256], index: 0, kind: input, shape index: {}]   ;;  %s8283_s6 = inlined_call_operand.vmem [shape: f32[8,64], index: 6, kind: input, shape index: {}]   ;;  %s8284_s3 = inlined_call_operand.vmem [shape: bf16[3,512,64], index: 3, kind: input, shape index: {}]   ;;  %s8285_s4 = inlined_call_operand.vmem [shape: bf16[2048,64], index: 4, kind: input, shape index: {}]   ;;  %s8286_s1 = inlined_call_operand.vmem [shape: bf16[32,2048], index: 1, kind: input, shape index: {}]   ;;  %s8287_s7 = inlined_call_operand.vmem [shape: f32[2,16,64], index: 7, kind: output, shape index: {}]   ;;  %s8288_s5 = inlined_call_operand.vmem [shape: bf16[3,384,64], index: 5, kind: input, shape index: {}]  }
   0x1   :  { %v6368_v0 = vld [vmem:[%s8281_s2 + $0x40] sm:$0xff]   ;;  %v6370_v2 = vld [vmem:[%s8281_s2 + $0x48] sm:$0xff]   ;;  %v6372_v4 = vld [vmem:[%s8281_s2 + $0x50] sm:$0xff]   ;;  %610 = vst.msk [vmem:[#allocation2] sm:$0xf] %vm609_vm0, %v6731_v44  ;;  %vm1759_vm7 = vcmask 517120  }
   0x2   :  { %v6369_v1 = vld [vmem:[%s8281_s2] sm:$0xff]   ;;  %5611 = vmatprep.subr.bf16.mxu0 %v6368_v0  ;;  %v6371_v3 = vld [vmem:[%s8281_s2 + $0x8] sm:$0xff]   ;;  %v6373_v5 = vld [vmem:[%s8281_s2 + $0x10] sm:$0xff]   ;;  %628 = vst.msk [vmem:[#allocation2 + $0x80] sm:$0xf] %vm609_vm0, %v6731_v44 }
   0x3   :  { %5612 = vmatpush3.bf16.msra.mxu0 %v6369_v1  ;;  %v6374_v6 = vld [vmem:[%s8281_s2 + $0x58] sm:$0xff]   ;;  %v6376_v8 = vld [vmem:[%s8281_s2 + $0x60] sm:$0xff]   ;;  %v6378_v10 = vld [vmem:[%s8281_s2 + $0x68] sm:$0xff]   ;;  %802 = vst [vmem:[#allocation3 + $0x13] sm:$0xf] %v6732_v49 }
   0x4   :  { %5613 = vmatprep.subr.bf16.mxu0 %v6370_v2  ;;  %v6375_v7 = vld [vmem:[%s8281_s2 + $0x18] sm:$0xff]   ;;  %v6377_v9 = vld [vmem:[%s8281_s2 + $0x20] sm:$0xff]   ;;  %v6379_v12 = vld [vmem:[%s8281_s2 + $0x28] sm:$0xff]   ;;  %801 = vst [vmem:[#allocation3] sm:$0xf] %v6732_v49 }
   0x5   :  { %v6386_v11 = vld [vmem:[%s8282_s0 + $0x4] ss:$8 sps:$4 sm:$0xff]   ;;  %v6380_v13 = vld [vmem:[%s8281_s2 + $0x70] sm:$0xff]   ;;  %v6382_v15 = vld [vmem:[%s8281_s2 + $0x78] sm:$0xff]   ;;  %816 = vst [vmem:[#allocation3 + $0x18] sm:$0xf] %v6732_v49 }
   0x6   :  { %384 = vmatprep.mubr.bf16.mxu0 %v6386_v11  ;;  %v6381_v14 = vld [vmem:[%s8281_s2 + $0x30] sm:$0xff]   ;;  %v6383_v16 = vld [vmem:[%s8281_s2 + $0x38] sm:$0xff]   ;;  %v6384_v17 = vld [vmem:[%s8282_s0] ss:$8 sps:$4 sm:$0xff]   ;;  %817 = vst [vmem:[#allocation3 + $0x2b] sm:$0xf] %v6732_v49 }
   0x7   :  { %5614 = vmatpush3.bf16.msra.mxu0 %v6371_v3  ;;  %v6387_v18 = vld [vmem:[%s8282_s0 + $0x14] ss:$8 sps:$4 sm:$0xff]   ;;  %v6389_v19 = vld [vmem:[%s8282_s0 + $0x10] ss:$8 sps:$4 sm:$0xff]   ;;  %v6390_v20 = vld [vmem:[%s8282_s0 + $0x24] ss:$8 sps:$4 sm:$0xff]  }
   0x8   :  { %5615 = vmatprep.subr.bf16.mxu0 %v6372_v4  ;;  %v6392_v21 = vld [vmem:[%s8282_s0 + $0x20] ss:$8 sps:$4 sm:$0xff]   ;;  %v6393_v22 = vld [vmem:[%s8282_s0 + $0x34] ss:$8 sps:$4 sm:$0xff]   ;;  %v6395_v23 = vld [vmem:[%s8282_s0 + $0x30] ss:$8 sps:$4 sm:$0xff]  }
   0x9   :  { %v6396_v24 = vld [vmem:[%s8282_s0 + $0x44] ss:$8 sps:$4 sm:$0xff]   ;;  %v6398_v25 = vld [vmem:[%s8282_s0 + $0x40] ss:$8 sps:$4 sm:$0xff]   ;;  %v6399_v26 = vld [vmem:[%s8282_s0 + $0x54] ss:$8 sps:$4 sm:$0xff]  }
   0xa   :  { %v6401_v27 = vld [vmem:[%s8282_s0 + $0x50] ss:$8 sps:$4 sm:$0xff]   ;;  %v6402_v28 = vld [vmem:[%s8282_s0 + $0x64] ss:$8 sps:$4 sm:$0xff]   ;;  %v6404_v29 = vld [vmem:[%s8282_s0 + $0x60] ss:$8 sps:$4 sm:$0xff]  }
   0xb   :  { %5616 = vmatpush3.bf16.msra.mxu0 %v6373_v5  ;;  %v6405_v30 = vld [vmem:[%s8282_s0 + $0x74] ss:$8 sps:$4 sm:$0xff]   ;;  %v6407_v31 = vld [vmem:[%s8282_s0 + $0x70] ss:$8 sps:$4 sm:$0xff]   ;;  %v6408_v32 = vld [vmem:[%s8282_s0 + $0x84] ss:$8 sps:$4 sm:$0xff]  }
   0xc   :  { %5617 = vmatprep.subr.bf16.mxu0 %v6374_v6  ;;  %v6410_v33 = vld [vmem:[%s8282_s0 + $0x80] ss:$8 sps:$4 sm:$0xff]   ;;  %v6411_v34 = vld [vmem:[%s8282_s0 + $0x94] ss:$8 sps:$4 sm:$0xff]   ;;  %v6413_v35 = vld [vmem:[%s8282_s0 + $0x90] ss:$8 sps:$4 sm:$0xff]  }
   0xd   :  { %v6414_v36 = vld [vmem:[%s8282_s0 + $0xa4] ss:$8 sps:$4 sm:$0xff]   ;;  %v6416_v37 = vld [vmem:[%s8282_s0 + $0xa0] ss:$8 sps:$4 sm:$0xff]   ;;  %v6417_v38 = vld [vmem:[%s8282_s0 + $0xb4] ss:$8 sps:$4 sm:$0xff]  }
   0xe   :  { %v6419_v39 = vld [vmem:[%s8282_s0 + $0xb0] ss:$8 sps:$4 sm:$0xff]   ;;  %v6420_v40 = vld [vmem:[%s8282_s0 + $0xc4] ss:$8 sps:$4 sm:$0xff]   ;;  %v6422_v41 = vld [vmem:[%s8282_s0 + $0xc0] ss:$8 sps:$4 sm:$0xff]  }
   0xf   :  { %5618 = vmatpush3.bf16.msra.mxu0 %v6375_v7  ;;  %v6423_v42 = vld [vmem:[%s8282_s0 + $0xd4] ss:$8 sps:$4 sm:$0xff]   ;;  %v6425_v43 = vld [vmem:[%s8282_s0 + $0xd0] ss:$8 sps:$4 sm:$0xff]   ;;  %v6426_v45 = vld [vmem:[%s8282_s0 + $0xe4] ss:$8 sps:$4 sm:$0xff]  }
  0x10   :  { %5619 = vmatprep.subr.bf16.mxu0 %v6376_v8  ;;  %v6428_v46 = vld [vmem:[%s8282_s0 + $0xe0] ss:$8 sps:$4 sm:$0xff]   ;;  %v6429_v47 = vld [vmem:[%s8282_s0 + $0xf4] ss:$8 sps:$4 sm:$0xff]   ;;  %v6431_v48 = vld [vmem:[%s8282_s0 + $0xf0] ss:$8 sps:$4 sm:$0xff]  }
  0x11   :  { %v6930_v51 = vld [vmem:[%s8283_s6] ss:$0 sm:$0xff]  ;;  %4988 = vst.msk [vmem:[%s8287_s7 + $0xc] sm:$0xf] %vm609_vm0, %v6732_v49  ;;  %5610 = vst.msk [vmem:[%s8287_s7 + $0x1c] sm:$0xf] %vm609_vm0, %v6732_v49 }
  0x13   :  { %5620 = vmatpush3.bf16.msra.mxu0 %v6377_v9 }
  0x14   :  { %5621 = vmatprep.subr.bf16.mxu0 %v6378_v10 }
  0x17   :  { %5622 = vmatpush3.bf16.msra.mxu0 %v6379_v12 }
  0x18   :  { %5623 = vmatprep.subr.bf16.mxu0 %v6380_v13 }
  0x1b   :  { %5624 = vmatpush3.bf16.msra.mxu0 %v6381_v14 }
  0x1c   :  { %5625 = vmatprep.subr.bf16.mxu0 %v6382_v15 }
  0x1f   :  { %5626 = vmatpush3.bf16.msra.mxu0 %v6383_v16 }
  0x22   :  { %385 = vmatmul.mubr.bf16.vlgmr.msra.gmra.mrb[0].mxu0 %v6384_v17 }
  0x23   :  { %392 = vmatprep.mubr.bf16.mxu0 %v6387_v18 }
  0x2a   :  { %393 = vmatmul.mubr.bf16.gmra.mrb[4].mxu0 %v6389_v19 }
  0x2b   :  { %400 = vmatprep.mubr.bf16.mxu0 %v6390_v20 }
  0x32   :  { %401 = vmatmul.mubr.bf16.gmra.mrb[8].mxu0 %v6392_v21 }
  0x33   :  { %408 = vmatprep.mubr.bf16.mxu0 %v6393_v22 }
  0x3a   :  { %409 = vmatmul.mubr.bf16.gmra.mrb[12].mxu0 %v6395_v23 }
  0x3b   :  { %416 = vmatprep.mubr.bf16.mxu0 %v6396_v24 }
  0x42   :  { %417 = vmatmul.mubr.bf16.gmra.mrb[16].mxu0 %v6398_v25 }
  0x43   :  { %424 = vmatprep.mubr.bf16.mxu0 %v6399_v26 }
  0x4a   :  { %425 = vmatmul.mubr.bf16.gmra.mrb[20].mxu0 %v6401_v27 }
  0x4b   :  { %432 = vmatprep.mubr.bf16.mxu0 %v6402_v28 }
  0x52   :  { %433 = vmatmul.mubr.bf16.gmra.mrb[24].mxu0 %v6404_v29 }
  0x53   :  { %440 = vmatprep.mubr.bf16.mxu0 %v6405_v30 }
  0x5a   :  { %441 = vmatmul.mubr.bf16.gmra.mrb[28].mxu0 %v6407_v31 }
  0x5b   :  { %448 = vmatprep.mubr.bf16.mxu0 %v6408_v32 }
  0x62   :  { %449 = vmatmul.mubr.bf16.gmra.mrb[32].mxu0 %v6410_v33 }
  0x63   :  { %456 = vmatprep.mubr.bf16.mxu0 %v6411_v34 }
  0x6a   :  { %457 = vmatmul.mubr.bf16.gmra.mrb[36].mxu0 %v6413_v35 }
  0x6b   :  { %464 = vmatprep.mubr.bf16.mxu0 %v6414_v36 }
  0x72   :  { %465 = vmatmul.mubr.bf16.gmra.mrb[40].mxu0 %v6416_v37 }
  0x73   :  { %472 = vmatprep.mubr.bf16.mxu0 %v6417_v38 }
  0x7a   :  { %473 = vmatmul.mubr.bf16.gmra.mrb[44].mxu0 %v6419_v39 }
  0x7b   :  { %480 = vmatprep.mubr.bf16.mxu0 %v6420_v40 }
  0x82   :  { %481 = vmatmul.mubr.bf16.gmra.mrb[48].mxu0 %v6422_v41 }
  0x83   :  { %488 = vmatprep.mubr.bf16.mxu0 %v6423_v42 }
  0x8a   :  { %489 = vmatmul.mubr.bf16.gmra.mrb[52].mxu0 %v6425_v43 }
  0x8b   :  { %496 = vmatprep.mubr.bf16.mxu0 %v6426_v45 }
  0x92   :  { %497 = vmatmul.mubr.bf16.gmra.mrb[56].mxu0 %v6428_v46 }
  0x93   :  { %504 = vmatprep.mubr.bf16.mxu0 %v6429_v47 }
  0x9a   :  { %505 = vmatmul.mubr.bf16.gmra.mrb[60].mxu0 %v6431_v48 }
  0xf5   :  { %v5627_v50 = vpop.f32.mrb[0].mxu0 }
  0xf6   :  { %v5628_v52 = vpop.f32.mrb[1].mxu0 }
  0xf7   :  { %v5629_v53 = vadd.f32 %v5628_v52, %v5627_v50  ;;  %v5630_v54 = vpop.f32.mrb[2].mxu0 }
  0xf8   :  { %v5631_v55 = vpop.f32.mrb[3].mxu0 }
  0xf9   :  { %v387_v56 = vadd.f32 %v5629_v53, %v6930_v51  ;;  %v5632_v57 = vadd.f32 %v5631_v55, %v5630_v54 }
  0xfb   :  { %vm513_vm1 = vcmp.ge.f32.partialorder %v387_v56, 0.0  ;;  %v545_v58 = vmul.f32 0.01, %v387_v56  ;;  %v390_v59 = vadd.f32 %v5632_v57, %v6930_v51 }
  0xfd   :  { %v577_v60 = vsel %vm513_vm1, %v387_v56, %v545_v58  ;;  %vm514_vm3 = vcmp.ge.f32.partialorder %v390_v59, 0.0  ;;  %v546_v61 = vmul.f32 0.01, %v390_v59  ;;  %v5633_v62 = vpop.f32.mrb[4].mxu0 }
  0xfe   :  { %612 = vst.msk [vmem:[#allocation2 + $0x4] sm:$0xff] %vm611_vm2, %v577_v60  ;;  %v5634_v63 = vpop.f32.mrb[5].mxu0 }
  0xff   :  { %v578_v0 = vsel %vm514_vm3, %v390_v59, %v546_v61  ;;  %v5635_v1 = vadd.f32 %v5634_v63, %v5633_v62  ;;  %v5636_v2 = vpop.f32.mrb[6].mxu0 }
 0x100   :  { %613 = vst.msk [vmem:[#allocation2 + $0xc] sm:$0xff] %vm611_vm2, %v578_v0  ;;  %v5637_v3 = vpop.f32.mrb[7].mxu0 }
 0x101   :  { %v395_v4 = vadd.f32 %v5635_v1, %v6930_v51  ;;  %v5638_v5 = vadd.f32 %v5637_v3, %v5636_v2 }
 0x103   :  { %vm515_vm4 = vcmp.ge.f32.partialorder %v395_v4, 0.0  ;;  %v547_v6 = vmul.f32 0.01, %v395_v4  ;;  %v398_v7 = vadd.f32 %v5638_v5, %v6930_v51 }
 0x105   :  { %v579_v8 = vsel %vm515_vm4, %v395_v4, %v547_v6  ;;  %vm516_vm5 = vcmp.ge.f32.partialorder %v398_v7, 0.0  ;;  %v548_v9 = vmul.f32 0.01, %v398_v7  ;;  %v5639_v10 = vpop.f32.mrb[8].mxu0 }
 0x106   :  { %614 = vst.msk [vmem:[#allocation2 + $0x14] sm:$0xff] %vm611_vm2, %v579_v8  ;;  %v5640_v11 = vpop.f32.mrb[9].mxu0 }
 0x107   :  { %v580_v12 = vsel %vm516_vm5, %v398_v7, %v548_v9  ;;  %v5641_v13 = vadd.f32 %v5640_v11, %v5639_v10  ;;  %v5642_v14 = vpop.f32.mrb[10].mxu0 }
 0x108   :  { %615 = vst.msk [vmem:[#allocation2 + $0x1c] sm:$0xff] %vm611_vm2, %v580_v12  ;;  %v5643_v15 = vpop.f32.mrb[11].mxu0 }
 0x109   :  { %v403_v16 = vadd.f32 %v5641_v13, %v6930_v51  ;;  %v5644_v17 = vadd.f32 %v5643_v15, %v5642_v14 }
 0x10b   :  { %vm517_vm6 = vcmp.ge.f32.partialorder %v403_v16, 0.0  ;;  %v549_v18 = vmul.f32 0.01, %v403_v16  ;;  %v406_v19 = vadd.f32 %v5644_v17, %v6930_v51 }
 0x10d   :  { %v6942_v20 = vld [vmem:[#allocation2] ss:$8 sm:$0xf]  ;;  %v6944_v21 = vld [vmem:[#allocation2 + $0x1] ss:$8 sm:$0xf]  ;;  %v581_v22 = vsel %vm517_vm6, %v403_v16, %v549_v18 }
 0x10e   :  { %2250 = vst.msk [vmem:[#allocation2] sm:$0x3] %vm1759_vm7, %v6731_v44  ;;  %2255 = vst.msk [vmem:[#allocation2 + $0x18] sm:$0x3] %vm1759_vm7, %v6731_v44  ;;  %vm518_vm8 = vcmp.ge.f32.partialorder %v406_v19, 0.0  ;;  %v5645_v29 = vpop.f32.mrb[12].mxu0 }
 0x10f   :  { %616 = vst.msk [vmem:[#allocation2 + $0x24] sm:$0xff] %vm611_vm2, %v581_v22  ;;  %v550_v23 = vmul.f32 0.01, %v406_v19  ;;  %v6951_v24 = vld [vmem:[#allocation2 + $0x4] ss:$8 sm:$0xf] }
 0x110   :  { %v6953_v25 = vld [vmem:[#allocation2 + $0x5] ss:$8 sm:$0xf]  ;;  %v6955_v26 = vld [vmem:[#allocation2 + $0x6] ss:$8 sm:$0xf] }
 0x111   :  { %v6957_v27 = vld [vmem:[#allocation2 + $0x7] ss:$8 sm:$0xf]  ;;  %v582_v28 = vsel %vm518_vm8, %v406_v19, %v550_v23  ;;  %v5646_v30 = vpop.f32.mrb[13].mxu0 }
 0x112   :  { %2251 = vst.msk [vmem:[#allocation2 + $0x14] sm:$0xf] %vm609_vm0, %v6731_v44  ;;  %v5647_v31 = vadd.f32 %v5646_v30, %v5645_v29  ;;  %v5648_v32 = vpop.f32.mrb[14].mxu0  ;;  %v681_v1 = vld [vmem:[#allocation2 + $0x2] ss:$8 sm:$0xf] }
 0x113   :  { %617 = vst.msk [vmem:[#allocation2 + $0x2c] sm:$0xff] %vm611_vm2, %v582_v28  ;;  %v5649_v33 = vpop.f32.mrb[15].mxu0  ;;  %v701_v6 = vld [vmem:[#allocation2 + $0x3] ss:$8 sm:$0xf] }
 0x114   :  { %v411_v34 = vadd.f32 %v5647_v31, %v6930_v51  ;;  %v5650_v35 = vadd.f32 %v5649_v33, %v5648_v32 }
 0x115   :  { %v5651_v36 = vpop.f32.mrb[16].mxu0 }
 0x116   :  { %v5652_v37 = vpop.f32.mrb[17].mxu0  ;;  %vm519_vm9 = vcmp.ge.f32.partialorder %v411_v34, 0.0  ;;  %v551_v38 = vmul.f32 0.01, %v411_v34  ;;  %v414_v39 = vadd.f32 %v5650_v35, %v6930_v51 }
 0x117   :  { %v5653_v40 = vadd.f32 %v5652_v37, %v5651_v36  ;;  %v5654_v41 = vpop.f32.mrb[18].mxu0 }
 0x118   :  { %v5655_v42 = vpop.f32.mrb[19].mxu0  ;;  %v583_v43 = vsel %vm519_vm9, %v411_v34, %v551_v38  ;;  %vm520_vm10 = vcmp.ge.f32.partialorder %v414_v39, 0.0  ;;  %v552_v45 = vmul.f32 0.01, %v414_v39 }
 0x119   :  { %v419_v46 = vadd.f32 %v5653_v40, %v6930_v51  ;;  %618 = vst.msk [vmem:[#allocation2 + $0x34] sm:$0xff] %vm611_vm2, %v583_v43  ;;  %v5656_v47 = vadd.f32 %v5655_v42, %v5654_v41 }
 0x11a   :  { %v584_v48 = vsel %vm520_vm10, %v414_v39, %v552_v45 }
 0x11b   :  { %vm521_vm11 = vcmp.ge.f32.partialorder %v419_v46, 0.0  ;;  %v553_v50 = vmul.f32 0.01, %v419_v46  ;;  %619 = vst.msk [vmem:[#allocation2 + $0x3c] sm:$0xff] %vm611_vm2, %v584_v48  ;;  %v422_v52 = vadd.f32 %v5656_v47, %v6930_v51 }
 0x11d   :  { %v585_v53 = vsel %vm521_vm11, %v419_v46, %v553_v50  ;;  %v5657_v54 = vpop.f32.mrb[20].mxu0  ;;  %vm522_vm12 = vcmp.ge.f32.partialorder %v422_v52, 0.0  ;;  %v554_v55 = vmul.f32 0.01, %v422_v52  ;;  %v6433_v50 = vld [vmem:[%s8284_s3] sm:$0xff]  }
 0x11e   :  { %620 = vst.msk [vmem:[#allocation2 + $0x44] sm:$0xff] %vm611_vm2, %v585_v53  ;;  %v5658_v56 = vpop.f32.mrb[21].mxu0 }
 0x11f   :  { %v5659_v57 = vadd.f32 %v5658_v56, %v5657_v54  ;;  %v5660_v58 = vpop.f32.mrb[22].mxu0  ;;  %v586_v59 = vsel %vm522_vm12, %v422_v52, %v554_v55 }
 0x120   :  { %v5661_v60 = vpop.f32.mrb[23].mxu0  ;;  %621 = vst.msk [vmem:[#allocation2 + $0x4c] sm:$0xff] %vm611_vm2, %v586_v59  ;;  %v646_v63 = vld [vmem:[#allocation2] ss:$8 sm:$0xf0] }
 0x121   :  { %v427_v61 = vadd.f32 %v5659_v57, %v6930_v51  ;;  %v5662_v62 = vadd.f32 %v5661_v60, %v5660_v58  ;;  %v662_v0 = vld [vmem:[#allocation2 + $0x1] ss:$8 sm:$0xf0]  ;;  %v647_v2 = vor.u32 %v646_v63, %v6942_v20  ;;  %v682_v4 = vld [vmem:[#allocation2 + $0x2] ss:$8 sm:$0xf0] }
 0x122   :  { %v663_v3 = vor.u32 %v662_v0, %v6944_v21  ;;  %v702_v5 = vld [vmem:[#allocation2 + $0x3] ss:$8 sm:$0xf0]  ;;  %v722_v9 = vld [vmem:[#allocation2 + $0x4] ss:$8 sm:$0xf0]  ;;  %v683_v11 = vor.u32 %v682_v4, %v681_v1 }
 0x123   :  { %vm523_vm13 = vcmp.ge.f32.partialorder %v427_v61, 0.0  ;;  %v555_v7 = vmul.f32 0.01, %v427_v61  ;;  %v430_v8 = vadd.f32 %v5662_v62, %v6930_v51  ;;  %v742_v12 = vld [vmem:[#allocation2 + $0x5] ss:$8 sm:$0xf0]  ;;  %v703_v19 = vor.u32 %v702_v5, %v701_v6 }
 0x124   :  { %v676_v10 = vmax.f32 %v647_v2, %v663_v3  ;;  %v762_v13 = vld [vmem:[#allocation2 + $0x6] ss:$8 sm:$0xf0]  ;;  %v782_v20 = vld [vmem:[#allocation2 + $0x7] ss:$8 sm:$0xf0]  ;;  %v723_v30 = vor.u32 %v722_v9, %v6951_v24  ;;  %v743_v34 = vor.u32 %v742_v12, %v6953_v25 }
 0x125   :  { %v587_v14 = vsel %vm523_vm13, %v427_v61, %v555_v7  ;;  %vm524_vm14 = vcmp.ge.f32.partialorder %v430_v8, 0.0  ;;  %v556_v15 = vmul.f32 0.01, %v430_v8  ;;  %v5663_v16 = vpop.f32.mrb[24].mxu0  ;;  %2256 = vst.msk [vmem:[#allocation2 + $0x2c] sm:$0xf] %vm609_vm0, %v6731_v44  ;;  %v763_v38 = vor.u32 %v762_v13, %v6955_v26 }
 0x126   :  { %622 = vst.msk [vmem:[#allocation2 + $0x54] sm:$0xff] %vm611_vm2, %v587_v14  ;;  %v5664_v17 = vpop.f32.mrb[25].mxu0  ;;  %v696_v18 = vmax.f32 %v676_v10, %v683_v11  ;;  %v783_v43 = vor.u32 %v782_v20, %v6957_v27  ;;  %v6432_v26 = vld [vmem:[%s8284_s3 + $0x40] sm:$0xff]   ;;  %v6434_v59 = vld [vmem:[%s8284_s3 + $0x48] sm:$0xff]   ;;  %v6436_v1 = vld [vmem:[%s8284_s3 + $0x50] sm:$0xff]  }
 0x127   :  { %v588_v21 = vsel %vm524_vm14, %v430_v8, %v556_v15  ;;  %v5665_v22 = vadd.f32 %v5664_v17, %v5663_v16  ;;  %v5666_v23 = vpop.f32.mrb[26].mxu0  ;;  %5723 = vmatprep.subr.bf16.mxu1 %v6432_v26  ;;  %v6435_v63 = vld [vmem:[%s8284_s3 + $0x8] sm:$0xff]   ;;  %v6437_v4 = vld [vmem:[%s8284_s3 + $0x10] sm:$0xff]   ;;  %v6438_v5 = vld [vmem:[%s8284_s3 + $0x58] sm:$0xff]  }
 0x128   :  { %623 = vst.msk [vmem:[#allocation2 + $0x5c] sm:$0xff] %vm611_vm2, %v588_v21  ;;  %v5667_v28 = vpop.f32.mrb[27].mxu0  ;;  %v716_v29 = vmax.f32 %v696_v18, %v703_v19  ;;  %5724 = vmatpush3.bf16.msra.mxu1 %v6433_v50  ;;  %v6439_v9 = vld [vmem:[%s8284_s3 + $0x18] sm:$0xff]   ;;  %v6440_v16 = vld [vmem:[%s8284_s3 + $0x60] sm:$0xff]  }
 0x129   :  { %v435_v31 = vadd.f32 %v5665_v22, %v6930_v51  ;;  %v5668_v32 = vadd.f32 %v5667_v28, %v5666_v23  ;;  %5725 = vmatprep.subr.bf16.mxu1 %v6434_v59 }
 0x12a   :  { %v736_v33 = vmax.f32 %v716_v29, %v723_v30 }
 0x12b   :  { %vm525_vm15 = vcmp.ge.f32.partialorder %v435_v31, 0.0  ;;  %v557_v35 = vmul.f32 0.01, %v435_v31  ;;  %v438_v36 = vadd.f32 %v5668_v32, %v6930_v51 }
 0x12c   :  { %v756_v37 = vmax.f32 %v736_v33, %v743_v34  ;;  %5726 = vmatpush3.bf16.msra.mxu1 %v6435_v63  ;;  %v6441_v34 = vld [vmem:[%s8284_s3 + $0x20] sm:$0xff]  }
 0x12d   :  { %v589_v39 = vsel %vm525_vm15, %v435_v31, %v557_v35  ;;  %vm526_vm1 = vcmp.ge.f32.partialorder %v438_v36, 0.0  ;;  %v558_v40 = vmul.f32 0.01, %v438_v36  ;;  %v5669_v41 = vpop.f32.mrb[28].mxu0  ;;  %5727 = vmatprep.subr.bf16.mxu1 %v6436_v1 }
 0x12e   :  { %624 = vst.msk [vmem:[#allocation2 + $0x64] sm:$0xff] %vm611_vm2, %v589_v39  ;;  %v5670_v24 = vpop.f32.mrb[29].mxu0  ;;  %v776_v42 = vmax.f32 %v756_v37, %v763_v38  ;;  %v649_v8 = vld [vmem:[#allocation2 + $0x40] ss:$8 sm:$0xf] }
 0x12f   :  { %v590_v45 = vsel %vm526_vm1, %v438_v36, %v558_v40  ;;  %v5671_v46 = vadd.f32 %v5670_v24, %v5669_v41  ;;  %v5672_v25 = vpop.f32.mrb[30].mxu0  ;;  %v665_v13 = vld [vmem:[#allocation2 + $0x41] ss:$8 sm:$0xf] }
 0x130   :  { %625 = vst.msk [vmem:[#allocation2 + $0x6c] sm:$0xff] %vm611_vm2, %v590_v45  ;;  %v796_v47 = vmax.f32 %v776_v42, %v783_v43  ;;  %v5673_v48 = vpop.f32.mrb[31].mxu0  ;;  %5728 = vmatpush3.bf16.msra.mxu1 %v6437_v4  ;;  %v685_v22 = vld [vmem:[#allocation2 + $0x42] ss:$8 sm:$0xf] }
 0x131   :  { %v443_v52 = vadd.f32 %v5671_v46, %v6930_v51  ;;  %v5674_v53 = vadd.f32 %v5673_v48, %v5672_v25  ;;  %5729 = vmatprep.subr.bf16.mxu1 %v6438_v5  ;;  %v705_v32 = vld [vmem:[#allocation2 + $0x43] ss:$8 sm:$0xf]  ;;  %v725_v41 = vld [vmem:[#allocation2 + $0x44] ss:$8 sm:$0xf] }
 0x132   :  { %807 = vrot.lane.b32.xlu0 %v796_v47, %s6733_s30  ;;  %803 = vst.msk [vmem:[#allocation3 + $0x4] sm:$0xff] %vm611_vm2, %v796_v47  ;;  %v6442_v38 = vld [vmem:[%s8284_s3 + $0x68] sm:$0xff]  }
 0x133   :  { %vm527_vm3 = vcmp.ge.f32.partialorder %v443_v52, 0.0  ;;  %v559_v27 = vmul.f32 0.01, %v443_v52  ;;  %v446_v54 = vadd.f32 %v5674_v53, %v6930_v51  ;;  %v745_v47 = vld [vmem:[#allocation2 + $0x45] ss:$8 sm:$0xf] }
 0x134   :  { %5730 = vmatpush3.bf16.msra.mxu1 %v6439_v9  ;;  %v6443_v53 = vld [vmem:[%s8284_s3 + $0x28] sm:$0xff]  }
 0x135   :  { %v591_v55 = vsel %vm527_vm3, %v443_v52, %v559_v27  ;;  %vm528_vm4 = vcmp.ge.f32.partialorder %v446_v54, 0.0  ;;  %v560_v56 = vmul.f32 0.01, %v446_v54  ;;  %v5675_v57 = vpop.f32.mrb[32].mxu0  ;;  %5731 = vmatprep.subr.bf16.mxu1 %v6440_v16 }
 0x136   :  { %626 = vst.msk [vmem:[#allocation2 + $0x74] sm:$0xff] %vm611_vm2, %v591_v55  ;;  %v5676_v58 = vpop.f32.mrb[33].mxu0  ;;  %v785_v63 = vld [vmem:[#allocation2 + $0x47] ss:$8 sm:$0xf] }
 0x137   :  { %v592_v60 = vsel %vm528_vm4, %v446_v54, %v560_v56  ;;  %v5677_v61 = vadd.f32 %v5676_v58, %v5675_v57  ;;  %v5678_v62 = vpop.f32.mrb[34].mxu0  ;;  %v765_v56 = vld [vmem:[#allocation2 + $0x46] ss:$8 sm:$0xf] }
 0x138   :  { %627 = vst.msk [vmem:[#allocation2 + $0x7c] sm:$0xf] %vm609_vm0, %v592_v60  ;;  %v5679_v0 = vpop.f32.mrb[35].mxu0  ;;  %5732 = vmatpush3.bf16.msra.mxu1 %v6441_v34 }
 0x139   :  { %v451_v2 = vadd.f32 %v5677_v61, %v6930_v51  ;;  %v5680_v3 = vadd.f32 %v5679_v0, %v5678_v62  ;;  %5733 = vmatprep.subr.bf16.mxu1 %v6442_v38  ;;  %v6444_v0 = vld [vmem:[%s8284_s3 + $0x70] sm:$0xff]  }
 0x13b   :  { %vm529_vm5 = vcmp.ge.f32.partialorder %v451_v2, 0.0  ;;  %v561_v6 = vmul.f32 0.01, %v451_v2  ;;  %v454_v7 = vadd.f32 %v5680_v3, %v6930_v51  ;;  %v6445_v3 = vld [vmem:[%s8284_s3 + $0x30] sm:$0xff]  }
 0x13c   :  { %5734 = vmatpush3.bf16.msra.mxu1 %v6443_v53 }
 0x13d   :  { %v593_v10 = vsel %vm529_vm5, %v451_v2, %v561_v6  ;;  %vm530_vm6 = vcmp.ge.f32.partialorder %v454_v7, 0.0  ;;  %v562_v11 = vmul.f32 0.01, %v454_v7  ;;  %v5681_v12 = vpop.f32.mrb[36].mxu0  ;;  %5735 = vmatprep.subr.bf16.mxu1 %v6444_v0  ;;  %v6446_v6 = vld [vmem:[%s8284_s3 + $0x78] sm:$0xff]  }
 0x13e   :  { %629 = vst.msk [vmem:[#allocation2 + $0x84] sm:$0xff] %vm611_vm2, %v593_v10  ;;  %v5682_v14 = vpop.f32.mrb[37].mxu0  ;;  %v650_v15 = vld [vmem:[#allocation2 + $0x40] ss:$8 sm:$0xf0] }
 0x13f   :  { %v594_v17 = vsel %vm530_vm6, %v454_v7, %v562_v11  ;;  %v5683_v18 = vadd.f32 %v5682_v14, %v5681_v12  ;;  %v5684_v19 = vpop.f32.mrb[38].mxu0  ;;  %v651_v20 = vor.u32 %v650_v15, %v649_v8  ;;  %v666_v21 = vld [vmem:[#allocation2 + $0x41] ss:$8 sm:$0xf0] }
 0x140   :  { %630 = vst.msk [vmem:[#allocation2 + $0x8c] sm:$0xff] %vm611_vm2, %v594_v17  ;;  %v5685_v23 = vpop.f32.mrb[39].mxu0  ;;  %v667_v28 = vor.u32 %v666_v21, %v665_v13  ;;  %v686_v29 = vld [vmem:[#allocation2 + $0x42] ss:$8 sm:$0xf0]  ;;  %5736 = vmatpush3.bf16.msra.mxu1 %v6445_v3 }
 0x141   :  { %v459_v30 = vadd.f32 %v5683_v18, %v6930_v51  ;;  %v5686_v31 = vadd.f32 %v5685_v23, %v5684_v19  ;;  %v706_v33 = vld [vmem:[#allocation2 + $0x43] ss:$8 sm:$0xf0]  ;;  %v687_v36 = vor.u32 %v686_v29, %v685_v22  ;;  %v726_v37 = vld [vmem:[#allocation2 + $0x44] ss:$8 sm:$0xf0]  ;;  %5737 = vmatprep.subr.bf16.mxu1 %v6446_v6 }
 0x142   :  { %v677_v35 = vmax.f32 %v651_v20, %v667_v28  ;;  %v746_v24 = vld [vmem:[#allocation2 + $0x45] ss:$8 sm:$0xf0]  ;;  %v707_v43 = vor.u32 %v706_v33, %v705_v32  ;;  %v766_v48 = vld [vmem:[#allocation2 + $0x46] ss:$8 sm:$0xf0]  ;;  %v727_v52 = vor.u32 %v726_v37, %v725_v41 }
 0x143   :  { %vm531_vm8 = vcmp.ge.f32.partialorder %v459_v30, 0.0  ;;  %v563_v39 = vmul.f32 0.01, %v459_v30  ;;  %v462_v40 = vadd.f32 %v5686_v31, %v6930_v51  ;;  %v786_v57 = vld [vmem:[#allocation2 + $0x47] ss:$8 sm:$0xf0]  ;;  %v747_v60 = vor.u32 %v746_v24, %v745_v47 }
 0x144   :  { %v697_v42 = vmax.f32 %v677_v35, %v687_v36  ;;  %v767_v2 = vor.u32 %v766_v48, %v765_v56  ;;  %v6447_v7 = vld [vmem:[%s8284_s3 + $0x38] sm:$0xff]   ;;  %v787_v9 = vor.u32 %v786_v57, %v785_v63 }
 0x145   :  { %v595_v45 = vsel %vm531_vm8, %v459_v30, %v563_v39  ;;  %vm532_vm9 = vcmp.ge.f32.partialorder %v462_v40, 0.0  ;;  %v564_v46 = vmul.f32 0.01, %v462_v40  ;;  %v5687_v25 = vpop.f32.mrb[40].mxu0  ;;  %5738 = vmatpush3.bf16.msra.mxu1 %v6447_v7 }
 0x146   :  { %631 = vst.msk [vmem:[#allocation2 + $0x94] sm:$0xff] %vm611_vm2, %v595_v45  ;;  %v5688_v26 = vpop.f32.mrb[41].mxu0  ;;  %v717_v50 = vmax.f32 %v697_v42, %v707_v43 }
 0x147   :  { %v596_v27 = vsel %vm532_vm9, %v462_v40, %v564_v46  ;;  %v5689_v54 = vadd.f32 %v5688_v26, %v5687_v25  ;;  %v5690_v55 = vpop.f32.mrb[42].mxu0  ;;  %vm813_vm9 = vcmask 1048064  }
 0x148   :  { %632 = vst.msk [vmem:[#allocation2 + $0x9c] sm:$0xff] %vm611_vm2, %v596_v27  ;;  %v5691_v58 = vpop.f32.mrb[43].mxu0  ;;  %v737_v59 = vmax.f32 %v717_v50, %v727_v52 }
 0x149   :  { %v467_v61 = vadd.f32 %v5689_v54, %v6930_v51  ;;  %v5692_v62 = vadd.f32 %v5691_v58, %v5690_v55 }
 0x14a   :  { %v757_v1 = vmax.f32 %v737_v59, %v747_v60 }
 0x14b   :  { %vm533_vm10 = vcmp.ge.f32.partialorder %v467_v61, 0.0  ;;  %v565_v4 = vmul.f32 0.01, %v467_v61  ;;  %v470_v5 = vadd.f32 %v5692_v62, %v6930_v51 }
 0x14c   :  { %v777_v8 = vmax.f32 %v757_v1, %v767_v2 }
 0x14d   :  { %v597_v10 = vsel %vm533_vm10, %v467_v61, %v565_v4  ;;  %vm534_vm11 = vcmp.ge.f32.partialorder %v470_v5, 0.0  ;;  %v566_v11 = vmul.f32 0.01, %v470_v5  ;;  %v5693_v12 = vpop.f32.mrb[44].mxu0 }
 0x14e   :  { %633 = vst.msk [vmem:[#allocation2 + $0xa4] sm:$0xff] %vm611_vm2, %v597_v10  ;;  %v5694_v13 = vpop.f32.mrb[45].mxu0  ;;  %v797_v14 = vmax.f32 %v777_v8, %v787_v9  ;;  %v653_v39 = vld [vmem:[#allocation2 + $0x80] ss:$8 sm:$0xf] }
 0x14f   :  { %v598_v15 = vsel %vm534_vm11, %v470_v5, %v566_v11  ;;  %v5695_v16 = vadd.f32 %v5694_v13, %v5693_v12  ;;  %v5696_v17 = vpop.f32.mrb[46].mxu0  ;;  %v669_v42 = vld [vmem:[#allocation2 + $0x81] ss:$8 sm:$0xf] }
 0x150   :  { %634 = vst.msk [vmem:[#allocation2 + $0xac] sm:$0xff] %vm611_vm2, %v598_v15  ;;  %804 = vst.msk [vmem:[#allocation3 + $0xc] sm:$0xff] %vm611_vm2, %v797_v14  ;;  %809 = vrot.lane.b32.xlu0 %v797_v14, %s6733_s30  ;;  %v5697_v18 = vpop.f32.mrb[47].mxu0  ;;  %v689_v55 = vld [vmem:[#allocation2 + $0x82] ss:$8 sm:$0xf] }
 0x151   :  { %v475_v19 = vadd.f32 %v5695_v16, %v6930_v51  ;;  %v5698_v20 = vadd.f32 %v5697_v18, %v5696_v17  ;;  %v709_v59 = vld [vmem:[#allocation2 + $0x83] ss:$8 sm:$0xf]  ;;  %v729_v63 = vld [vmem:[#allocation2 + $0x84] ss:$8 sm:$0xf] }
 0x152   :  { %v749_v6 = vld [vmem:[#allocation2 + $0x85] ss:$8 sm:$0xf]  ;;  %v769_v14 = vld [vmem:[#allocation2 + $0x86] ss:$8 sm:$0xf] }
 0x153   :  { %vm535_vm12 = vcmp.ge.f32.partialorder %v475_v19, 0.0  ;;  %v567_v21 = vmul.f32 0.01, %v475_v19  ;;  %v478_v22 = vadd.f32 %v5698_v20, %v6930_v51 }
 0x155   :  { %v599_v23 = vsel %vm535_vm12, %v475_v19, %v567_v21  ;;  %vm536_vm13 = vcmp.ge.f32.partialorder %v478_v22, 0.0  ;;  %v568_v28 = vmul.f32 0.01, %v478_v22  ;;  %v5699_v29 = vpop.f32.mrb[48].mxu0 }
 0x156   :  { %635 = vst.msk [vmem:[#allocation2 + $0xb4] sm:$0xff] %vm611_vm2, %v599_v23  ;;  %v5700_v30 = vpop.f32.mrb[49].mxu0  ;;  %v789_v21 = vld [vmem:[#allocation2 + $0x87] ss:$8 sm:$0xf] }
 0x157   :  { %v600_v31 = vsel %vm536_vm13, %v478_v22, %v568_v28  ;;  %v5701_v32 = vadd.f32 %v5700_v30, %v5699_v29  ;;  %v5702_v33 = vpop.f32.mrb[50].mxu0  ;;  %vm1263_vm13 = vcmask 516096  }
 0x158   :  { %636 = vst.msk [vmem:[#allocation2 + $0xbc] sm:$0xff] %vm611_vm2, %v600_v31  ;;  %v5703_v34 = vpop.f32.mrb[51].mxu0 }
 0x159   :  { %v483_v35 = vadd.f32 %v5701_v32, %v6930_v51  ;;  %v5704_v36 = vadd.f32 %v5703_v34, %v5702_v33 }
 0x15b   :  { %vm537_vm14 = vcmp.ge.f32.partialorder %v483_v35, 0.0  ;;  %v569_v37 = vmul.f32 0.01, %v483_v35  ;;  %v486_v38 = vadd.f32 %v5704_v36, %v6930_v51 }
 0x15d   :  { %v601_v40 = vsel %vm537_vm14, %v483_v35, %v569_v37  ;;  %vm538_vm15 = vcmp.ge.f32.partialorder %v486_v38, 0.0  ;;  %v570_v41 = vmul.f32 0.01, %v486_v38  ;;  %v5705_v24 = vpop.f32.mrb[52].mxu0  ;;  %v6448_v37 = vld [vmem:[%s8284_s3 + $0xc0] sm:$0xff]  }
 0x15e   :  { %637 = vst.msk [vmem:[#allocation2 + $0xc4] sm:$0xff] %vm611_vm2, %v601_v40  ;;  %v5706_v43 = vpop.f32.mrb[53].mxu0  ;;  %v654_v45 = vld [vmem:[#allocation2 + $0x80] ss:$8 sm:$0xf0]  ;;  %5757 = vmatprep.subr.bf16.mxu1 %v6448_v37 }
 0x15f   :  { %v602_v46 = vsel %vm538_vm15, %v486_v38, %v570_v41  ;;  %v5707_v25 = vadd.f32 %v5706_v43, %v5705_v24  ;;  %v5708_v47 = vpop.f32.mrb[54].mxu0  ;;  %v655_v48 = vor.u32 %v654_v45, %v653_v39  ;;  %v670_v26 = vld [vmem:[#allocation2 + $0x81] ss:$8 sm:$0xf0] }
 0x160   :  { %638 = vst.msk [vmem:[#allocation2 + $0xcc] sm:$0xff] %vm611_vm2, %v602_v46  ;;  %v5709_v50 = vpop.f32.mrb[55].mxu0  ;;  %v671_v52 = vor.u32 %v670_v26, %v669_v42  ;;  %v690_v53 = vld [vmem:[#allocation2 + $0x82] ss:$8 sm:$0xf0] }
 0x161   :  { %v491_v27 = vadd.f32 %v5707_v25, %v6930_v51  ;;  %v5710_v54 = vadd.f32 %v5709_v50, %v5708_v47  ;;  %v710_v56 = vld [vmem:[#allocation2 + $0x83] ss:$8 sm:$0xf0]  ;;  %v691_v58 = vor.u32 %v690_v53, %v689_v55  ;;  %v730_v60 = vld [vmem:[#allocation2 + $0x84] ss:$8 sm:$0xf0] }
 0x162   :  { %v678_v57 = vmax.f32 %v655_v48, %v671_v52  ;;  %v750_v0 = vld [vmem:[#allocation2 + $0x85] ss:$8 sm:$0xf0]  ;;  %v711_v2 = vor.u32 %v710_v56, %v709_v59  ;;  %v770_v7 = vld [vmem:[#allocation2 + $0x86] ss:$8 sm:$0xf0]  ;;  %v731_v10 = vor.u32 %v730_v60, %v729_v63 }
 0x163   :  { %vm539_vm1 = vcmp.ge.f32.partialorder %v491_v27, 0.0  ;;  %v571_v61 = vmul.f32 0.01, %v491_v27  ;;  %v494_v62 = vadd.f32 %v5710_v54, %v6930_v51  ;;  %v790_v15 = vld [vmem:[#allocation2 + $0x87] ss:$8 sm:$0xf0]  ;;  %v751_v18 = vor.u32 %v750_v0, %v749_v6 }
 0x164   :  { %v698_v1 = vmax.f32 %v678_v57, %v691_v58  ;;  %v771_v23 = vor.u32 %v770_v7, %v769_v14  ;;  %v791_v31 = vor.u32 %v790_v15, %v789_v21  ;;  %v7081_v14 = vld [vmem:[#allocation3 + $0x2e] sm:$0xff]  ;;  %v6459_v37 = vld [vmem:[%s8284_s3 + $0xa8] sm:$0xff]  }
 0x165   :  { %v603_v3 = vsel %vm539_vm1, %v491_v27, %v571_v61  ;;  %vm540_vm3 = vcmp.ge.f32.partialorder %v494_v62, 0.0  ;;  %v572_v4 = vmul.f32 0.01, %v494_v62  ;;  %v5711_v5 = vpop.f32.mrb[56].mxu0  ;;  %1282 = vst [vmem:[#allocation3 + $0x34] sm:$0xf] %v6732_v49 }
 0x166   :  { %639 = vst.msk [vmem:[#allocation2 + $0xd4] sm:$0xff] %vm611_vm2, %v603_v3  ;;  %v5712_v8 = vpop.f32.mrb[57].mxu0  ;;  %v718_v9 = vmax.f32 %v698_v1, %v711_v2 }
 0x167   :  { %v604_v11 = vsel %vm540_vm3, %v494_v62, %v572_v4  ;;  %v5713_v12 = vadd.f32 %v5712_v8, %v5711_v5  ;;  %v5714_v13 = vpop.f32.mrb[58].mxu0  ;;  %vm1279_vm3 = vcmask 1040896  }
 0x168   :  { %640 = vst.msk [vmem:[#allocation2 + $0xdc] sm:$0xff] %vm611_vm2, %v604_v11  ;;  %v5715_v16 = vpop.f32.mrb[59].mxu0  ;;  %v738_v17 = vmax.f32 %v718_v9, %v731_v10 }
 0x169   :  { %v499_v19 = vadd.f32 %v5713_v12, %v6930_v51  ;;  %v5716_v20 = vadd.f32 %v5715_v16, %v5714_v13 }
 0x16a   :  { %v758_v22 = vmax.f32 %v738_v17, %v751_v18 }
 0x16b   :  { %vm541_vm4 = vcmp.ge.f32.partialorder %v499_v19, 0.0  ;;  %v573_v28 = vmul.f32 0.01, %v499_v19  ;;  %v502_v29 = vadd.f32 %v5716_v20, %v6930_v51 }
 0x16c   :  { %v778_v30 = vmax.f32 %v758_v22, %v771_v23  ;;  %v6449_v23 = vld [vmem:[%s8284_s3 + $0x80] sm:$0xff]  }
 0x16d   :  { %v605_v32 = vsel %vm541_vm4, %v499_v19, %v573_v28  ;;  %vm542_vm5 = vcmp.ge.f32.partialorder %v502_v29, 0.0  ;;  %v574_v33 = vmul.f32 0.01, %v502_v29  ;;  %v5717_v34 = vpop.f32.mrb[60].mxu0  ;;  %v6450_v28 = vld [vmem:[%s8284_s3 + $0xc8] sm:$0xff]  }
 0x16e   :  { %641 = vst.msk [vmem:[#allocation2 + $0xe4] sm:$0xff] %vm611_vm2, %v605_v32  ;;  %v5718_v35 = vpop.f32.mrb[61].mxu0  ;;  %v798_v36 = vmax.f32 %v778_v30, %v791_v31  ;;  %v657_v48 = vld [vmem:[#allocation2 + $0xc0] ss:$8 sm:$0xf] }
 0x16f   :  { %v606_v38 = vsel %vm542_vm5, %v502_v29, %v574_v33  ;;  %v5719_v39 = vadd.f32 %v5718_v35, %v5717_v34  ;;  %v5720_v40 = vpop.f32.mrb[62].mxu0  ;;  %v673_v26 = vld [vmem:[#allocation2 + $0xc1] ss:$8 sm:$0xf] }
 0x170   :  { %642 = vst.msk [vmem:[#allocation2 + $0xec] sm:$0xff] %vm611_vm2, %v606_v38  ;;  %822 = vrot.lane.b32.xlu1 %v798_v36, %s6733_s30  ;;  %818 = vst.msk [vmem:[#allocation3 + $0x1c] sm:$0xff] %vm611_vm2, %v798_v36  ;;  %v5721_v41 = vpop.f32.mrb[63].mxu0  ;;  %v693_v55 = vld [vmem:[#allocation2 + $0xc2] ss:$8 sm:$0xf] }
 0x171   :  { %v507_v24 = vadd.f32 %v5719_v39, %v6930_v51  ;;  %v5722_v42 = vadd.f32 %v5721_v41, %v5720_v40  ;;  %v733_v60 = vld [vmem:[#allocation2 + $0xc4] ss:$8 sm:$0xf]  ;;  %v753_v0 = vld [vmem:[#allocation2 + $0xc5] ss:$8 sm:$0xf] }
 0x172   :  { %v773_v4 = vld [vmem:[#allocation2 + $0xc6] ss:$8 sm:$0xf]  ;;  %v793_v10 = vld [vmem:[#allocation2 + $0xc7] ss:$8 sm:$0xf] }
 0x173   :  { %vm543_vm6 = vcmp.ge.f32.partialorder %v507_v24, 0.0  ;;  %v575_v43 = vmul.f32 0.01, %v507_v24  ;;  %v510_v45 = vadd.f32 %v5722_v42, %v6930_v51  ;;  %v713_v51 = vld [vmem:[#allocation2 + $0xc3] ss:$8 sm:$0xf] }
 0x174   :  { %v6451_v29 = vld [vmem:[%s8284_s3 + $0x88] sm:$0xff]   ;;  %v6452_v30 = vld [vmem:[%s8284_s3 + $0xd0] sm:$0xff]   ;;  %v6454_v32 = vld [vmem:[%s8284_s3 + $0xd8] sm:$0xff]  }
 0x175   :  { %v607_v46 = vsel %vm543_vm6, %v507_v24, %v575_v43  ;;  %vm544_vm8 = vcmp.ge.f32.partialorder %v510_v45, 0.0  ;;  %v576_v25 = vmul.f32 0.01, %v510_v45  ;;  %v6453_v31 = vld [vmem:[%s8284_s3 + $0x90] sm:$0xff]   ;;  %v6455_v33 = vld [vmem:[%s8284_s3 + $0x98] sm:$0xff]   ;;  %v6456_v34 = vld [vmem:[%s8284_s3 + $0xe0] sm:$0xff]  }
 0x176   :  { %643 = vst.msk [vmem:[#allocation2 + $0xf4] sm:$0xff] %vm611_vm2, %v607_v46  ;;  %v6457_v35 = vld [vmem:[%s8284_s3 + $0xa0] sm:$0xff]   ;;  %v6458_v36 = vld [vmem:[%s8284_s3 + $0xe8] sm:$0xff]   ;;  %v6460_v38 = vld [vmem:[%s8284_s3 + $0xf0] sm:$0xff]  }
 0x177   :  { %v608_v47 = vsel %vm544_vm8, %v510_v45, %v576_v25  ;;  %v6461_v40 = vld [vmem:[%s8284_s3 + $0xb0] sm:$0xff]   ;;  %v6462_v41 = vld [vmem:[%s8284_s3 + $0xf8] sm:$0xff]  }
 0x178   :  { %644 = vst.msk [vmem:[#allocation2 + $0xfc] sm:$0xf] %vm609_vm0, %v608_v47  ;;  %v6463_v24 = vld [vmem:[%s8284_s3 + $0xb8] sm:$0xff]  }
 0x17d   :  { %v658_v50 = vld [vmem:[#allocation2 + $0xc0] ss:$8 sm:$0xf0]  ;;  %v674_v52 = vld [vmem:[#allocation2 + $0xc1] ss:$8 sm:$0xf0] }
 0x17e   :  { %v659_v53 = vor.u32 %v658_v50, %v657_v48  ;;  %v675_v27 = vor.u32 %v674_v52, %v673_v26  ;;  %v694_v54 = vld [vmem:[#allocation2 + $0xc2] ss:$8 sm:$0xf0]  ;;  %v714_v56 = vld [vmem:[#allocation2 + $0xc3] ss:$8 sm:$0xf0] }
 0x17f   :  { %v695_v58 = vor.u32 %v694_v54, %v693_v55  ;;  %v734_v59 = vld [vmem:[#allocation2 + $0xc4] ss:$8 sm:$0xf0]  ;;  %v754_v61 = vld [vmem:[#allocation2 + $0xc5] ss:$8 sm:$0xf0]  ;;  %v715_v63 = vor.u32 %v714_v56, %v713_v51 }
 0x180   :  { %v679_v57 = vmax.f32 %v659_v53, %v675_v27  ;;  %v774_v1 = vld [vmem:[#allocation2 + $0xc6] ss:$8 sm:$0xf0]  ;;  %v735_v3 = vor.u32 %v734_v59, %v733_v60  ;;  %v794_v5 = vld [vmem:[#allocation2 + $0xc7] ss:$8 sm:$0xf0]  ;;  %v755_v7 = vor.u32 %v754_v61, %v753_v0 }
 0x181   :  { %v775_v9 = vor.u32 %v774_v1, %v773_v4  ;;  %v795_v12 = vor.u32 %v794_v5, %v793_v10  ;;  %v847_v5 = vld [vmem:[#allocation3 + $0x2c] sm:$0xff]  ;;  %v6467_v10 = vld [vmem:[%s8284_s3 + $0x108] sm:$0xff]  }
 0x182   :  { %v699_v62 = vmax.f32 %v679_v57, %v695_v58 }
 0x184   :  { %v719_v2 = vmax.f32 %v699_v62, %v715_v63 }
 0x186   :  { %v739_v6 = vmax.f32 %v719_v2, %v735_v3 }
 0x188   :  { %v759_v8 = vmax.f32 %v739_v6, %v755_v7  ;;  %v6464_v7 = vld [vmem:[%s8284_s3 + $0x140] sm:$0xff]  }
 0x18a   :  { %v779_v11 = vmax.f32 %v759_v8, %v775_v9  ;;  %v6465_v8 = vld [vmem:[%s8284_s3 + $0x100] sm:$0xff]   ;;  %v6466_v9 = vld [vmem:[%s8284_s3 + $0x148] sm:$0xff]  }
 0x18c   :  { %v799_v13 = vmax.f32 %v779_v11, %v795_v12  ;;  %v6468_v11 = vld [vmem:[%s8284_s3 + $0x150] sm:$0xff]  }
 0x18d   :  { %v6469_v12 = vld [vmem:[%s8284_s3 + $0x110] sm:$0xff]  }
 0x18e   :  { %819 = vst.msk [vmem:[#allocation3 + $0x24] sm:$0xff] %vm611_vm2, %v799_v13  ;;  %824 = vrot.lane.b32.xlu1 %v799_v13, %s6733_s30  ;;  %v6470_v13 = vld [vmem:[%s8284_s3 + $0x158] sm:$0xff]  }
 0x1a4   :  { %v808_v15 = vpop.permute.xlu0 %807 }
 0x1a5   :  { %814 = vst.msk [vmem:[#allocation3 + $0x3] sm:$0xff] %vm813_vm9, %v808_v15  ;;  %v6472_v15 = vld [vmem:[%s8284_s3 + $0x160] sm:$0xff]  }
 0x1ac   :  { %v830_v16 = vld [vmem:[#allocation3] sm:$0xff] }
 0x1ad   :  { %v836_v17 = vld [vmem:[#allocation3 + $0x2] sm:$0xff] }
 0x1ae   :  { %1259 = vst [vmem:[#allocation3] sm:$0xf] %v6732_v49 }
 0x1c2   :  { %v810_v18 = vpop.permute.xlu0 %809 }
 0x1c3   :  { %815 = vst.msk [vmem:[#allocation3 + $0xb] sm:$0xff] %vm813_vm9, %v810_v18 }
 0x1ca   :  { %v831_v19 = vld [vmem:[#allocation3 + $0x8] sm:$0xff]  ;;  %v832_v42 = vld [vmem:[#allocation3 + $0x10] sm:$0xff] }
 0x1cb   :  { %v837_v20 = vld [vmem:[#allocation3 + $0xa] sm:$0xff]  ;;  %v854_v22 = vpack.c.bf16 %v831_v19, %v830_v16  ;;  %v838_v43 = vld [vmem:[#allocation3 + $0x12] sm:$0xff] }
 0x1cc   :  { %v855_v21 = vpack.c.bf16 %v837_v20, %v836_v17  ;;  %v849_v47 = vld [vmem:[#allocation3 + $0xe] sm:$0xff]  ;;  %v848_v53 = vld [vmem:[#allocation3 + $0x6] sm:$0xff]  ;;  %v6473_v16 = vld [vmem:[%s8284_s3 + $0x120] sm:$0xff]  }
 0x1cd   :  { %v857_v60 = vpack.c.bf16 %v849_v47, %v848_v53  ;;  %v842_v61 = vld [vmem:[#allocation3 + $0x4] sm:$0xff]  ;;  %v843_v62 = vld [vmem:[#allocation3 + $0xc] sm:$0xff] }
 0x1ce   :  { %1158 = vmatprep.mubr.bf16.mxu1 %v855_v21  ;;  %v856_v63 = vpack.c.bf16 %v843_v62, %v842_v61  ;;  %v6477_v53 = vld [vmem:[%s8284_s3 + $0x130] sm:$0xff]  }
 0x1cf   :  { %1159 = vmatmul.mubr.bf16.vlgmr.msra.gmra.mrb[0].mxu1 %v854_v22 }
 0x1d0   :  { %5758 = vmatpush3.bf16.msra.mxu1 %v6449_v23 }
 0x1d1   :  { %5759 = vmatprep.subr.bf16.mxu1 %v6450_v28 }
 0x1d4   :  { %5760 = vmatpush3.bf16.msra.mxu1 %v6451_v29 }
 0x1d5   :  { %5761 = vmatprep.subr.bf16.mxu1 %v6452_v30 }
 0x1d8   :  { %5762 = vmatpush3.bf16.msra.mxu1 %v6453_v31 }
 0x1d9   :  { %5763 = vmatprep.subr.bf16.mxu1 %v6454_v32 }
 0x1dc   :  { %5764 = vmatpush3.bf16.msra.mxu1 %v6455_v33 }
 0x1dd   :  { %5765 = vmatprep.subr.bf16.mxu1 %v6456_v34 }
 0x1e0   :  { %5766 = vmatpush3.bf16.msra.mxu1 %v6457_v35 }
 0x1e1   :  { %5767 = vmatprep.subr.bf16.mxu1 %v6458_v36 }
 0x1e2   :  { %v823_v39 = vpop.permute.xlu1 %822 }
 0x1e3   :  { %828 = vst.msk [vmem:[#allocation3 + $0x1b] sm:$0xff] %vm813_vm9, %v823_v39  ;;  %v5048_v39 = vld [vmem:[%s8283_s6 + $0x1] ss:$0 sm:$0xff] }
 0x1e4   :  { %5768 = vmatpush3.bf16.msra.mxu1 %v6459_v37 }
 0x1e5   :  { %5769 = vmatprep.subr.bf16.mxu1 %v6460_v38 }
 0x1e8   :  { %5770 = vmatpush3.bf16.msra.mxu1 %v6461_v40 }
 0x1e9   :  { %5771 = vmatprep.subr.bf16.mxu1 %v6462_v41 }
 0x1ea   :  { %v844_v45 = vld [vmem:[#allocation3 + $0x14] sm:$0xff] }
 0x1eb   :  { %v839_v46 = vld [vmem:[#allocation3 + $0x1a] sm:$0xff] }
 0x1ec   :  { %v7133_v25 = vld [vmem:[#allocation3 + $0x18] sm:$0xff]  ;;  %v859_v48 = vpack.c.bf16 %v839_v46, %v838_v43  ;;  %5772 = vmatpush3.bf16.msra.mxu1 %v6463_v24  ;;  %v6474_v24 = vld [vmem:[%s8284_s3 + $0x168] sm:$0xff]  }
 0x1ed   :  { %v858_v26 = vpack.c.bf16 %v7133_v25, %v832_v42  ;;  %v850_v50 = vld [vmem:[#allocation3 + $0x16] sm:$0xff]  ;;  %5791 = vmatprep.subr.bf16.mxu1 %v6464_v7  ;;  %v6475_v46 = vld [vmem:[%s8284_s3 + $0x128] sm:$0xff]  }
 0x1ee   :  { %1260 = vst [vmem:[#allocation3 + $0x14] sm:$0xf] %v6732_v49  ;;  %1166 = vmatprep.mubr.bf16.mxu1 %v859_v48 }
 0x1ef   :  { %1167 = vmatmul.mubr.bf16.gmra.mrb[4].mxu1 %v858_v26 }
 0x200   :  { %v825_v52 = vpop.permute.xlu1 %824 }
 0x201   :  { %829 = vst.msk [vmem:[#allocation3 + $0x23] sm:$0xff] %vm813_vm9, %v825_v52  ;;  %v6476_v52 = vld [vmem:[%s8284_s3 + $0x170] sm:$0xff]  }
 0x208   :  { %v834_v27 = vld [vmem:[#allocation3 + $0x20] sm:$0xff]  ;;  %v841_v56 = vld [vmem:[#allocation3 + $0x2a] sm:$0xff] }
 0x209   :  { %v840_v54 = vld [vmem:[#allocation3 + $0x22] sm:$0xff] }
 0x20a   :  { %v851_v55 = vld [vmem:[#allocation3 + $0x1e] sm:$0xff]  ;;  %v835_v57 = vld [vmem:[#allocation3 + $0x28] sm:$0xff]  ;;  %v863_v51 = vpack.c.bf16 %v841_v56, %v840_v54 }
 0x20b   :  { %v845_v58 = vld [vmem:[#allocation3 + $0x1c] sm:$0xff]  ;;  %v862_v59 = vpack.c.bf16 %v835_v57, %v834_v27  ;;  %v861_v0 = vpack.c.bf16 %v851_v55, %v850_v50  ;;  %v852_v1 = vld [vmem:[#allocation3 + $0x26] sm:$0xff]  ;;  %v6478_v27 = vld [vmem:[%s8284_s3 + $0x178] sm:$0xff]  }
 0x20c   :  { %1281 = vst [vmem:[#allocation3 + $0x20] sm:$0xf] %v6732_v49  ;;  %1174 = vmatprep.mubr.bf16.mxu1 %v863_v51  ;;  %v860_v2 = vpack.c.bf16 %v845_v58, %v844_v45  ;;  %v865_v3 = vpack.c.bf16 %v7081_v14, %v852_v1  ;;  %v846_v4 = vld [vmem:[#allocation3 + $0x24] sm:$0xff]  ;;  %v6471_v14 = vld [vmem:[%s8284_s3 + $0x118] sm:$0xff]  }
 0x20d   :  { %1175 = vmatmul.mubr.bf16.gmra.mrb[8].mxu1 %v862_v59  ;;  %v864_v6 = vpack.c.bf16 %v847_v5, %v846_v4  ;;  %v6479_v51 = vld [vmem:[%s8284_s3 + $0x138] sm:$0xff]  }
 0x20e   :  { %1215 = vmatprep.mubr.bf16.mxu1 %v857_v60  ;;  %v6480_v60 = vld [vmem:[%s8284_s3 + $0x1c0] sm:$0xff]  }
 0x215   :  { %1216 = vmatmul.mubr.bf16.vlgmr.msra.gmra.mrb[12].mxu1 %v856_v63 }
 0x216   :  { %1223 = vmatprep.mubr.bf16.mxu1 %v861_v0  ;;  %5792 = vmatpush3.bf16.msra.mxu1 %v6465_v8 }
 0x217   :  { %5793 = vmatprep.subr.bf16.mxu1 %v6466_v9 }
 0x21a   :  { %5794 = vmatpush3.bf16.msra.mxu1 %v6467_v10 }
 0x21b   :  { %5795 = vmatprep.subr.bf16.mxu1 %v6468_v11 }
 0x21d   :  { %1224 = vmatmul.mubr.bf16.gmra.mrb[16].mxu1 %v860_v2 }
 0x21e   :  { %1231 = vmatprep.mubr.bf16.mxu1 %v865_v3  ;;  %5796 = vmatpush3.bf16.msra.mxu1 %v6469_v12 }
 0x21f   :  { %5797 = vmatprep.subr.bf16.mxu1 %v6470_v13 }
 0x222   :  { %5798 = vmatpush3.bf16.msra.mxu1 %v6471_v14 }
 0x223   :  { %5799 = vmatprep.subr.bf16.mxu1 %v6472_v15 }
 0x225   :  { %1232 = vmatmul.mubr.bf16.gmra.mrb[20].mxu1 %v864_v6 }
 0x226   :  { %5800 = vmatpush3.bf16.msra.mxu1 %v6473_v16 }
 0x227   :  { %5801 = vmatprep.subr.bf16.mxu1 %v6474_v24  ;;  %v6483_v24 = vld [vmem:[%s8284_s3 + $0x188] sm:$0xff]  }
 0x22a   :  { %5802 = vmatpush3.bf16.msra.mxu1 %v6475_v46 }
 0x22b   :  { %5803 = vmatprep.subr.bf16.mxu1 %v6476_v52 }
 0x22e   :  { %5804 = vmatpush3.bf16.msra.mxu1 %v6477_v53 }
 0x22f   :  { %5805 = vmatprep.subr.bf16.mxu1 %v6478_v27 }
 0x232   :  { %5806 = vmatpush3.bf16.msra.mxu1 %v6479_v51  ;;  %v6488_v51 = vld [vmem:[%s8284_s3 + $0x1e0] sm:$0xff]  }
 0x233   :  { %5831 = vmatprep.subr.bf16.mxu1 %v6480_v60  ;;  %v1316_v60 = vld [vmem:[#allocation3 + $0x3a] sm:$0xff] }
 0x2a2   :  { %v5739_v17 = vpop.f32.mrb[0].mxu1 }
 0x2a3   :  { %v5740_v18 = vpop.f32.mrb[1].mxu1 }
 0x2a4   :  { %v5741_v19 = vadd.f32 %v5740_v18, %v5739_v17  ;;  %v5742_v20 = vpop.f32.mrb[2].mxu1 }
 0x2a5   :  { %v5743_v21 = vpop.f32.mrb[3].mxu1 }
 0x2a6   :  { %v5744_v22 = vadd.f32 %v5743_v21, %v5742_v20  ;;  %v1161_v42 = vadd.f32 %v5741_v19, %v5048_v39 }
 0x2a8   :  { %v1164_v48 = vadd.f32 %v5744_v22, %v5048_v39 }
 0x2c2   :  { %v5745_v23 = vpop.f32.mrb[4].mxu1 }
 0x2c3   :  { %v5746_v28 = vpop.f32.mrb[5].mxu1 }
 0x2c4   :  { %v5747_v29 = vadd.f32 %v5746_v28, %v5745_v23  ;;  %v5748_v30 = vpop.f32.mrb[6].mxu1 }
 0x2c5   :  { %v5749_v31 = vpop.f32.mrb[7].mxu1 }
 0x2c6   :  { %v5750_v32 = vadd.f32 %v5749_v31, %v5748_v30  ;;  %v1169_v61 = vadd.f32 %v5747_v29, %v5048_v39 }
 0x2c8   :  { %v1172_v2 = vadd.f32 %v5750_v32, %v5048_v39 }
 0x2e0   :  { %v5751_v33 = vpop.f32.mrb[8].mxu1 }
 0x2e1   :  { %v5752_v34 = vpop.f32.mrb[9].mxu1 }
 0x2e2   :  { %v5753_v35 = vadd.f32 %v5752_v34, %v5751_v33  ;;  %v5754_v36 = vpop.f32.mrb[10].mxu1 }
 0x2e3   :  { %v5755_v37 = vpop.f32.mrb[11].mxu1 }
 0x2e4   :  { %v7170_v38 = vadd.f32 %v5755_v37, %v5754_v36  ;;  %v1177_v11 = vadd.f32 %v5753_v35, %v5048_v39 }
 0x2e6   :  { %v1180_v16 = vadd.f32 %v7170_v38, %v5048_v39  ;;  %v6481_v38 = vld [vmem:[%s8284_s3 + $0x180] sm:$0xff]   ;;  %v6482_v39 = vld [vmem:[%s8284_s3 + $0x1c8] sm:$0xff]  }
 0x2e8   :  { %v5773_v40 = vpop.f32.mrb[12].mxu1 }
 0x2e9   :  { %v5774_v41 = vpop.f32.mrb[13].mxu1 }
 0x2ea   :  { %v5775_v43 = vadd.f32 %v5774_v41, %v5773_v40  ;;  %v5776_v45 = vpop.f32.mrb[14].mxu1  ;;  %v1312_v40 = vld [vmem:[#allocation3 + $0x1a] sm:$0xff] }
 0x2eb   :  { %v5777_v47 = vpop.f32.mrb[15].mxu1  ;;  %v7220_v41 = vld [vmem:[#allocation3 + $0x16] sm:$0xff] }
 0x2ec   :  { %v1218_v26 = vadd.f32 %v5775_v43, %v1161_v42  ;;  %v5778_v50 = vadd.f32 %v5777_v47, %v5776_v45  ;;  %v6484_v42 = vld [vmem:[%s8284_s3 + $0x1d0] sm:$0xff]  }
 0x2ee   :  { %v1221_v54 = vadd.f32 %v5778_v50, %v1164_v48  ;;  %vm1240_vm10 = vcmp.ge.f32.partialorder %v1218_v26, 0.0  ;;  %v1246_v55 = vmul.f32 0.01, %v1218_v26 }
 0x2f0   :  { %v5779_v56 = vpop.f32.mrb[16].mxu1  ;;  %v1252_v57 = vsel %vm1240_vm10, %v1218_v26, %v1246_v55  ;;  %vm1241_vm11 = vcmp.ge.f32.partialorder %v1221_v54, 0.0  ;;  %v1247_v58 = vmul.f32 0.01, %v1221_v54 }
 0x2f1   :  { %v5780_v59 = vpop.f32.mrb[17].mxu1  ;;  %1268 = vrot.lane.b32.xlu0 %v1252_v57, %s6733_s30  ;;  %1261 = vst.msk [vmem:[#allocation3 + $0x4] sm:$0xff] %vm611_vm2, %v1252_v57  ;;  %v6486_v57 = vld [vmem:[%s8284_s3 + $0x1d8] sm:$0xff]  }
 0x2f2   :  { %v5781_v62 = vadd.f32 %v5780_v59, %v5779_v56  ;;  %v5782_v63 = vpop.f32.mrb[18].mxu1  ;;  %v1253_v0 = vsel %vm1241_vm11, %v1221_v54, %v1247_v58  ;;  %v6485_v54 = vld [vmem:[%s8284_s3 + $0x190] sm:$0xff]   ;;  %v6487_v58 = vld [vmem:[%s8284_s3 + $0x198] sm:$0xff]  }
 0x2f3   :  { %v5783_v1 = vpop.f32.mrb[19].mxu1  ;;  %1270 = vrot.lane.b32.xlu1 %v1253_v0, %s6733_s30  ;;  %1262 = vst.msk [vmem:[#allocation3 + $0xc] sm:$0xff] %vm611_vm2, %v1253_v0 }
 0x2f4   :  { %v1226_v3 = vadd.f32 %v5781_v62, %v1169_v61  ;;  %v5784_v4 = vadd.f32 %v5783_v1, %v5782_v63  ;;  %v1331_v63 = vld [vmem:[#allocation3 + $0x36] sm:$0xff] }
 0x2f6   :  { %v1229_v5 = vadd.f32 %v5784_v4, %v1172_v2  ;;  %vm1242_vm12 = vcmp.ge.f32.partialorder %v1226_v3, 0.0  ;;  %v1248_v6 = vmul.f32 0.01, %v1226_v3  ;;  %v6489_v4 = vld [vmem:[%s8284_s3 + $0x1a0] sm:$0xff]  }
 0x2f8   :  { %v5785_v7 = vpop.f32.mrb[20].mxu1  ;;  %v1254_v8 = vsel %vm1242_vm12, %v1226_v3, %v1248_v6  ;;  %vm1243_vm14 = vcmp.ge.f32.partialorder %v1229_v5, 0.0  ;;  %v1249_v9 = vmul.f32 0.01, %v1229_v5  ;;  %v6490_v6 = vld [vmem:[%s8284_s3 + $0x1e8] sm:$0xff]   ;;  %vm1775_vm12 = vcmask 1041920  }
 0x2f9   :  { %v5786_v10 = vpop.f32.mrb[21].mxu1  ;;  %1264 = vst.msk [vmem:[#allocation3 + $0x14] sm:$0x1] %vm1263_vm13, %v1254_v8  ;;  %1272 = vrot.lane.b32.xlu0 %v1254_v8, %s6733_s30  ;;  %v6491_v8 = vld [vmem:[%s8284_s3 + $0x1a8] sm:$0xff]  }
 0x2fa   :  { %v5787_v12 = vadd.f32 %v5786_v10, %v5785_v7  ;;  %v5788_v13 = vpop.f32.mrb[22].mxu1  ;;  %v1255_v14 = vsel %vm1243_vm14, %v1229_v5, %v1249_v9  ;;  %v6492_v9 = vld [vmem:[%s8284_s3 + $0x1f0] sm:$0xff]  }
 0x2fb   :  { %v5789_v15 = vpop.f32.mrb[23].mxu1  ;;  %1283 = vst.msk [vmem:[#allocation3 + $0x24] sm:$0xff] %vm611_vm2, %v1255_v14  ;;  %1289 = vrot.lane.b32.xlu1 %v1255_v14, %s6733_s30  ;;  %v6493_v10 = vld [vmem:[%s8284_s3 + $0x1b0] sm:$0xff]  }
 0x2fc   :  { %v1234_v17 = vadd.f32 %v5787_v12, %v1177_v11  ;;  %v5790_v18 = vadd.f32 %v5789_v15, %v5788_v13  ;;  %v6494_v13 = vld [vmem:[%s8284_s3 + $0x1f8] sm:$0xff]  }
 0x2fd   :  { %v6495_v15 = vld [vmem:[%s8284_s3 + $0x1b8] sm:$0xff]  }
 0x2fe   :  { %v1237_v19 = vadd.f32 %v5790_v18, %v1180_v16  ;;  %vm1244_vm15 = vcmp.ge.f32.partialorder %v1234_v17, 0.0  ;;  %v1250_v20 = vmul.f32 0.01, %v1234_v17 }
 0x300   :  { %v1256_v21 = vsel %vm1244_vm15, %v1234_v17, %v1250_v20  ;;  %vm1245_vm1 = vcmp.ge.f32.partialorder %v1237_v19, 0.0  ;;  %v1251_v22 = vmul.f32 0.01, %v1237_v19  ;;  %v7228_v43 = vld [vmem:[#allocation3 + $0x14] sm:$0xff] }
 0x301   :  { %1291 = vrot.lane.b32.xlu0 %v1256_v21, %s6733_s30  ;;  %1284 = vst.msk [vmem:[#allocation3 + $0x2c] sm:$0xff] %vm611_vm2, %v1256_v21 }
 0x302   :  { %v1257_v23 = vsel %vm1245_vm1, %v1237_v19, %v1251_v22 }
 0x303   :  { %1285 = vst.msk [vmem:[#allocation3 + $0x34] sm:$0x1] %vm1263_vm13, %v1257_v23  ;;  %1293 = vrot.lane.b32.xlu1 %v1257_v23, %s6733_s30  ;;  %v1332_v23 = vld [vmem:[#allocation3 + $0x3e] sm:$0xff] }
 0x30a   :  { %v1323_v0 = vld [vmem:[#allocation3 + $0x34] sm:$0xff] }
 0x363   :  { %v1269_v28 = vpop.permute.xlu0 %1268 }
 0x364   :  { %1277 = vst.msk [vmem:[#allocation3 + $0x3] sm:$0xff] %vm813_vm9, %v1269_v28 }
 0x365   :  { %v1271_v29 = vpop.permute.xlu1 %1270 }
 0x366   :  { %1278 = vst.msk [vmem:[#allocation3 + $0xb] sm:$0xff] %vm813_vm9, %v1271_v29 }
 0x36b   :  { %v1301_v30 = vld [vmem:[#allocation3] sm:$0xff]  ;;  %v1273_v32 = vpop.permute.xlu0 %1272 }
 0x36c   :  { %v1309_v31 = vld [vmem:[#allocation3 + $0x2] sm:$0xff]  ;;  %1280 = vst.msk [vmem:[#allocation3 + $0x13] sm:$0x1] %vm1279_vm3, %v1273_v32 }
 0x36d   :  { %1755 = vst [vmem:[#allocation3] sm:$0xf] %v6732_v49  ;;  %v1302_v33 = vld [vmem:[#allocation3 + $0x8] sm:$0xff]  ;;  %v1290_v34 = vpop.permute.xlu1 %1289  ;;  %v1324_v32 = vld [vmem:[#allocation3 + $0x3c] sm:$0xff] }
 0x36e   :  { %v1310_v35 = vld [vmem:[#allocation3 + $0xa] sm:$0xff]  ;;  %1298 = vst.msk [vmem:[#allocation3 + $0x23] sm:$0xff] %vm813_vm9, %v1290_v34  ;;  %v1333_v37 = vpack.c.bf16 %v1302_v33, %v1301_v30  ;;  %v1348_v30 = vpack.c.bf16 %v1332_v23, %v1331_v63  ;;  %v1347_v33 = vpack.c.bf16 %v1324_v32, %v1323_v0  ;;  %v6496_v34 = vld [vmem:[%s8284_s3 + $0x240] sm:$0xff]  }
 0x36f   :  { %v1334_v36 = vpack.c.bf16 %v1310_v35, %v1309_v31  ;;  %v1325_v11 = vld [vmem:[#allocation3 + $0x6] sm:$0xff]  ;;  %v6497_v35 = vld [vmem:[%s8284_s3 + $0x200] sm:$0xff]   ;;  %5871 = vmatprep.subr.bf16.mxu0 %v6496_v34 }
 0x370   :  { %v1317_v17 = vld [vmem:[#allocation3 + $0x4] sm:$0xff]  ;;  %5872 = vmatpush3.bf16.msra.mxu0 %v6497_v35 }
 0x371   :  { %1642 = vmatprep.mubr.bf16.mxu1 %v1334_v36  ;;  %v6498_v36 = vld [vmem:[%s8284_s3 + $0x248] sm:$0xff]   ;;  %v6524_v32 = vld [vmem:[%s8284_s3 + $0x2f0] sm:$0xff]  }
 0x372   :  { %1643 = vmatmul.mubr.bf16.vlgmr.msra.gmra.mrb[24].mxu1 %v1333_v37  ;;  %v6499_v37 = vld [vmem:[%s8284_s3 + $0x208] sm:$0xff]   ;;  %5873 = vmatprep.subr.bf16.mxu0 %v6498_v36 }
 0x373   :  { %5832 = vmatpush3.bf16.msra.mxu1 %v6481_v38  ;;  %v1292_v45 = vpop.permute.xlu0 %1291  ;;  %v1311_v46 = vld [vmem:[#allocation3 + $0x12] sm:$0xff]  ;;  %v6500_v38 = vld [vmem:[%s8284_s3 + $0x250] sm:$0xff]  }
 0x374   :  { %5833 = vmatprep.subr.bf16.mxu1 %v6482_v39  ;;  %v1303_v47 = vld [vmem:[#allocation3 + $0x10] sm:$0xff]  ;;  %1299 = vst.msk [vmem:[#allocation3 + $0x2b] sm:$0xff] %vm813_vm9, %v1292_v45  ;;  %v1338_v26 = vpack.c.bf16 %v1312_v40, %v1311_v46  ;;  %5874 = vmatpush3.bf16.msra.mxu0 %v6499_v37  ;;  %v6501_v39 = vld [vmem:[%s8284_s3 + $0x210] sm:$0xff]   ;;  %v6512_v45 = vld [vmem:[%s8284_s3 + $0x2c8] sm:$0xff]  }
 0x375   :  { %v1326_v48 = vld [vmem:[#allocation3 + $0xe] sm:$0xff]  ;;  %v1294_v50 = vpop.permute.xlu1 %1293  ;;  %v1313_v52 = vld [vmem:[#allocation3 + $0x22] sm:$0xff]  ;;  %v1337_v56 = vpack.c.bf16 %v7133_v25, %v1303_v47  ;;  %v1308_v25 = vld [vmem:[#allocation3 + $0x38] sm:$0xff]  ;;  %5875 = vmatprep.subr.bf16.mxu0 %v6500_v38 }
 0x376   :  { %1756 = vst [vmem:[#allocation3 + $0x15] sm:$0xf] %v6732_v49  ;;  %v1305_v53 = vld [vmem:[#allocation3 + $0x20] sm:$0xff]  ;;  %1300 = vst.msk [vmem:[#allocation3 + $0x33] sm:$0x1] %vm1279_vm3, %v1294_v50  ;;  %1650 = vmatprep.mubr.bf16.mxu1 %v1338_v26  ;;  %v1336_v14 = vpack.c.bf16 %v1326_v48, %v1325_v11  ;;  %v1318_v16 = vld [vmem:[#allocation3 + $0xc] sm:$0xff] }
 0x377   :  { %v1328_v27 = vld [vmem:[#allocation3 + $0x1e] sm:$0xff]  ;;  %5834 = vmatpush3.bf16.msra.mxu1 %v6483_v24  ;;  %v1335_v18 = vpack.c.bf16 %v1318_v16, %v1317_v17  ;;  %v6502_v40 = vld [vmem:[%s8284_s3 + $0x258] sm:$0xff]   ;;  %v6514_v48 = vld [vmem:[%s8284_s3 + $0x2d0] sm:$0xff]  }
 0x378   :  { %v1320_v55 = vld [vmem:[#allocation3 + $0x1c] sm:$0xff]  ;;  %5835 = vmatprep.subr.bf16.mxu1 %v6484_v42  ;;  %v1340_v19 = vpack.c.bf16 %v1328_v27, %v7220_v41  ;;  %5876 = vmatpush3.bf16.msra.mxu0 %v6501_v39  ;;  %v6503_v41 = vld [vmem:[%s8284_s3 + $0x218] sm:$0xff]   ;;  %v6515_v50 = vld [vmem:[%s8284_s3 + $0x290] sm:$0xff]  }
 0x379   :  { %1777 = vst [vmem:[#allocation3 + $0x20] sm:$0xf] %v6732_v49  ;;  %v1339_v20 = vpack.c.bf16 %v1320_v55, %v7228_v43  ;;  %v6510_v24 = vld [vmem:[%s8284_s3 + $0x2c0] sm:$0xff]   ;;  %5877 = vmatprep.subr.bf16.mxu0 %v6502_v40  ;;  %v6513_v46 = vld [vmem:[%s8284_s3 + $0x288] sm:$0xff]   ;;  %v6508_v27 = vld [vmem:[%s8284_s3 + $0x270] sm:$0xff]  }
 0x37a   :  { %1651 = vmatmul.mubr.bf16.gmra.mrb[28].mxu1 %v1337_v56  ;;  %v6511_v42 = vld [vmem:[%s8284_s3 + $0x280] sm:$0xff]   ;;  %v6506_v26 = vld [vmem:[%s8284_s3 + $0x268] sm:$0xff]   ;;  %v6509_v55 = vld [vmem:[%s8284_s3 + $0x230] sm:$0xff]  }
 0x37b   :  { %5836 = vmatpush3.bf16.msra.mxu1 %v6485_v54  ;;  %v1314_v59 = vld [vmem:[#allocation3 + $0x2a] sm:$0xff]  ;;  %v6504_v43 = vld [vmem:[%s8284_s3 + $0x260] sm:$0xff]   ;;  %v6522_v16 = vld [vmem:[%s8284_s3 + $0x2e8] sm:$0xff]  }
 0x37c   :  { %5837 = vmatprep.subr.bf16.mxu1 %v6486_v57  ;;  %v1342_v61 = vpack.c.bf16 %v1314_v59, %v1313_v52  ;;  %v1306_v62 = vld [vmem:[#allocation3 + $0x28] sm:$0xff]  ;;  %5878 = vmatpush3.bf16.msra.mxu0 %v6503_v41  ;;  %v6505_v47 = vld [vmem:[%s8284_s3 + $0x220] sm:$0xff]   ;;  %v6507_v52 = vld [vmem:[%s8284_s3 + $0x228] sm:$0xff]  }
 0x37d   :  { %v1315_v1 = vld [vmem:[#allocation3 + $0x32] sm:$0xff]  ;;  %v1341_v5 = vpack.c.bf16 %v1306_v62, %v1305_v53  ;;  %v1329_v21 = vld [vmem:[#allocation3 + $0x26] sm:$0xff]  ;;  %5879 = vmatprep.subr.bf16.mxu0 %v6504_v43  ;;  %v7361_v17 = vld [vmem:[%s8283_s6 + $0x2] ss:$0 sm:$0xff] }
 0x37e   :  { %v1307_v2 = vld [vmem:[#allocation3 + $0x30] sm:$0xff]  ;;  %1657 = vmatprep.mubr.bf16.mxu1 %v1342_v61  ;;  %v1346_v7 = vpack.c.bf16 %v1316_v60, %v1315_v1  ;;  %v1321_v29 = vld [vmem:[#allocation3 + $0x24] sm:$0xff]  ;;  %v6526_v40 = vld [vmem:[%s8285_s4 + $0x40] sm:$0xff]  }
 0x37f   :  { %v1330_v3 = vld [vmem:[#allocation3 + $0x2e] sm:$0xff]  ;;  %5838 = vmatpush3.bf16.msra.mxu1 %v6487_v58  ;;  %v1345_v12 = vpack.c.bf16 %v1308_v25, %v1307_v2 }
 0x380   :  { %1778 = vst [vmem:[#allocation3 + $0x35] sm:$0xf] %v6732_v49  ;;  %5839 = vmatprep.subr.bf16.mxu1 %v6488_v51  ;;  %v1344_v22 = vpack.c.bf16 %v1330_v3, %v1329_v21  ;;  %v1322_v28 = vld [vmem:[#allocation3 + $0x2c] sm:$0xff]  ;;  %5880 = vmatpush3.bf16.msra.mxu0 %v6505_v47 }
 0x381   :  { %v1343_v31 = vpack.c.bf16 %v1322_v28, %v1321_v29  ;;  %v6516_v53 = vld [vmem:[%s8284_s3 + $0x2d8] sm:$0xff]   ;;  %5881 = vmatprep.subr.bf16.mxu0 %v6506_v26 }
 0x382   :  { %1658 = vmatmul.mubr.bf16.gmra.mrb[32].mxu1 %v1341_v5  ;;  %v6517_v54 = vld [vmem:[%s8284_s3 + $0x298] sm:$0xff]  }
 0x383   :  { %5840 = vmatpush3.bf16.msra.mxu1 %v6489_v4  ;;  %1665 = vmatprep.mubr.bf16.mxu1 %v1346_v7  ;;  %v6529_v47 = vld [vmem:[%s8284_s3 + $0x2b8] sm:$0xff]  }
 0x384   :  { %5841 = vmatprep.subr.bf16.mxu1 %v6490_v6  ;;  %5882 = vmatpush3.bf16.msra.mxu0 %v6507_v52 }
 0x385   :  { %5883 = vmatprep.subr.bf16.mxu0 %v6508_v27 }
 0x387   :  { %5842 = vmatpush3.bf16.msra.mxu1 %v6491_v8 }
 0x388   :  { %5843 = vmatprep.subr.bf16.mxu1 %v6492_v9  ;;  %5884 = vmatpush3.bf16.msra.mxu0 %v6509_v55 }
 0x38a   :  { %1666 = vmatmul.mubr.bf16.gmra.mrb[36].mxu1 %v1345_v12  ;;  %v6518_v12 = vld [vmem:[%s8284_s3 + $0x278] sm:$0xff]  }
 0x38b   :  { %5844 = vmatpush3.bf16.msra.mxu1 %v6493_v10  ;;  %1705 = vmatprep.mubr.bf16.mxu1 %v1336_v14  ;;  %v6520_v14 = vld [vmem:[%s8284_s3 + $0x2e0] sm:$0xff]  }
 0x38c   :  { %5845 = vmatprep.subr.bf16.mxu1 %v6494_v13  ;;  %v6519_v13 = vld [vmem:[%s8284_s3 + $0x238] sm:$0xff]   ;;  %5885 = vmatprep.subr.bf16.mxu0 %v6518_v12 }
 0x38d   :  { %5886 = vmatpush3.bf16.msra.mxu0 %v6519_v13 }
 0x38e   :  { %5951 = vmatprep.subr.bf16.mxu0 %v6526_v40 }
 0x38f   :  { %5846 = vmatpush3.bf16.msra.mxu1 %v6495_v15  ;;  %v6521_v15 = vld [vmem:[%s8284_s3 + $0x2a0] sm:$0xff]  }
 0x390   :  { %5911 = vmatprep.subr.bf16.mxu1 %v6510_v24 }
 0x392   :  { %1706 = vmatmul.mubr.bf16.vlgmr.msra.gmra.mrb[40].mxu1 %v1335_v18 }
 0x393   :  { %1713 = vmatprep.mubr.bf16.mxu1 %v1340_v19  ;;  %5912 = vmatpush3.bf16.msra.mxu1 %v6511_v42 }
 0x394   :  { %5913 = vmatprep.subr.bf16.mxu1 %v6512_v45 }
 0x397   :  { %5914 = vmatpush3.bf16.msra.mxu1 %v6513_v46  ;;  %v6528_v46 = vld [vmem:[%s8284_s3 + $0x2f8] sm:$0xff]  }
 0x398   :  { %5915 = vmatprep.subr.bf16.mxu1 %v6514_v48 }
 0x39a   :  { %1714 = vmatmul.mubr.bf16.gmra.mrb[44].mxu1 %v1339_v20  ;;  %v6523_v20 = vld [vmem:[%s8284_s3 + $0x2a8] sm:$0xff]  }
 0x39b   :  { %1720 = vmatprep.mubr.bf16.mxu1 %v1344_v22  ;;  %5916 = vmatpush3.bf16.msra.mxu1 %v6515_v50  ;;  %v6532_v50 = vld [vmem:[%s8285_s4 + $0xc0] sm:$0xff]  }
 0x39c   :  { %5917 = vmatprep.subr.bf16.mxu1 %v6516_v53 }
 0x39f   :  { %5918 = vmatpush3.bf16.msra.mxu1 %v6517_v54 }
 0x3a0   :  { %5919 = vmatprep.subr.bf16.mxu1 %v6520_v14  ;;  %v6527_v14 = vld [vmem:[%s8285_s4] sm:$0xff]  }
 0x3a2   :  { %1721 = vmatmul.mubr.bf16.gmra.mrb[48].mxu1 %v1343_v31 }
 0x3a3   :  { %1728 = vmatprep.mubr.bf16.mxu1 %v1348_v30  ;;  %5920 = vmatpush3.bf16.msra.mxu1 %v6521_v15 }
 0x3a4   :  { %5921 = vmatprep.subr.bf16.mxu1 %v6522_v16 }
 0x3a7   :  { %5922 = vmatpush3.bf16.msra.mxu1 %v6523_v20 }
 0x3a8   :  { %5923 = vmatprep.subr.bf16.mxu1 %v6524_v32 }
 0x3aa   :  { %1729 = vmatmul.mubr.bf16.gmra.mrb[52].mxu1 %v1347_v33  ;;  %v6525_v33 = vld [vmem:[%s8284_s3 + $0x2b0] sm:$0xff]  }
 0x3ab   :  { %5924 = vmatpush3.bf16.msra.mxu1 %v6525_v33 }
 0x3ac   :  { %5925 = vmatprep.subr.bf16.mxu1 %v6528_v46  ;;  %v6537_v46 = vld [vmem:[%s8285_s4 + $0x88] sm:$0xff]  }
 0x3af   :  { %5926 = vmatpush3.bf16.msra.mxu1 %v6529_v47  ;;  %v6539_v47 = vld [vmem:[%s8285_s4 + $0x18] sm:$0xff]  }
 0x3b0   :  { %5979 = vmatprep.subr.bf16.mxu1 %v6532_v50 }
 0x445   :  { %v5807_v56 = vpop.f32.mrb[24].mxu1 }
 0x446   :  { %v5808_v57 = vpop.f32.mrb[25].mxu1 }
 0x447   :  { %v5809_v58 = vadd.f32 %v5808_v57, %v5807_v56  ;;  %v5810_v51 = vpop.f32.mrb[26].mxu1 }
 0x448   :  { %v5811_v59 = vpop.f32.mrb[27].mxu1 }
 0x449   :  { %v5812_v60 = vadd.f32 %v5811_v59, %v5810_v51  ;;  %v1645_v21 = vadd.f32 %v5809_v58, %v7361_v17 }
 0x44b   :  { %v1648_v29 = vadd.f32 %v5812_v60, %v7361_v17 }
 0x44d   :  { %v5813_v25 = vpop.f32.mrb[28].mxu1 }
 0x44e   :  { %v5814_v61 = vpop.f32.mrb[29].mxu1 }
 0x44f   :  { %v5815_v62 = vadd.f32 %v5814_v61, %v5813_v25  ;;  %v5816_v63 = vpop.f32.mrb[30].mxu1 }
 0x450   :  { %v5817_v0 = vpop.f32.mrb[31].mxu1 }
 0x451   :  { %v1653_v41 = vadd.f32 %v5815_v62, %v7361_v17 }
 0x455   :  { %v5819_v1 = vpop.f32.mrb[32].mxu1 }
 0x456   :  { %v5820_v2 = vpop.f32.mrb[33].mxu1 }
 0x457   :  { %v7337_v3 = vadd.f32 %v5820_v2, %v5819_v1  ;;  %v5822_v4 = vpop.f32.mrb[34].mxu1 }
 0x458   :  { %v5823_v5 = vpop.f32.mrb[35].mxu1 }
 0x459   :  { %v7339_v6 = vadd.f32 %v5823_v5, %v5822_v4  ;;  %v1660_v54 = vadd.f32 %v7337_v3, %v7361_v17 }
 0x45b   :  { %v1663_v58 = vadd.f32 %v7339_v6, %v7361_v17 }
 0x45d   :  { %v5825_v7 = vpop.f32.mrb[36].mxu1 }
 0x45e   :  { %v5826_v8 = vpop.f32.mrb[37].mxu1 }
 0x45f   :  { %v7341_v9 = vadd.f32 %v5826_v8, %v5825_v7  ;;  %v5828_v10 = vpop.f32.mrb[38].mxu1 }
 0x460   :  { %v5829_v11 = vpop.f32.mrb[39].mxu1 }
 0x461   :  { %v1668_v1 = vadd.f32 %v7341_v9, %v7361_v17 }
 0x465   :  { %v5847_v18 = vpop.f32.mrb[40].mxu1 }
 0x466   :  { %v5848_v19 = vpop.f32.mrb[41].mxu1 }
 0x467   :  { %v5849_v22 = vadd.f32 %v5848_v19, %v5847_v18  ;;  %v5850_v23 = vpop.f32.mrb[42].mxu1 }
 0x468   :  { %v5851_v28 = vpop.f32.mrb[43].mxu1 }
 0x469   :  { %v1708_v30 = vadd.f32 %v5849_v22, %v1645_v21  ;;  %v5852_v31 = vadd.f32 %v5851_v28, %v5850_v23  ;;  %v6530_v21 = vld [vmem:[%s8285_s4 + $0x48] sm:$0xff]   ;;  %v6534_v28 = vld [vmem:[%s8285_s4 + $0x50] sm:$0xff]  }
 0x46a   :  { %v6531_v22 = vld [vmem:[%s8285_s4 + $0x8] sm:$0xff]  }
 0x46b   :  { %v1711_v34 = vadd.f32 %v5852_v31, %v1648_v29  ;;  %vm1736_vm4 = vcmp.ge.f32.partialorder %v1708_v30, 0.0  ;;  %v1742_v35 = vmul.f32 0.01, %v1708_v30  ;;  %v1808_v23 = vld [vmem:[#allocation3 + $0x1a] sm:$0xff] }
 0x46c   :  { %v1800_v29 = vld [vmem:[#allocation3 + $0x18] sm:$0xff] }
 0x46d   :  { %v5853_v36 = vpop.f32.mrb[44].mxu1  ;;  %v1748_v37 = vsel %vm1736_vm4, %v1708_v30, %v1742_v35  ;;  %vm1737_vm5 = vcmp.ge.f32.partialorder %v1711_v34, 0.0  ;;  %v1743_v38 = vmul.f32 0.01, %v1711_v34  ;;  %v1823_v30 = vld [vmem:[#allocation3 + $0x16] sm:$0xff] }
 0x46e   :  { %v5854_v39 = vpop.f32.mrb[45].mxu1  ;;  %1764 = vrot.lane.b32.xlu0 %v1748_v37, %s6733_s30  ;;  %1757 = vst.msk [vmem:[#allocation3 + $0x4] sm:$0xff] %vm611_vm2, %v1748_v37 }
 0x46f   :  { %v5855_v24 = vadd.f32 %v5854_v39, %v5853_v36  ;;  %v5856_v42 = vpop.f32.mrb[46].mxu1  ;;  %v1749_v43 = vsel %vm1737_vm5, %v1711_v34, %v1743_v38  ;;  %v6533_v38 = vld [vmem:[%s8285_s4 + $0x80] sm:$0xff]  }
 0x470   :  { %v5857_v45 = vpop.f32.mrb[47].mxu1  ;;  %1766 = vrot.lane.b32.xlu1 %v1749_v43, %s6733_s30  ;;  %1758 = vst.msk [vmem:[#allocation3 + $0xc] sm:$0xff] %vm611_vm2, %v1749_v43  ;;  %v6536_v42 = vld [vmem:[%s8285_s4 + $0xc8] sm:$0xff]  }
 0x471   :  { %v1716_v48 = vadd.f32 %v5855_v24, %v1653_v41  ;;  %v6535_v24 = vld [vmem:[%s8285_s4 + $0x10] sm:$0xff]   ;;  %v6538_v45 = vld [vmem:[%s8285_s4 + $0x58] sm:$0xff]  }
 0x473   :  { %vm1738_vm6 = vcmp.ge.f32.partialorder %v1716_v48, 0.0  ;;  %v1744_v26 = vmul.f32 0.01, %v1716_v48 }
 0x475   :  { %v5859_v52 = vpop.f32.mrb[48].mxu1  ;;  %v1750_v53 = vsel %vm1738_vm6, %v1716_v48, %v1744_v26  ;;  %v6540_v48 = vld [vmem:[%s8285_s4 + $0xd0] sm:$0xff]  }
 0x476   :  { %v5860_v27 = vpop.f32.mrb[49].mxu1  ;;  %1760 = vst.msk [vmem:[#allocation3 + $0x14] sm:$0x3] %vm1759_vm7, %v1750_v53  ;;  %1768 = vrot.lane.b32.xlu0 %v1750_v53, %s6733_s30  ;;  %v6541_v53 = vld [vmem:[%s8285_s4 + $0x90] sm:$0xff]  }
 0x477   :  { %v5861_v55 = vadd.f32 %v5860_v27, %v5859_v52  ;;  %v5862_v56 = vpop.f32.mrb[50].mxu1  ;;  %v6542_v27 = vld [vmem:[%s8285_s4 + $0x60] sm:$0xff]  }
 0x478   :  { %v5863_v57 = vpop.f32.mrb[51].mxu1 }
 0x479   :  { %v1723_v51 = vadd.f32 %v5861_v55, %v1660_v54  ;;  %v5864_v59 = vadd.f32 %v5863_v57, %v5862_v56  ;;  %v6543_v57 = vld [vmem:[%s8285_s4 + $0x20] sm:$0xff]  }
 0x47b   :  { %v1726_v60 = vadd.f32 %v5864_v59, %v1663_v58  ;;  %vm1739_vm8 = vcmp.ge.f32.partialorder %v1723_v51, 0.0  ;;  %v1745_v25 = vmul.f32 0.01, %v1723_v51  ;;  %v6544_v58 = vld [vmem:[%s8285_s4 + $0xd8] sm:$0xff]  }
 0x47d   :  { %v5865_v61 = vpop.f32.mrb[52].mxu1  ;;  %v1751_v62 = vsel %vm1739_vm8, %v1723_v51, %v1745_v25  ;;  %vm1740_vm10 = vcmp.ge.f32.partialorder %v1726_v60, 0.0  ;;  %v1746_v63 = vmul.f32 0.01, %v1726_v60  ;;  %vm4990_vm8 = vcmask 523270  }
 0x47e   :  { %v5866_v0 = vpop.f32.mrb[53].mxu1  ;;  %1779 = vst.msk [vmem:[#allocation3 + $0x24] sm:$0xff] %vm611_vm2, %v1751_v62  ;;  %1785 = vrot.lane.b32.xlu1 %v1751_v62, %s6733_s30 }
 0x47f   :  { %v5867_v2 = vadd.f32 %v5866_v0, %v5865_v61  ;;  %v5868_v3 = vpop.f32.mrb[54].mxu1  ;;  %v1752_v4 = vsel %vm1740_vm10, %v1726_v60, %v1746_v63  ;;  %v6545_v0 = vld [vmem:[%s8285_s4 + $0x98] sm:$0xff]   ;;  %vm3904_vm10 = vcmask 520192  }
 0x480   :  { %v5869_v5 = vpop.f32.mrb[55].mxu1  ;;  %1787 = vrot.lane.b32.xlu0 %v1752_v4, %s6733_s30  ;;  %1780 = vst.msk [vmem:[#allocation3 + $0x2c] sm:$0xff] %vm611_vm2, %v1752_v4  ;;  %v6548_v3 = vld [vmem:[%s8285_s4 + $0xe0] sm:$0xff]   ;;  %v6550_v4 = vld [vmem:[%s8285_s4 + $0x70] sm:$0xff]  }
 0x481   :  { %v1731_v6 = vadd.f32 %v5867_v2, %v1668_v1  ;;  %v6546_v1 = vld [vmem:[%s8285_s4 + $0x68] sm:$0xff]  }
 0x482   :  { %v6547_v2 = vld [vmem:[%s8285_s4 + $0x28] sm:$0xff]  }
 0x483   :  { %vm1741_vm11 = vcmp.ge.f32.partialorder %v1731_v6, 0.0  ;;  %v1747_v7 = vmul.f32 0.01, %v1731_v6 }
 0x485   :  { %v1753_v8 = vsel %vm1741_vm11, %v1731_v6, %v1747_v7 }
 0x486   :  { %1781 = vst.msk [vmem:[#allocation3 + $0x34] sm:$0x3] %vm1759_vm7, %v1753_v8  ;;  %1789 = vrot.lane.b32.xlu1 %v1753_v8, %s6733_s30  ;;  %v6728_v8 = vld [vmem:[#allocation3 + $0x3a] sm:$0xff] }
 0x4e0   :  { %v1765_v10 = vpop.permute.xlu0 %1764 }
 0x4e1   :  { %1773 = vst.msk [vmem:[#allocation3 + $0x3] sm:$0xff] %vm813_vm9, %v1765_v10 }
 0x4e2   :  { %v1767_v9 = vpop.permute.xlu1 %1766 }
 0x4e3   :  { %1774 = vst.msk [vmem:[#allocation3 + $0xb] sm:$0xff] %vm813_vm9, %v1767_v9 }
 0x4e8   :  { %v1769_v11 = vpop.permute.xlu0 %1768  ;;  %v1805_v12 = vld [vmem:[#allocation3 + $0x2] sm:$0xff] }
 0x4e9   :  { %v1797_v13 = vld [vmem:[#allocation3] sm:$0xff]  ;;  %1776 = vst.msk [vmem:[#allocation3 + $0x13] sm:$0x3] %vm1775_vm12, %v1769_v11 }
 0x4ea   :  { %3920 = vst [vmem:[#allocation3] sm:$0xf] %v6732_v49  ;;  %v1806_v15 = vld [vmem:[#allocation3 + $0xa] sm:$0xff] }
 0x4eb   :  { %v1798_v16 = vld [vmem:[#allocation3 + $0x8] sm:$0xff]  ;;  %v1830_v18 = vpack.c.bf16 %v1806_v15, %v1805_v12  ;;  %v6549_v15 = vld [vmem:[%s8285_s4 + $0xa0] sm:$0xff]  }
 0x4ec   :  { %v1821_v17 = vld [vmem:[#allocation3 + $0x6] sm:$0xff]  ;;  %v1829_v19 = vpack.c.bf16 %v1798_v16, %v1797_v13  ;;  %v1804_v13 = vld [vmem:[#allocation3 + $0x38] sm:$0xff] }
 0x4ed   :  { %v1813_v20 = vld [vmem:[#allocation3 + $0x4] sm:$0xff]  ;;  %2138 = vmatprep.mubr.bf16.mxu0 %v1830_v18  ;;  %v2278_v16 = vld [vmem:[%s8286_s1] sm:$0xff] }
 0x4ee   :  { %3921 = vst [vmem:[#allocation3 + $0x6] sm:$0xf] %v6732_v49  ;;  %2139 = vmatmul.mubr.bf16.vlgmr.msra.gmra.mrb[64].mxu0 %v1829_v19  ;;  %v6551_v18 = vld [vmem:[%s8285_s4 + $0x30] sm:$0xff]   ;;  %v6552_v19 = vld [vmem:[%s8285_s4 + $0xe8] sm:$0xff]  }
 0x4ef   :  { %5952 = vmatpush3.bf16.msra.mxu0 %v6527_v14  ;;  %v1827_v14 = vld [vmem:[#allocation3 + $0x36] sm:$0xff] }
 0x4f0   :  { %v1786_v31 = vpop.permute.xlu1 %1785  ;;  %5953 = vmatprep.subr.bf16.mxu0 %v6530_v21  ;;  %v1807_v32 = vld [vmem:[#allocation3 + $0x12] sm:$0xff] }
 0x4f1   :  { %v1822_v33 = vld [vmem:[#allocation3 + $0xe] sm:$0xff]  ;;  %1794 = vst.msk [vmem:[#allocation3 + $0x23] sm:$0xff] %vm813_vm9, %v1786_v31  ;;  %v1834_v35 = vpack.c.bf16 %v1808_v23, %v1807_v32 }
 0x4f2   :  { %v1814_v34 = vld [vmem:[#allocation3 + $0xc] sm:$0xff]  ;;  %v1832_v36 = vpack.c.bf16 %v1822_v33, %v1821_v17  ;;  %v1815_v40 = vld [vmem:[#allocation3 + $0x14] sm:$0xff]  ;;  %v1788_v41 = vpop.permute.xlu0 %1787 }
 0x4f3   :  { %v1831_v37 = vpack.c.bf16 %v1814_v34, %v1813_v20  ;;  %v1799_v39 = vld [vmem:[#allocation3 + $0x10] sm:$0xff]  ;;  %1795 = vst.msk [vmem:[#allocation3 + $0x2b] sm:$0xff] %vm813_vm9, %v1788_v41  ;;  %5954 = vmatpush3.bf16.msra.mxu0 %v6531_v22  ;;  %2146 = vmatprep.mubr.bf16.mxu0 %v1834_v35  ;;  %v2286_v17 = vld [vmem:[%s8286_s1 + $0x40] sm:$0xff]  ;;  %v6556_v31 = vld [vmem:[%s8285_s4 + $0xf0] sm:$0xff]  }
 0x4f4   :  { %3930 = vst [vmem:[#allocation3 + $0x10] sm:$0xf] %v6732_v49  ;;  %3931 = vst [vmem:[#allocation3 + $0x16] sm:$0xf] %v6732_v49  ;;  %2201 = vmatprep.mubr.bf16.mxu1 %v1832_v36  ;;  %5955 = vmatprep.subr.bf16.mxu0 %v6534_v28  ;;  %v1833_v43 = vpack.c.bf16 %v1800_v29, %v1799_v39  ;;  %v6554_v21 = vld [vmem:[%s8285_s4 + $0x78] sm:$0xff]   ;;  %v6729_v22 = vld [vmem:[#allocation3 + $0x3e] sm:$0xff]  ;;  %v5277_v28 = vcombine.high %v2278_v16, %v2286_v17 }
 0x4f5   :  { %2202 = vmatmul.mubr.bf16.vlgmr.msra.gmra.mrb[56].mxu1 %v1831_v37  ;;  %v1844_v23 = vpack.c.bf16 %v6729_v22, %v1827_v14  ;;  %v6553_v29 = vld [vmem:[%s8285_s4 + $0xa8] sm:$0xff]   ;;  %v6558_v33 = vld [vmem:[%s8285_s4 + $0x140] sm:$0xff]   ;;  %v6557_v36 = vld [vmem:[%s8285_s4 + $0xb0] sm:$0xff]   ;;  %v5276_v37 = vcombine.low %v2278_v16, %v2286_v17 }
 0x4f6   :  { %5980 = vmatpush3.bf16.msra.mxu1 %v6533_v38  ;;  %2147 = vmatmul.mubr.bf16.gmra.mrb[68].mxu0 %v1833_v43  ;;  %v2279_v34 = vld [vmem:[%s8286_s1 + $0x8] sm:$0xff]  ;;  %v2294_v38 = vld [vmem:[%s8286_s1 + $0x80] sm:$0xff]  ;;  %v6583_v14 = vld [vmem:[%s8285_s4 + $0x130] sm:$0xff]  }
 0x4f7   :  { %5956 = vmatpush3.bf16.msra.mxu0 %v6535_v24  ;;  %5981 = vmatprep.subr.bf16.mxu1 %v6536_v42  ;;  %v2287_v35 = vld [vmem:[%s8286_s1 + $0x48] sm:$0xff]  ;;  %v2302_v39 = vld [vmem:[%s8286_s1 + $0xc0] sm:$0xff]  ;;  %v6560_v42 = vld [vmem:[%s8285_s4 + $0xf8] sm:$0xff]  }
 0x4f8   :  { %v1790_v26 = vpop.permute.xlu1 %1789  ;;  %5957 = vmatprep.subr.bf16.mxu0 %v6538_v45  ;;  %v1824_v50 = vld [vmem:[#allocation3 + $0x1e] sm:$0xff]  ;;  %v5279_v45 = vcombine.high %v2279_v34, %v2287_v35  ;;  %v6586_v16 = vld [vmem:[%s8285_s4 + $0x178] sm:$0xff]   ;;  %v2304_v22 = vld [vmem:[%s8286_s1 + $0xd0] sm:$0xff] }
 0x4f9   :  { %v1816_v52 = vld [vmem:[#allocation3 + $0x1c] sm:$0xff]  ;;  %1796 = vst.msk [vmem:[#allocation3 + $0x33] sm:$0x3] %vm1775_vm12, %v1790_v26  ;;  %v1836_v54 = vpack.c.bf16 %v1824_v50, %v1823_v30  ;;  %v6555_v30 = vld [vmem:[%s8285_s4 + $0x38] sm:$0xff]   ;;  %v6566_v50 = vld [vmem:[%s8285_s4 + $0x150] sm:$0xff]  }
 0x4fa   :  { %v1835_v55 = vpack.c.bf16 %v1816_v52, %v1815_v40  ;;  %v1809_v56 = vld [vmem:[#allocation3 + $0x22] sm:$0xff]  ;;  %5982 = vmatpush3.bf16.msra.mxu1 %v6537_v46  ;;  %v1810_v51 = vld [vmem:[#allocation3 + $0x2a] sm:$0xff]  ;;  %v6559_v24 = vld [vmem:[%s8285_s4 + $0x100] sm:$0xff]   ;;  %v5293_v46 = vcombine.high %v2294_v38, %v2302_v39  ;;  %v5278_v52 = vcombine.low %v2279_v34, %v2287_v35 }
 0x4fb   :  { %v1801_v59 = vld [vmem:[#allocation3 + $0x20] sm:$0xff]  ;;  %v1802_v60 = vld [vmem:[#allocation3 + $0x28] sm:$0xff]  ;;  %5958 = vmatpush3.bf16.msra.mxu0 %v6539_v47  ;;  %2209 = vmatprep.mubr.bf16.mxu1 %v1836_v54  ;;  %v1838_v25 = vpack.c.bf16 %v1810_v51, %v1809_v56  ;;  %v6561_v47 = vld [vmem:[%s8285_s4 + $0xb8] sm:$0xff]  }
 0x4fc   :  { %v1837_v61 = vpack.c.bf16 %v1802_v60, %v1801_v59  ;;  %v1825_v62 = vld [vmem:[#allocation3 + $0x26] sm:$0xff]  ;;  %5983 = vmatprep.subr.bf16.mxu1 %v6540_v48  ;;  %5959 = vmatprep.subr.bf16.mxu0 %v6542_v27  ;;  %v6730_v40 = vld [vmem:[#allocation3 + $0x3c] sm:$0xff]  ;;  %v6570_v59 = vld [vmem:[%s8285_s4 + $0x158] sm:$0xff]  }
 0x4fd   :  { %v1817_v63 = vld [vmem:[#allocation3 + $0x24] sm:$0xff]  ;;  %2210 = vmatmul.mubr.bf16.gmra.mrb[60].mxu1 %v1835_v55  ;;  %2153 = vmatprep.mubr.bf16.mxu0 %v1838_v25  ;;  %v6564_v26 = vld [vmem:[%s8285_s4 + $0x1c0] sm:$0xff]   ;;  %v5292_v55 = vcombine.low %v2294_v38, %v2302_v39  ;;  %v2297_v38 = vld [vmem:[%s8286_s1 + $0x98] sm:$0xff] }
 0x4fe   :  { %4610 = vst [vmem:[#allocation3 + $0x24] sm:$0xf] %v6732_v49  ;;  %5984 = vmatpush3.bf16.msra.mxu1 %v6541_v53  ;;  %2154 = vmatmul.mubr.bf16.gmra.mrb[72].mxu0 %v1837_v61  ;;  %v6562_v43 = vld [vmem:[%s8285_s4 + $0x148] sm:$0xff]   ;;  %v6565_v54 = vld [vmem:[%s8285_s4 + $0x180] sm:$0xff]   ;;  %v7554_v56 = vld [vmem:[%s8286_s1 + $0x10] sm:$0xff] }
 0x4ff   :  { %5960 = vmatpush3.bf16.msra.mxu0 %v6543_v57  ;;  %5985 = vmatprep.subr.bf16.mxu1 %v6544_v58  ;;  %v6563_v48 = vld [vmem:[%s8285_s4 + $0x108] sm:$0xff]   ;;  %v7559_v57 = vld [vmem:[%s8286_s1 + $0x50] sm:$0xff]  ;;  %v6596_v35 = vld [vmem:[%s8285_s4 + $0x2c0] sm:$0xff]  }
 0x500   :  { %5961 = vmatprep.subr.bf16.mxu0 %v6546_v1  ;;  %v1811_v5 = vld [vmem:[#allocation3 + $0x32] sm:$0xff]  ;;  %v2295_v53 = vld [vmem:[%s8286_s1 + $0x88] sm:$0xff]  ;;  %v6567_v58 = vld [vmem:[%s8285_s4 + $0x110] sm:$0xff]   ;;  %v5281_v25 = vcombine.high %v7554_v56, %v7559_v57 }
 0x501   :  { %v1826_v6 = vld [vmem:[#allocation3 + $0x2e] sm:$0xff]  ;;  %v1842_v10 = vpack.c.bf16 %v6728_v8, %v1811_v5  ;;  %v2303_v27 = vld [vmem:[%s8286_s1 + $0xc8] sm:$0xff] }
 0x502   :  { %v1818_v7 = vld [vmem:[#allocation3 + $0x2c] sm:$0xff]  ;;  %v1840_v9 = vpack.c.bf16 %v1826_v6, %v1825_v62  ;;  %5986 = vmatpush3.bf16.msra.mxu1 %v6545_v0  ;;  %v1819_v32 = vld [vmem:[#allocation3 + $0x34] sm:$0xff]  ;;  %v6568_v51 = vld [vmem:[%s8285_s4 + $0x1c8] sm:$0xff]   ;;  %v5295_v60 = vcombine.high %v2295_v53, %v2303_v27 }
 0x503   :  { %v1839_v11 = vpack.c.bf16 %v1818_v7, %v1817_v63  ;;  %v1803_v12 = vld [vmem:[#allocation3 + $0x30] sm:$0xff]  ;;  %5962 = vmatpush3.bf16.msra.mxu0 %v6547_v2  ;;  %2161 = vmatprep.mubr.bf16.mxu0 %v1842_v10  ;;  %v1843_v41 = vpack.c.bf16 %v6730_v40, %v1819_v32  ;;  %v6569_v61 = vld [vmem:[%s8285_s4 + $0x188] sm:$0xff]   ;;  %v6572_v63 = vld [vmem:[%s8285_s4 + $0x1d0] sm:$0xff]  }
 0x504   :  { %2216 = vmatprep.mubr.bf16.mxu1 %v1840_v9  ;;  %5987 = vmatprep.subr.bf16.mxu1 %v6548_v3  ;;  %v1841_v20 = vpack.c.bf16 %v1804_v13, %v1803_v12  ;;  %v6571_v62 = vld [vmem:[%s8285_s4 + $0x118] sm:$0xff]   ;;  %v6574_v2 = vld [vmem:[%s8285_s4 + $0x160] sm:$0xff]   ;;  %v5294_v3 = vcombine.low %v2295_v53, %v2303_v27  ;;  %v6578_v8 = vld [vmem:[%s8285_s4 + $0x168] sm:$0xff]  }
 0x505   :  { %2217 = vmatmul.mubr.bf16.gmra.mrb[64].mxu1 %v1839_v11  ;;  %5963 = vmatprep.subr.bf16.mxu0 %v6550_v4  ;;  %v7584_v0 = vld [vmem:[%s8286_s1 + $0x18] sm:$0xff]  ;;  %v6573_v4 = vld [vmem:[%s8285_s4 + $0x190] sm:$0xff]   ;;  %v6575_v6 = vld [vmem:[%s8285_s4 + $0x120] sm:$0xff]  }
 0x506   :  { %5988 = vmatpush3.bf16.msra.mxu1 %v6549_v15  ;;  %2162 = vmatmul.mubr.bf16.gmra.mrb[76].mxu0 %v1841_v20  ;;  %v7589_v1 = vld [vmem:[%s8286_s1 + $0x58] sm:$0xff]  ;;  %v6579_v9 = vld [vmem:[%s8285_s4 + $0x128] sm:$0xff]   ;;  %v6580_v11 = vld [vmem:[%s8285_s4 + $0x1e0] sm:$0xff]  }
 0x507   :  { %5964 = vmatpush3.bf16.msra.mxu0 %v6551_v18  ;;  %5989 = vmatprep.subr.bf16.mxu1 %v6552_v19  ;;  %v5283_v5 = vcombine.high %v7584_v0, %v7589_v1  ;;  %v6576_v7 = vld [vmem:[%s8285_s4 + $0x1d8] sm:$0xff]   ;;  %v6582_v12 = vld [vmem:[%s8285_s4 + $0x170] sm:$0xff]   ;;  %v6581_v13 = vld [vmem:[%s8285_s4 + $0x1a0] sm:$0xff]  }
 0x508   :  { %5965 = vmatprep.subr.bf16.mxu0 %v6554_v21  ;;  %2224 = vmatprep.mubr.bf16.mxu1 %v1844_v23  ;;  %v6577_v10 = vld [vmem:[%s8285_s4 + $0x198] sm:$0xff]   ;;  %v6584_v15 = vld [vmem:[%s8285_s4 + $0x1e8] sm:$0xff]   ;;  %v6588_v19 = vld [vmem:[%s8285_s4 + $0x1f0] sm:$0xff]   ;;  %v5280_v23 = vcombine.low %v7554_v56, %v7559_v57 }
 0x509   :  { %3531 = vmatprep.mubr.bf16.mxu0 %v5277_v28  ;;  %v6585_v17 = vld [vmem:[%s8285_s4 + $0x1a8] sm:$0xff]   ;;  %v6587_v18 = vld [vmem:[%s8285_s4 + $0x138] sm:$0xff]   ;;  %v6590_v20 = vld [vmem:[%s8285_s4 + $0x240] sm:$0xff]  }
 0x50a   :  { %5990 = vmatpush3.bf16.msra.mxu1 %v6553_v29  ;;  %v2296_v21 = vld [vmem:[%s8286_s1 + $0x90] sm:$0xff]  ;;  %v6591_v29 = vld [vmem:[%s8285_s4 + $0x200] sm:$0xff]   ;;  %v6595_v34 = vld [vmem:[%s8285_s4 + $0x208] sm:$0xff]  }
 0x50b   :  { %5966 = vmatpush3.bf16.msra.mxu0 %v6555_v30  ;;  %5991 = vmatprep.subr.bf16.mxu1 %v6556_v31  ;;  %v6589_v28 = vld [vmem:[%s8285_s4 + $0x1b0] sm:$0xff]   ;;  %v6592_v30 = vld [vmem:[%s8285_s4 + $0x1f8] sm:$0xff]   ;;  %v6594_v31 = vld [vmem:[%s8285_s4 + $0x248] sm:$0xff]   ;;  %v5297_v32 = vcombine.high %v2296_v21, %v2304_v22 }
 0x50c   :  { %6007 = vmatprep.subr.bf16.mxu0 %v6558_v33  ;;  %v6593_v33 = vld [vmem:[%s8285_s4 + $0x1b8] sm:$0xff]   ;;  %v6597_v40 = vld [vmem:[%s8285_s4 + $0x280] sm:$0xff]   ;;  %v7720_v53 = vld [vmem:[%s8286_s1 + $0x28] sm:$0xff] }
 0x50d   :  { %2225 = vmatmul.mubr.bf16.gmra.mrb[68].mxu1 %v1843_v41  ;;  %v2305_v39 = vld [vmem:[%s8286_s1 + $0xd8] sm:$0xff]  ;;  %v5296_v41 = vcombine.low %v2296_v21, %v2304_v22  ;;  %v7725_v27 = vld [vmem:[%s8286_s1 + $0x68] sm:$0xff]  ;;  %v6605_v56 = vld [vmem:[%s8285_s4 + $0x290] sm:$0xff]  }
 0x50e   :  { %5992 = vmatpush3.bf16.msra.mxu1 %v6557_v36  ;;  %3532 = vmatmul.mubr.bf16.vlgmr.msra.gmra.mrb[80].mxu0 %v5276_v37  ;;  %v6598_v36 = vld [vmem:[%s8285_s4 + $0x250] sm:$0xff]   ;;  %v5282_v37 = vcombine.low %v7584_v0, %v7589_v1  ;;  %v5287_v57 = vcombine.high %v7720_v53, %v7725_v27  ;;  %v6616_v1 = vld [vmem:[%s8285_s4 + $0x2e8] sm:$0xff]   ;;  %v6629_v22 = vld [vmem:[%s8285_s4 + $0x380] sm:$0xff]  }
 0x50f   :  { %6008 = vmatpush3.bf16.msra.mxu0 %v6559_v24  ;;  %5993 = vmatprep.subr.bf16.mxu1 %v6560_v42  ;;  %v7690_v24 = vld [vmem:[%s8286_s1 + $0x20] sm:$0xff]  ;;  %v6615_v0 = vld [vmem:[%s8285_s4 + $0x230] sm:$0xff]   ;;  %v2307_v21 = vld [vmem:[%s8286_s1 + $0xe8] sm:$0xff] }
 0x510   :  { %6009 = vmatprep.subr.bf16.mxu0 %v6562_v43  ;;  %3580 = vmatprep.mubr.bf16.mxu1 %v5279_v45  ;;  %v7695_v42 = vld [vmem:[%s8286_s1 + $0x60] sm:$0xff]  ;;  %v6599_v43 = vld [vmem:[%s8285_s4 + $0x210] sm:$0xff]   ;;  %v6600_v45 = vld [vmem:[%s8285_s4 + $0x2c8] sm:$0xff]  }
 0x511   :  { %3539 = vmatprep.mubr.bf16.mxu0 %v5293_v46  ;;  %v6602_v46 = vld [vmem:[%s8285_s4 + $0x258] sm:$0xff]  }
 0x512   :  { %5994 = vmatpush3.bf16.msra.mxu1 %v6561_v47  ;;  %v5299_v47 = vcombine.high %v2297_v38, %v2305_v39 }
 0x513   :  { %6010 = vmatpush3.bf16.msra.mxu0 %v6563_v48  ;;  %6035 = vmatprep.subr.bf16.mxu1 %v6564_v26  ;;  %v5285_v48 = vcombine.high %v7690_v24, %v7695_v42  ;;  %v6601_v26 = vld [vmem:[%s8285_s4 + $0x288] sm:$0xff]  }
 0x514   :  { %6011 = vmatprep.subr.bf16.mxu0 %v6566_v50  ;;  %v6603_v50 = vld [vmem:[%s8285_s4 + $0x218] sm:$0xff]  }
 0x515   :  { %3581 = vmatmul.mubr.bf16.vlgmr.msra.gmra.mrb[72].mxu1 %v5278_v52  ;;  %v6604_v52 = vld [vmem:[%s8285_s4 + $0x2d0] sm:$0xff]  }
 0x516   :  { %6036 = vmatpush3.bf16.msra.mxu1 %v6565_v54  ;;  %3540 = vmatmul.mubr.bf16.gmra.mrb[84].mxu0 %v5292_v55  ;;  %v6606_v54 = vld [vmem:[%s8285_s4 + $0x260] sm:$0xff]   ;;  %v5298_v55 = vcombine.low %v2297_v38, %v2305_v39  ;;  %v7856_v38 = vld [vmem:[%s8286_s1 + $0x38] sm:$0xff] }
 0x517   :  { %6012 = vmatpush3.bf16.msra.mxu0 %v6567_v58  ;;  %6037 = vmatprep.subr.bf16.mxu1 %v6568_v51  ;;  %v6607_v58 = vld [vmem:[%s8285_s4 + $0x220] sm:$0xff]   ;;  %v6608_v51 = vld [vmem:[%s8285_s4 + $0x2d8] sm:$0xff]  }
 0x518   :  { %6013 = vmatprep.subr.bf16.mxu0 %v6570_v59  ;;  %3588 = vmatprep.mubr.bf16.mxu1 %v5295_v60  ;;  %v6610_v59 = vld [vmem:[%s8285_s4 + $0x268] sm:$0xff]   ;;  %v6609_v60 = vld [vmem:[%s8285_s4 + $0x298] sm:$0xff]  }
 0x519   :  { %3629 = vmatprep.mubr.bf16.mxu0 %v5281_v25  ;;  %v6611_v25 = vld [vmem:[%s8285_s4 + $0x228] sm:$0xff]   ;;  %v7861_v39 = vld [vmem:[%s8286_s1 + $0x78] sm:$0xff] }
 0x51a   :  { %6038 = vmatpush3.bf16.msra.mxu1 %v6569_v61  ;;  %v6612_v61 = vld [vmem:[%s8285_s4 + $0x2e0] sm:$0xff]  }
 0x51b   :  { %6014 = vmatpush3.bf16.msra.mxu0 %v6571_v62  ;;  %6039 = vmatprep.subr.bf16.mxu1 %v6572_v63  ;;  %v6614_v62 = vld [vmem:[%s8285_s4 + $0x270] sm:$0xff]   ;;  %v6613_v63 = vld [vmem:[%s8285_s4 + $0x2a0] sm:$0xff]  }
 0x51c   :  { %6015 = vmatprep.subr.bf16.mxu0 %v6574_v2  ;;  %v6618_v2 = vld [vmem:[%s8285_s4 + $0x278] sm:$0xff]  }
 0x51d   :  { %3589 = vmatmul.mubr.bf16.gmra.mrb[76].mxu1 %v5294_v3  ;;  %v6617_v3 = vld [vmem:[%s8285_s4 + $0x2a8] sm:$0xff]  }
 0x51e   :  { %6040 = vmatpush3.bf16.msra.mxu1 %v6573_v4  ;;  %3678 = vmatprep.mubr.bf16.mxu1 %v5283_v5  ;;  %v6619_v4 = vld [vmem:[%s8285_s4 + $0x238] sm:$0xff]   ;;  %v6620_v5 = vld [vmem:[%s8285_s4 + $0x2f0] sm:$0xff]  }
 0x51f   :  { %6016 = vmatpush3.bf16.msra.mxu0 %v6575_v6  ;;  %6041 = vmatprep.subr.bf16.mxu1 %v6576_v7  ;;  %v6622_v6 = vld [vmem:[%s8285_s4 + $0x340] sm:$0xff]  }
 0x520   :  { %6017 = vmatprep.subr.bf16.mxu0 %v6578_v8  ;;  %v2298_v7 = vld [vmem:[%s8286_s1 + $0xa0] sm:$0xff] }
 0x521   :  { %v2306_v8 = vld [vmem:[%s8286_s1 + $0xe0] sm:$0xff] }
 0x522   :  { %6042 = vmatpush3.bf16.msra.mxu1 %v6577_v10  ;;  %v5284_v10 = vcombine.low %v7690_v24, %v7695_v42  ;;  %v6637_v24 = vld [vmem:[%s8285_s4 + $0x390] sm:$0xff]   ;;  %v5291_v42 = vcombine.high %v7856_v38, %v7861_v39 }
 0x523   :  { %6018 = vmatpush3.bf16.msra.mxu0 %v6579_v9  ;;  %6043 = vmatprep.subr.bf16.mxu1 %v6580_v11  ;;  %v6621_v9 = vld [vmem:[%s8285_s4 + $0x2b0] sm:$0xff]   ;;  %v6623_v11 = vld [vmem:[%s8285_s4 + $0x300] sm:$0xff]  }
 0x524   :  { %6019 = vmatprep.subr.bf16.mxu0 %v6582_v12  ;;  %v6624_v12 = vld [vmem:[%s8285_s4 + $0x2f8] sm:$0xff]  }
 0x526   :  { %6044 = vmatpush3.bf16.msra.mxu1 %v6581_v13  ;;  %v6626_v13 = vld [vmem:[%s8285_s4 + $0x348] sm:$0xff]  }
 0x527   :  { %6020 = vmatpush3.bf16.msra.mxu0 %v6583_v14  ;;  %6045 = vmatprep.subr.bf16.mxu1 %v6584_v15  ;;  %v5301_v14 = vcombine.high %v2298_v7, %v2306_v8  ;;  %v6625_v15 = vld [vmem:[%s8285_s4 + $0x2b8] sm:$0xff]  }
 0x528   :  { %6021 = vmatprep.subr.bf16.mxu0 %v6586_v16  ;;  %v6627_v16 = vld [vmem:[%s8285_s4 + $0x308] sm:$0xff]  }
 0x52a   :  { %6046 = vmatpush3.bf16.msra.mxu1 %v6585_v17  ;;  %v6628_v17 = vld [vmem:[%s8285_s4 + $0x3c0] sm:$0xff]  }
 0x52b   :  { %6022 = vmatpush3.bf16.msra.mxu0 %v6587_v18  ;;  %6047 = vmatprep.subr.bf16.mxu1 %v6588_v19  ;;  %v6630_v18 = vld [vmem:[%s8285_s4 + $0x350] sm:$0xff]   ;;  %v5286_v19 = vcombine.low %v7720_v53, %v7725_v27  ;;  %v6648_v27 = vld [vmem:[%s8285_s4 + $0x3e8] sm:$0xff]  }
 0x52c   :  { %6063 = vmatprep.subr.bf16.mxu0 %v6590_v20  ;;  %v2299_v20 = vld [vmem:[%s8286_s1 + $0xa8] sm:$0xff]  ;;  %v6647_v53 = vld [vmem:[%s8285_s4 + $0x330] sm:$0xff]  }
 0x52e   :  { %6048 = vmatpush3.bf16.msra.mxu1 %v6589_v28  ;;  %3630 = vmatmul.mubr.bf16.vlgmr.msra.gmra.mrb[88].mxu0 %v5280_v23  ;;  %v5300_v23 = vcombine.low %v2298_v7, %v2306_v8  ;;  %v7826_v28 = vld [vmem:[%s8286_s1 + $0x30] sm:$0xff] }
 0x52f   :  { %6064 = vmatpush3.bf16.msra.mxu0 %v6591_v29  ;;  %6049 = vmatprep.subr.bf16.mxu1 %v6592_v30  ;;  %v7831_v29 = vld [vmem:[%s8286_s1 + $0x70] sm:$0xff] }
 0x530   :  { %6065 = vmatprep.subr.bf16.mxu0 %v6594_v31  ;;  %3637 = vmatprep.mubr.bf16.mxu0 %v5297_v32  ;;  %v6631_v30 = vld [vmem:[%s8285_s4 + $0x310] sm:$0xff]   ;;  %v6632_v31 = vld [vmem:[%s8285_s4 + $0x3c8] sm:$0xff]   ;;  %v6634_v32 = vld [vmem:[%s8285_s4 + $0x358] sm:$0xff]  }
 0x532   :  { %6050 = vmatpush3.bf16.msra.mxu1 %v6593_v33  ;;  %v5303_v33 = vcombine.high %v2299_v20, %v2307_v21 }
 0x533   :  { %6066 = vmatpush3.bf16.msra.mxu0 %v6595_v34  ;;  %6091 = vmatprep.subr.bf16.mxu1 %v6596_v35  ;;  %v5289_v34 = vcombine.high %v7826_v28, %v7831_v29  ;;  %v6633_v35 = vld [vmem:[%s8285_s4 + $0x388] sm:$0xff]  }
 0x534   :  { %6067 = vmatprep.subr.bf16.mxu0 %v6598_v36  ;;  %v6635_v36 = vld [vmem:[%s8285_s4 + $0x318] sm:$0xff]  }
 0x535   :  { %3679 = vmatmul.mubr.bf16.vlgmr.msra.gmra.mrb[80].mxu1 %v5282_v37  ;;  %v6636_v37 = vld [vmem:[%s8285_s4 + $0x3d0] sm:$0xff]  }
 0x536   :  { %6092 = vmatpush3.bf16.msra.mxu1 %v6597_v40  ;;  %3638 = vmatmul.mubr.bf16.gmra.mrb[92].mxu0 %v5296_v41  ;;  %v6638_v40 = vld [vmem:[%s8285_s4 + $0x360] sm:$0xff]   ;;  %v5302_v41 = vcombine.low %v2299_v20, %v2307_v21 }
 0x537   :  { %6068 = vmatpush3.bf16.msra.mxu0 %v6599_v43  ;;  %6093 = vmatprep.subr.bf16.mxu1 %v6600_v45  ;;  %v6639_v43 = vld [vmem:[%s8285_s4 + $0x320] sm:$0xff]   ;;  %v6640_v45 = vld [vmem:[%s8285_s4 + $0x3d8] sm:$0xff]  }
 0x538   :  { %6069 = vmatprep.subr.bf16.mxu0 %v6602_v46  ;;  %3686 = vmatprep.mubr.bf16.mxu1 %v5299_v47  ;;  %v6642_v46 = vld [vmem:[%s8285_s4 + $0x368] sm:$0xff]   ;;  %v6641_v47 = vld [vmem:[%s8285_s4 + $0x398] sm:$0xff]  }
 0x539   :  { %3727 = vmatprep.mubr.bf16.mxu0 %v5285_v48  ;;  %v6643_v48 = vld [vmem:[%s8285_s4 + $0x328] sm:$0xff]  }
 0x53a   :  { %6094 = vmatpush3.bf16.msra.mxu1 %v6601_v26  ;;  %v6644_v26 = vld [vmem:[%s8285_s4 + $0x3e0] sm:$0xff]  }
 0x53b   :  { %6070 = vmatpush3.bf16.msra.mxu0 %v6603_v50  ;;  %6095 = vmatprep.subr.bf16.mxu1 %v6604_v52  ;;  %v6646_v50 = vld [vmem:[%s8285_s4 + $0x370] sm:$0xff]   ;;  %v6645_v52 = vld [vmem:[%s8285_s4 + $0x3a0] sm:$0xff]  }
 0x53c   :  { %6071 = vmatprep.subr.bf16.mxu0 %v6606_v54  ;;  %v6650_v54 = vld [vmem:[%s8285_s4 + $0x378] sm:$0xff]  }
 0x53d   :  { %3687 = vmatmul.mubr.bf16.gmra.mrb[84].mxu1 %v5298_v55  ;;  %v6649_v55 = vld [vmem:[%s8285_s4 + $0x3a8] sm:$0xff]  }
 0x53e   :  { %6096 = vmatpush3.bf16.msra.mxu1 %v6605_v56  ;;  %3776 = vmatprep.mubr.bf16.mxu1 %v5287_v57  ;;  %v6651_v56 = vld [vmem:[%s8285_s4 + $0x338] sm:$0xff]   ;;  %v6652_v57 = vld [vmem:[%s8285_s4 + $0x3f0] sm:$0xff]  }
 0x53f   :  { %6072 = vmatpush3.bf16.msra.mxu0 %v6607_v58  ;;  %6097 = vmatprep.subr.bf16.mxu1 %v6608_v51  ;;  %v2300_v58 = vld [vmem:[%s8286_s1 + $0xb0] sm:$0xff] }
 0x540   :  { %6073 = vmatprep.subr.bf16.mxu0 %v6610_v59  ;;  %v2308_v51 = vld [vmem:[%s8286_s1 + $0xf0] sm:$0xff]  ;;  %v5288_v59 = vcombine.low %v7826_v28, %v7831_v29 }
 0x542   :  { %6098 = vmatpush3.bf16.msra.mxu1 %v6609_v60  ;;  %v6653_v60 = vld [vmem:[%s8285_s4 + $0x3b0] sm:$0xff]  }
 0x543   :  { %6074 = vmatpush3.bf16.msra.mxu0 %v6611_v25  ;;  %6099 = vmatprep.subr.bf16.mxu1 %v6612_v61  ;;  %v6654_v25 = vld [vmem:[%s8285_s4 + $0x3f8] sm:$0xff]   ;;  %v5305_v61 = vcombine.high %v2300_v58, %v2308_v51 }
 0x544   :  { %6075 = vmatprep.subr.bf16.mxu0 %v6614_v62  ;;  %v6655_v62 = vld [vmem:[%s8285_s4 + $0x3b8] sm:$0xff]  }
 0x546   :  { %6100 = vmatpush3.bf16.msra.mxu1 %v6613_v63  ;;  %v2301_v63 = vld [vmem:[%s8286_s1 + $0xb8] sm:$0xff] }
 0x547   :  { %6076 = vmatpush3.bf16.msra.mxu0 %v6615_v0  ;;  %6101 = vmatprep.subr.bf16.mxu1 %v6616_v1  ;;  %v2309_v0 = vld [vmem:[%s8286_s1 + $0xf8] sm:$0xff]  ;;  %v5290_v1 = vcombine.low %v7856_v38, %v7861_v39 }
 0x548   :  { %6077 = vmatprep.subr.bf16.mxu0 %v6618_v2  ;;  %v5304_v2 = vcombine.low %v2300_v58, %v2308_v51 }
 0x54a   :  { %6102 = vmatpush3.bf16.msra.mxu1 %v6617_v3  ;;  %v5307_v3 = vcombine.high %v2301_v63, %v2309_v0 }
 0x54b   :  { %6078 = vmatpush3.bf16.msra.mxu0 %v6619_v4  ;;  %6103 = vmatprep.subr.bf16.mxu1 %v6620_v5  ;;  %v5306_v4 = vcombine.low %v2301_v63, %v2309_v0 }
 0x54c   :  { %6119 = vmatprep.subr.bf16.mxu0 %v6622_v6 }
 0x54e   :  { %6104 = vmatpush3.bf16.msra.mxu1 %v6621_v9  ;;  %3728 = vmatmul.mubr.bf16.vlgmr.msra.gmra.mrb[96].mxu0 %v5284_v10 }
 0x54f   :  { %6120 = vmatpush3.bf16.msra.mxu0 %v6623_v11  ;;  %6105 = vmatprep.subr.bf16.mxu1 %v6624_v12  ;;  %v7951_v11 = vld [vmem:[%s8283_s6 + $0x3] ss:$0 sm:$0xff] }
 0x550   :  { %6121 = vmatprep.subr.bf16.mxu0 %v6626_v13  ;;  %3735 = vmatprep.mubr.bf16.mxu0 %v5301_v14 }
 0x552   :  { %6106 = vmatpush3.bf16.msra.mxu1 %v6625_v15 }
 0x553   :  { %6122 = vmatpush3.bf16.msra.mxu0 %v6627_v16  ;;  %6147 = vmatprep.subr.bf16.mxu1 %v6628_v17 }
 0x554   :  { %6123 = vmatprep.subr.bf16.mxu0 %v6630_v18 }
 0x555   :  { %3777 = vmatmul.mubr.bf16.vlgmr.msra.gmra.mrb[88].mxu1 %v5286_v19 }
 0x556   :  { %6148 = vmatpush3.bf16.msra.mxu1 %v6629_v22  ;;  %3736 = vmatmul.mubr.bf16.gmra.mrb[100].mxu0 %v5300_v23 }
 0x557   :  { %6124 = vmatpush3.bf16.msra.mxu0 %v6631_v30  ;;  %6149 = vmatprep.subr.bf16.mxu1 %v6632_v31 }
 0x558   :  { %6125 = vmatprep.subr.bf16.mxu0 %v6634_v32  ;;  %3784 = vmatprep.mubr.bf16.mxu1 %v5303_v33 }
 0x559   :  { %3825 = vmatprep.mubr.bf16.mxu0 %v5289_v34 }
 0x55a   :  { %6150 = vmatpush3.bf16.msra.mxu1 %v6633_v35 }
 0x55b   :  { %6126 = vmatpush3.bf16.msra.mxu0 %v6635_v36  ;;  %6151 = vmatprep.subr.bf16.mxu1 %v6636_v37 }
 0x55c   :  { %6127 = vmatprep.subr.bf16.mxu0 %v6638_v40 }
 0x55d   :  { %3785 = vmatmul.mubr.bf16.gmra.mrb[92].mxu1 %v5302_v41 }
 0x55e   :  { %6152 = vmatpush3.bf16.msra.mxu1 %v6637_v24  ;;  %3874 = vmatprep.mubr.bf16.mxu1 %v5291_v42 }
 0x55f   :  { %6128 = vmatpush3.bf16.msra.mxu0 %v6639_v43  ;;  %6153 = vmatprep.subr.bf16.mxu1 %v6640_v45 }
 0x560   :  { %6129 = vmatprep.subr.bf16.mxu0 %v6642_v46 }
 0x562   :  { %6154 = vmatpush3.bf16.msra.mxu1 %v6641_v47 }
 0x563   :  { %6130 = vmatpush3.bf16.msra.mxu0 %v6643_v48  ;;  %6155 = vmatprep.subr.bf16.mxu1 %v6644_v26 }
 0x564   :  { %6131 = vmatprep.subr.bf16.mxu0 %v6646_v50 }
 0x566   :  { %6156 = vmatpush3.bf16.msra.mxu1 %v6645_v52 }
 0x567   :  { %6132 = vmatpush3.bf16.msra.mxu0 %v6647_v53  ;;  %6157 = vmatprep.subr.bf16.mxu1 %v6648_v27 }
 0x568   :  { %6133 = vmatprep.subr.bf16.mxu0 %v6650_v54 }
 0x56a   :  { %6158 = vmatpush3.bf16.msra.mxu1 %v6649_v55 }
 0x56b   :  { %6134 = vmatpush3.bf16.msra.mxu0 %v6651_v56  ;;  %6159 = vmatprep.subr.bf16.mxu1 %v6652_v57 }
 0x56e   :  { %6160 = vmatpush3.bf16.msra.mxu1 %v6653_v60  ;;  %3826 = vmatmul.mubr.bf16.vlgmr.msra.gmra.mrb[104].mxu0 %v5288_v59 }
 0x56f   :  { %6161 = vmatprep.subr.bf16.mxu1 %v6654_v25  ;;  %3833 = vmatprep.mubr.bf16.mxu0 %v5305_v61 }
 0x572   :  { %6162 = vmatpush3.bf16.msra.mxu1 %v6655_v62 }
 0x575   :  { %3875 = vmatmul.mubr.bf16.vlgmr.msra.gmra.mrb[96].mxu1 %v5290_v1 }
 0x576   :  { %3834 = vmatmul.mubr.bf16.gmra.mrb[108].mxu0 %v5304_v2  ;;  %3882 = vmatprep.mubr.bf16.mxu1 %v5307_v3 }
 0x57d   :  { %3883 = vmatmul.mubr.bf16.gmra.mrb[100].mxu1 %v5306_v4 }
 0x5c1   :  { %v5887_v5 = vpop.f32.mrb[64].mxu0 }
 0x5c2   :  { %v5888_v6 = vpop.f32.mrb[65].mxu0 }
 0x5c3   :  { %v5889_v7 = vadd.f32 %v5888_v6, %v5887_v5  ;;  %v5890_v8 = vpop.f32.mrb[66].mxu0 }
 0x5c4   :  { %v5891_v10 = vpop.f32.mrb[67].mxu0 }
 0x5c5   :  { %v5892_v9 = vadd.f32 %v5891_v10, %v5890_v8  ;;  %v2141_v15 = vadd.f32 %v5889_v7, %v7951_v11 }
 0x5c7   :  { %v2144_v22 = vadd.f32 %v5892_v9, %v7951_v11 }
 0x5c8   :  { %v5927_v12 = vpop.f32.mrb[56].mxu1 }
 0x5c9   :  { %v5928_v13 = vpop.f32.mrb[57].mxu1  ;;  %v5893_v14 = vpop.f32.mrb[68].mxu0 }
 0x5ca   :  { %v5929_v16 = vadd.f32 %v5928_v13, %v5927_v12  ;;  %v5930_v17 = vpop.f32.mrb[58].mxu1  ;;  %v5894_v18 = vpop.f32.mrb[69].mxu0 }
 0x5cb   :  { %v5895_v19 = vadd.f32 %v5894_v18, %v5893_v14  ;;  %v5931_v20 = vpop.f32.mrb[59].mxu1  ;;  %v5896_v21 = vpop.f32.mrb[70].mxu0 }
 0x5cc   :  { %v2204_v23 = vadd.f32 %v5929_v16, %v2141_v15  ;;  %v5932_v28 = vadd.f32 %v5931_v20, %v5930_v17  ;;  %v5897_v29 = vpop.f32.mrb[71].mxu0  ;;  %v5275_v16 = vld [vmem:[%s8283_s6 + $0x4] ss:$0 sm:$0xff] }
 0x5cd   :  { %v2149_v37 = vadd.f32 %v5895_v19, %v7951_v11 }
 0x5ce   :  { %vm2232_vm14 = vcmp.ge.f32.partialorder %v2204_v23, 0.0  ;;  %v2238_v30 = vmul.f32 0.01, %v2204_v23  ;;  %v2207_v31 = vadd.f32 %v5932_v28, %v2144_v22 }
 0x5d0   :  { %v2244_v32 = vsel %vm2232_vm14, %v2204_v23, %v2238_v30  ;;  %vm2233_vm15 = vcmp.ge.f32.partialorder %v2207_v31, 0.0  ;;  %v2239_v33 = vmul.f32 0.01, %v2207_v31  ;;  %v5933_v34 = vpop.f32.mrb[60].mxu1  ;;  %v6656_v23 = vld [vmem:[%s8288_s5 + $0x40] sm:$0xff]  }
 0x5d1   :  { %2252 = vst.msk [vmem:[#allocation2 + $0x2] sm:$0xff] %vm611_vm2, %v2244_v32  ;;  %v5934_v35 = vpop.f32.mrb[61].mxu1  ;;  %v5899_v36 = vpop.f32.mrb[72].mxu0  ;;  %6175 = vmatprep.subr.bf16.mxu0 %v6656_v23 }
 0x5d2   :  { %v2245_v38 = vsel %vm2233_vm15, %v2207_v31, %v2239_v33  ;;  %v5935_v39 = vadd.f32 %v5934_v35, %v5933_v34  ;;  %v5936_v40 = vpop.f32.mrb[62].mxu1  ;;  %v5900_v41 = vpop.f32.mrb[73].mxu0 }
 0x5d3   :  { %2253 = vst.msk [vmem:[#allocation2 + $0xa] sm:$0xff] %vm611_vm2, %v2245_v38  ;;  %v5901_v24 = vadd.f32 %v5900_v41, %v5899_v36  ;;  %v5937_v42 = vpop.f32.mrb[63].mxu1  ;;  %v5902_v43 = vpop.f32.mrb[74].mxu0 }
 0x5d4   :  { %v2212_v45 = vadd.f32 %v5935_v39, %v2149_v37  ;;  %v5903_v46 = vpop.f32.mrb[75].mxu0 }
 0x5d5   :  { %v5904_v47 = vadd.f32 %v5903_v46, %v5902_v43  ;;  %v2156_v27 = vadd.f32 %v5901_v24, %v7951_v11 }
 0x5d6   :  { %vm2234_vm1 = vcmp.ge.f32.partialorder %v2212_v45, 0.0  ;;  %v2240_v48 = vmul.f32 0.01, %v2212_v45 }
 0x5d7   :  { %v2159_v59 = vadd.f32 %v5904_v47, %v7951_v11  ;;  %v6657_v47 = vld [vmem:[%s8288_s5 + $0x80] sm:$0xff]  }
 0x5d8   :  { %v2246_v26 = vsel %vm2234_vm1, %v2212_v45, %v2240_v48  ;;  %v5939_v50 = vpop.f32.mrb[64].mxu1  ;;  %6296 = vmatprep.subr.bf16.mxu1 %v6657_v47  ;;  %vm3932_vm1 = vcmask 522244  }
 0x5d9   :  { %2254 = vst.msk [vmem:[#allocation2 + $0x12] sm:$0x3] %vm1759_vm7, %v2246_v26  ;;  %v5940_v52 = vpop.f32.mrb[65].mxu1  ;;  %v5905_v53 = vpop.f32.mrb[76].mxu0  ;;  %v6658_v26 = vld [vmem:[%s8288_s5] sm:$0xff]   ;;  %6297 = vmatpush3.bf16.msra.mxu1 %v6657_v47 }
 0x5da   :  { %v5941_v54 = vadd.f32 %v5940_v52, %v5939_v50  ;;  %v5942_v55 = vpop.f32.mrb[66].mxu1  ;;  %v5906_v56 = vpop.f32.mrb[77].mxu0  ;;  %6176 = vmatpush3.bf16.msra.mxu0 %v6658_v26 }
 0x5db   :  { %v5907_v57 = vadd.f32 %v5906_v56, %v5905_v53  ;;  %v5943_v58 = vpop.f32.mrb[67].mxu1  ;;  %v5908_v51 = vpop.f32.mrb[78].mxu0  ;;  %v6659_v53 = vld [vmem:[%s8288_s5 + $0x48] sm:$0xff]  }
 0x5dc   :  { %v2219_v60 = vadd.f32 %v5941_v54, %v2156_v27  ;;  %v5944_v25 = vadd.f32 %v5943_v58, %v5942_v55  ;;  %v5909_v61 = vpop.f32.mrb[79].mxu0  ;;  %6177 = vmatprep.subr.bf16.mxu0 %v6659_v53  ;;  %v6660_v58 = vld [vmem:[%s8288_s5 + $0x88] sm:$0xff]  }
 0x5dd   :  { %v2164_v5 = vadd.f32 %v5907_v57, %v7951_v11  ;;  %6298 = vmatprep.subr.bf16.mxu1 %v6660_v58 }
 0x5de   :  { %vm2235_vm4 = vcmp.ge.f32.partialorder %v2219_v60, 0.0  ;;  %v2241_v62 = vmul.f32 0.01, %v2219_v60  ;;  %v2222_v63 = vadd.f32 %v5944_v25, %v2159_v59  ;;  %v6661_v59 = vld [vmem:[%s8288_s5 + $0x8] sm:$0xff]   ;;  %6299 = vmatpush3.bf16.msra.mxu1 %v6660_v58 }
 0x5df   :  { %6178 = vmatpush3.bf16.msra.mxu0 %v6661_v59 }
 0x5e0   :  { %v2247_v0 = vsel %vm2235_vm4, %v2219_v60, %v2241_v62  ;;  %vm2236_vm5 = vcmp.ge.f32.partialorder %v2222_v63, 0.0  ;;  %v2242_v1 = vmul.f32 0.01, %v2222_v63  ;;  %v5945_v2 = vpop.f32.mrb[68].mxu1  ;;  %vm3928_vm4 = vcmask 1042944  }
 0x5e1   :  { %2257 = vst.msk [vmem:[#allocation2 + $0x1a] sm:$0xff] %vm611_vm2, %v2247_v0  ;;  %v5946_v3 = vpop.f32.mrb[69].mxu1  ;;  %v5967_v4 = vpop.f32.mrb[80].mxu0 }
 0x5e2   :  { %v2248_v6 = vsel %vm2236_vm5, %v2222_v63, %v2242_v1  ;;  %v5947_v7 = vadd.f32 %v5946_v3, %v5945_v2  ;;  %v5948_v8 = vpop.f32.mrb[70].mxu1  ;;  %v5968_v10 = vpop.f32.mrb[81].mxu0  ;;  %v6662_v63 = vld [vmem:[%s8288_s5 + $0x50] sm:$0xff]   ;;  %vm3934_vm5 = vcmask 1047044  }
 0x5e3   :  { %2258 = vst.msk [vmem:[#allocation2 + $0x22] sm:$0xff] %vm611_vm2, %v2248_v6  ;;  %v5949_v9 = vpop.f32.mrb[71].mxu1  ;;  %v5969_v12 = vadd.f32 %v5968_v10, %v5967_v4  ;;  %v5970_v13 = vpop.f32.mrb[82].mxu0  ;;  %v6663_v1 = vld [vmem:[%s8288_s5 + $0x90] sm:$0xff]   ;;  %6179 = vmatprep.subr.bf16.mxu0 %v6662_v63  ;;  %v6667_v8 = vld [vmem:[%s8288_s5 + $0x18] sm:$0xff]   ;;  %v6668_v10 = vld [vmem:[%s8288_s5 + $0x60] sm:$0xff]  }
 0x5e4   :  { %v2227_v14 = vadd.f32 %v5947_v7, %v2164_v5  ;;  %v5971_v15 = vpop.f32.mrb[83].mxu0  ;;  %v6664_v4 = vld [vmem:[%s8288_s5 + $0x10] sm:$0xff]   ;;  %6300 = vmatprep.subr.bf16.mxu1 %v6663_v1  ;;  %v6665_v5 = vld [vmem:[%s8288_s5 + $0x58] sm:$0xff]   ;;  %v6669_v9 = vld [vmem:[%s8288_s5 + $0xa0] sm:$0xff]  }
 0x5e5   :  { %v5972_v17 = vadd.f32 %v5971_v15, %v5970_v13  ;;  %v3534_v19 = vadd.f32 %v5969_v12, %v5275_v16  ;;  %v6666_v7 = vld [vmem:[%s8288_s5 + $0x98] sm:$0xff]   ;;  %6180 = vmatpush3.bf16.msra.mxu0 %v6664_v4  ;;  %6301 = vmatpush3.bf16.msra.mxu1 %v6663_v1  ;;  %v6670_v12 = vld [vmem:[%s8288_s5 + $0x20] sm:$0xff]   ;;  %v6671_v13 = vld [vmem:[%s8288_s5 + $0x68] sm:$0xff]  }
 0x5e6   :  { %vm2237_vm6 = vcmp.ge.f32.partialorder %v2227_v14, 0.0  ;;  %v2243_v18 = vmul.f32 0.01, %v2227_v14  ;;  %6181 = vmatprep.subr.bf16.mxu0 %v6665_v5  ;;  %6302 = vmatprep.subr.bf16.mxu1 %v6666_v7 }
 0x5e7   :  { %v3537_v42 = vadd.f32 %v5972_v17, %v5275_v16 }
 0x5e8   :  { %v2249_v11 = vsel %vm2237_vm6, %v2227_v14, %v2243_v18  ;;  %v5995_v20 = vpop.f32.mrb[72].mxu1  ;;  %v2260_v21 = vld [vmem:[#allocation2] ss:$4 sm:$0xff]  ;;  %v2263_v22 = vld [vmem:[#allocation2 + $0x1] ss:$4 sm:$0xff] }
 0x5e9   :  { %2259 = vst.msk [vmem:[#allocation2 + $0x2a] sm:$0x3] %vm1759_vm7, %v2249_v11  ;;  %v5996_v28 = vpop.f32.mrb[73].mxu1  ;;  %v5973_v29 = vpop.f32.mrb[84].mxu0  ;;  %v2266_v30 = vmax.f32 %v2260_v21, %v2263_v22  ;;  %v2268_v31 = vld [vmem:[#allocation2 + $0x2] ss:$4 sm:$0xff]  ;;  %6182 = vmatpush3.bf16.msra.mxu0 %v6667_v8  ;;  %6303 = vmatpush3.bf16.msra.mxu1 %v6666_v7 }
 0x5ea   :  { %v2273_v32 = vld [vmem:[#allocation2 + $0x3] ss:$4 sm:$0xff]  ;;  %3908 = vst.msk [vmem:[#allocation2 + $0x10] sm:$0x3] %vm1759_vm7, %v6731_v44  ;;  %3903 = vst.msk [vmem:[#allocation2] sm:$0x3] %vm1759_vm7, %v6731_v44  ;;  %v5997_v35 = vadd.f32 %v5996_v28, %v5995_v20  ;;  %6183 = vmatprep.subr.bf16.mxu0 %v6668_v10  ;;  %6304 = vmatprep.subr.bf16.mxu1 %v6669_v9 }
 0x5eb   :  { %v2262_v33 = vld [vmem:[#allocation2 + $0x20] ss:$4 sm:$0xf]  ;;  %v2265_v34 = vld [vmem:[#allocation2 + $0x21] ss:$4 sm:$0xf]  ;;  %v2271_v38 = vmax.f32 %v2266_v30, %v2268_v31 }
 0x5ec   :  { %3905 = vst.msk [vmem:[#allocation2 + $0xb] sm:$0x1f] %vm3904_vm10, %v6731_v44  ;;  %3909 = vst.msk [vmem:[#allocation2 + $0x1b] sm:$0x1f] %vm3904_vm10, %v6731_v44  ;;  %v5998_v36 = vpop.f32.mrb[74].mxu1  ;;  %v5974_v37 = vpop.f32.mrb[85].mxu0  ;;  %v7979_v39 = vadd.f32 %v5997_v35, %v3534_v19  ;;  %v2267_v50 = vmax.f32 %v2262_v33, %v2265_v34 }
 0x5ed   :  { %v5999_v40 = vpop.f32.mrb[75].mxu1  ;;  %v5975_v41 = vadd.f32 %v5974_v37, %v5973_v29  ;;  %v5976_v24 = vpop.f32.mrb[86].mxu0  ;;  %v2276_v46 = vmax.f32 %v2271_v38, %v2273_v32  ;;  %vm3922_vm7 = vcmask 518144   ;;  %v6672_v14 = vld [vmem:[%s8288_s5 + $0xa8] sm:$0xff]   ;;  %6184 = vmatpush3.bf16.msra.mxu0 %v6670_v12  ;;  %6305 = vmatpush3.bf16.msra.mxu1 %v6669_v9 }
 0x5ee   :  { %v6000_v43 = vadd.f32 %v5999_v40, %v5998_v36  ;;  %v5977_v45 = vpop.f32.mrb[87].mxu0  ;;  %6185 = vmatprep.subr.bf16.mxu0 %v6671_v13  ;;  %6306 = vmatprep.subr.bf16.mxu1 %v6672_v14 }
 0x5ef   :  { %v5978_v48 = vadd.f32 %v5977_v45, %v5976_v24  ;;  %5607 = vst.msk [vmem:[%s8287_s7 + $0xa] sm:$0xc0] %vm4990_vm8, %v2276_v46  ;;  %v3542_v56 = vadd.f32 %v5975_v41, %v5275_v16  ;;  %vm4253_vm8 = vcmask 521216  }
 0x5f0   :  { %v3586_v52 = vadd.f32 %v6000_v43, %v3537_v42  ;;  %4985 = vst.msk [vmem:[%s8287_s7] sm:$0x1f] %vm3904_vm10, %v2276_v46  ;;  %v2270_v27 = vld [vmem:[#allocation2 + $0x22] ss:$4 sm:$0xf]  ;;  %v6001_v57 = vpop.f32.mrb[76].mxu1 }
 0x5f1   :  { %v2275_v54 = vld [vmem:[#allocation2 + $0x23] ss:$4 sm:$0xf]  ;;  %v2272_v55 = vmax.f32 %v2267_v50, %v2270_v27  ;;  %v6002_v51 = vpop.f32.mrb[77].mxu1  ;;  %v3545_v25 = vadd.f32 %v5978_v48, %v5275_v16  ;;  %6307 = vmatpush3.bf16.msra.mxu1 %v6672_v14 }
 0x5f2   :  { %v6003_v61 = vadd.f32 %v6002_v51, %v6001_v57  ;;  %v6004_v62 = vpop.f32.mrb[78].mxu1 }
 0x5f3   :  { %v2277_v60 = vmax.f32 %v2272_v55, %v2275_v54  ;;  %v6005_v0 = vpop.f32.mrb[79].mxu1 }
 0x5f4   :  { %v3591_v2 = vadd.f32 %v6003_v61, %v3542_v56  ;;  %v6006_v3 = vadd.f32 %v6005_v0, %v6004_v62 }
 0x5f5   :  { %5608 = vst.msk [vmem:[%s8287_s7 + $0x12] sm:$0x7] %vm3922_vm7, %v2277_v60 }
 0x5f6   :  { %v3594_v6 = vadd.f32 %v6006_v3, %v3545_v25 }
 0x601   :  { %v6023_v15 = vpop.f32.mrb[88].mxu0 }
 0x602   :  { %v6024_v16 = vpop.f32.mrb[89].mxu0 }
 0x603   :  { %v6025_v17 = vadd.f32 %v6024_v16, %v6023_v15  ;;  %v6026_v18 = vpop.f32.mrb[90].mxu0 }
 0x604   :  { %v6027_v11 = vpop.f32.mrb[91].mxu0 }
 0x605   :  { %v3632_v19 = vadd.f32 %v6025_v17, %v7979_v39  ;;  %v6028_v20 = vadd.f32 %v6027_v11, %v6026_v18 }
 0x607   :  { %v3635_v21 = vadd.f32 %v6028_v20, %v3586_v52 }
 0x608   :  { %v6051_v22 = vpop.f32.mrb[80].mxu1 }
 0x609   :  { %v6052_v23 = vpop.f32.mrb[81].mxu1  ;;  %v6029_v28 = vpop.f32.mrb[92].mxu0 }
 0x60a   :  { %v6053_v29 = vadd.f32 %v6052_v23, %v6051_v22  ;;  %v6054_v30 = vpop.f32.mrb[82].mxu1  ;;  %v6030_v31 = vpop.f32.mrb[93].mxu0 }
 0x60b   :  { %v6031_v32 = vadd.f32 %v6030_v31, %v6029_v28  ;;  %v6055_v33 = vpop.f32.mrb[83].mxu1  ;;  %v6032_v34 = vpop.f32.mrb[94].mxu0 }
 0x60c   :  { %v3681_v35 = vadd.f32 %v6053_v29, %v3632_v19  ;;  %v6056_v36 = vadd.f32 %v6055_v33, %v6054_v30  ;;  %v6033_v37 = vpop.f32.mrb[95].mxu0 }
 0x60d   :  { %v3640_v38 = vadd.f32 %v6031_v32, %v3591_v2  ;;  %v6034_v40 = vadd.f32 %v6033_v37, %v6032_v34 }
 0x60e   :  { %v3684_v41 = vadd.f32 %v6056_v36, %v3635_v21 }
 0x60f   :  { %v3643_v24 = vadd.f32 %v6034_v40, %v3594_v6 }
 0x610   :  { %v6057_v42 = vpop.f32.mrb[84].mxu1 }
 0x611   :  { %v6058_v39 = vpop.f32.mrb[85].mxu1 }
 0x612   :  { %v6059_v43 = vadd.f32 %v6058_v39, %v6057_v42  ;;  %v6060_v45 = vpop.f32.mrb[86].mxu1 }
 0x613   :  { %v6061_v46 = vpop.f32.mrb[87].mxu1 }
 0x614   :  { %v3689_v47 = vadd.f32 %v6059_v43, %v3640_v38  ;;  %v6062_v48 = vadd.f32 %v6061_v46, %v6060_v45 }
 0x616   :  { %v3692_v26 = vadd.f32 %v6062_v48, %v3643_v24 }
 0x621   :  { %v6079_v50 = vpop.f32.mrb[96].mxu0 }
 0x622   :  { %v6080_v52 = vpop.f32.mrb[97].mxu0 }
 0x623   :  { %v6081_v53 = vadd.f32 %v6080_v52, %v6079_v50  ;;  %v6082_v27 = vpop.f32.mrb[98].mxu0 }
 0x624   :  { %v6083_v54 = vpop.f32.mrb[99].mxu0 }
 0x625   :  { %v3730_v55 = vadd.f32 %v6081_v53, %v3681_v35  ;;  %v6084_v56 = vadd.f32 %v6083_v54, %v6082_v27 }
 0x627   :  { %v3733_v57 = vadd.f32 %v6084_v56, %v3684_v41 }
 0x628   :  { %v6107_v58 = vpop.f32.mrb[88].mxu1 }
 0x629   :  { %v6108_v51 = vpop.f32.mrb[89].mxu1  ;;  %v6085_v59 = vpop.f32.mrb[100].mxu0 }
 0x62a   :  { %v6109_v60 = vadd.f32 %v6108_v51, %v6107_v58  ;;  %v6110_v25 = vpop.f32.mrb[90].mxu1  ;;  %v6086_v61 = vpop.f32.mrb[101].mxu0 }
 0x62b   :  { %v6087_v62 = vadd.f32 %v6086_v61, %v6085_v59  ;;  %v6111_v63 = vpop.f32.mrb[91].mxu1  ;;  %v6088_v0 = vpop.f32.mrb[102].mxu0  ;;  %v6673_v59 = vld [vmem:[%s8288_s5 + $0x28] sm:$0xff]   ;;  %v6678_v61 = vld [vmem:[%s8288_s5 + $0xb8] sm:$0xff]  }
 0x62c   :  { %v3779_v1 = vadd.f32 %v6109_v60, %v3730_v55  ;;  %v6112_v2 = vadd.f32 %v6111_v63, %v6110_v25  ;;  %v6089_v3 = vpop.f32.mrb[103].mxu0  ;;  %v6674_v60 = vld [vmem:[%s8288_s5 + $0x70] sm:$0xff]   ;;  %6186 = vmatpush3.bf16.msra.mxu0 %v6673_v59  ;;  %v6677_v63 = vld [vmem:[%s8288_s5 + $0x78] sm:$0xff]  }
 0x62d   :  { %v3738_v4 = vadd.f32 %v6087_v62, %v3689_v47  ;;  %v6090_v5 = vadd.f32 %v6089_v3, %v6088_v0  ;;  %v6675_v25 = vld [vmem:[%s8288_s5 + $0xb0] sm:$0xff]   ;;  %6187 = vmatprep.subr.bf16.mxu0 %v6674_v60 }
 0x62e   :  { %v3782_v6 = vadd.f32 %v6112_v2, %v3733_v57  ;;  %6308 = vmatprep.subr.bf16.mxu1 %v6675_v25  ;;  %v6676_v62 = vld [vmem:[%s8288_s5 + $0x30] sm:$0xff]   ;;  %v6679_v2 = vld [vmem:[%s8288_s5 + $0x38] sm:$0xff]  }
 0x62f   :  { %v3741_v7 = vadd.f32 %v6090_v5, %v3692_v26  ;;  %6309 = vmatpush3.bf16.msra.mxu1 %v6675_v25  ;;  %v6701_v25 = vld [vmem:[%s8288_s5 + $0xf8] sm:$0xff]  }
 0x630   :  { %v6113_v8 = vpop.f32.mrb[92].mxu1  ;;  %6310 = vmatprep.subr.bf16.mxu1 %v6678_v61  ;;  %6188 = vmatpush3.bf16.msra.mxu0 %v6676_v62 }
 0x631   :  { %v6114_v10 = vpop.f32.mrb[93].mxu1  ;;  %6189 = vmatprep.subr.bf16.mxu0 %v6677_v63 }
 0x632   :  { %v6115_v9 = vadd.f32 %v6114_v10, %v6113_v8  ;;  %v6116_v12 = vpop.f32.mrb[94].mxu1  ;;  %v3941_v10 = vld [vmem:[#allocation3 + $0xa] sm:$0xff] }
 0x633   :  { %v6117_v13 = vpop.f32.mrb[95].mxu1  ;;  %6311 = vmatpush3.bf16.msra.mxu1 %v6678_v61 }
 0x634   :  { %v3787_v14 = vadd.f32 %v6115_v9, %v3738_v4  ;;  %v6118_v15 = vadd.f32 %v6117_v13, %v6116_v12  ;;  %6190 = vmatpush3.bf16.msra.mxu0 %v6679_v2  ;;  %v3937_v9 = vld [vmem:[#allocation3 + $0x8] sm:$0xff]  ;;  %v3947_v12 = vld [vmem:[#allocation3 + $0x1c] sm:$0xff]  ;;  %v6703_v2 = vld [vmem:[%s8288_s5 + $0x178] sm:$0xff]  }
 0x635   :  { %v3943_v13 = vld [vmem:[#allocation3 + $0x1a] sm:$0xff] }
 0x636   :  { %v3790_v16 = vadd.f32 %v6118_v15, %v3741_v7 }
 0x641   :  { %v6135_v17 = vpop.f32.mrb[104].mxu0 }
 0x642   :  { %v6136_v18 = vpop.f32.mrb[105].mxu0 }
 0x643   :  { %v6137_v11 = vadd.f32 %v6136_v18, %v6135_v17  ;;  %v6138_v19 = vpop.f32.mrb[106].mxu0 }
 0x644   :  { %v6139_v20 = vpop.f32.mrb[107].mxu0 }
 0x645   :  { %v3828_v21 = vadd.f32 %v6137_v11, %v3779_v1  ;;  %v6140_v22 = vadd.f32 %v6139_v20, %v6138_v19 }
 0x647   :  { %v3831_v23 = vadd.f32 %v6140_v22, %v3782_v6 }
 0x648   :  { %v6163_v28 = vpop.f32.mrb[96].mxu1 }
 0x649   :  { %v6164_v29 = vpop.f32.mrb[97].mxu1  ;;  %v6141_v30 = vpop.f32.mrb[108].mxu0 }
 0x64a   :  { %v6165_v31 = vadd.f32 %v6164_v29, %v6163_v28  ;;  %v6166_v32 = vpop.f32.mrb[98].mxu1  ;;  %v6142_v33 = vpop.f32.mrb[109].mxu0 }
 0x64b   :  { %v6143_v34 = vadd.f32 %v6142_v33, %v6141_v30  ;;  %v6167_v35 = vpop.f32.mrb[99].mxu1  ;;  %v6144_v36 = vpop.f32.mrb[110].mxu0  ;;  %v6680_v30 = vld [vmem:[%s8288_s5 + $0x100] sm:$0xff]  }
 0x64c   :  { %v3877_v37 = vadd.f32 %v6165_v31, %v3828_v21  ;;  %v6168_v38 = vadd.f32 %v6167_v35, %v6166_v32  ;;  %v6145_v40 = vpop.f32.mrb[111].mxu0  ;;  %v6681_v31 = vld [vmem:[%s8288_s5 + $0xc0] sm:$0xff]   ;;  %v6682_v32 = vld [vmem:[%s8288_s5 + $0x108] sm:$0xff]   ;;  %6213 = vmatprep.subr.bf16.mxu0 %v6680_v30 }
 0x64d   :  { %v3836_v41 = vadd.f32 %v6143_v34, %v3787_v14  ;;  %v6146_v24 = vadd.f32 %v6145_v40, %v6144_v36  ;;  %v3939_v14 = vld [vmem:[#allocation3 + $0x18] sm:$0xff]  ;;  %v6688_v34 = vld [vmem:[%s8288_s5 + $0x148] sm:$0xff]   ;;  %v6684_v36 = vld [vmem:[%s8288_s5 + $0x110] sm:$0xff]  }
 0x64e   :  { %vm3891_vm11 = vcmp.ge.f32.partialorder %v3877_v37, 0.0  ;;  %v3895_v42 = vmul.f32 0.01, %v3877_v37  ;;  %v3880_v39 = vadd.f32 %v6168_v38, %v3831_v23  ;;  %v6685_v33 = vld [vmem:[%s8288_s5 + $0x140] sm:$0xff]   ;;  %v6683_v35 = vld [vmem:[%s8288_s5 + $0xc8] sm:$0xff]   ;;  %v6686_v38 = vld [vmem:[%s8288_s5 + $0xd0] sm:$0xff]  }
 0x64f   :  { %v3839_v43 = vadd.f32 %v6146_v24, %v3790_v16  ;;  %6316 = vmatprep.subr.bf16.mxu1 %v6685_v33  ;;  %v6687_v40 = vld [vmem:[%s8288_s5 + $0x118] sm:$0xff]  }
 0x650   :  { %v3899_v45 = vsel %vm3891_vm11, %v3877_v37, %v3895_v42  ;;  %vm3892_vm12 = vcmp.ge.f32.partialorder %v3880_v39, 0.0  ;;  %v3896_v46 = vmul.f32 0.01, %v3880_v39  ;;  %v6169_v47 = vpop.f32.mrb[100].mxu1  ;;  %v6691_v37 = vld [vmem:[%s8288_s5 + $0x150] sm:$0xff]   ;;  %v6689_v24 = vld [vmem:[%s8288_s5 + $0xd8] sm:$0xff]  }
 0x651   :  { %3906 = vst.msk [vmem:[#allocation2 + $0x2] sm:$0xff] %vm611_vm2, %v3899_v45  ;;  %v6170_v48 = vpop.f32.mrb[101].mxu1  ;;  %v6690_v42 = vld [vmem:[%s8288_s5 + $0x120] sm:$0xff]   ;;  %v6695_v45 = vld [vmem:[%s8288_s5 + $0xe8] sm:$0xff]   ;;  %vm6734_vm11 = vmmov 0  }
 0x652   :  { %v3900_v26 = vsel %vm3892_vm12, %v3880_v39, %v3896_v46  ;;  %v6171_v50 = vadd.f32 %v6170_v48, %v6169_v47  ;;  %v6172_v52 = vpop.f32.mrb[102].mxu1  ;;  %v6692_v39 = vld [vmem:[%s8288_s5 + $0xe0] sm:$0xff]   ;;  %v6696_v46 = vld [vmem:[%s8288_s5 + $0x130] sm:$0xff]   ;;  %v6700_v48 = vld [vmem:[%s8288_s5 + $0x168] sm:$0xff]  }
 0x653   :  { %3907 = vst.msk [vmem:[#allocation2 + $0xa] sm:$0x1] %vm1263_vm13, %v3900_v26  ;;  %v6173_v53 = vpop.f32.mrb[103].mxu1  ;;  %v6697_v47 = vld [vmem:[%s8288_s5 + $0x160] sm:$0xff]   ;;  %v6698_v26 = vld [vmem:[%s8288_s5 + $0xf0] sm:$0xff]  }
 0x654   :  { %v3885_v27 = vadd.f32 %v6171_v50, %v3836_v41  ;;  %v6174_v54 = vadd.f32 %v6173_v53, %v6172_v52  ;;  %v6694_v41 = vld [vmem:[%s8288_s5 + $0x158] sm:$0xff]  }
 0x655   :  { %v6699_v53 = vld [vmem:[%s8288_s5 + $0x138] sm:$0xff]  }
 0x656   :  { %vm3893_vm14 = vcmp.ge.f32.partialorder %v3885_v27, 0.0  ;;  %v3897_v55 = vmul.f32 0.01, %v3885_v27  ;;  %v3888_v56 = vadd.f32 %v6174_v54, %v3839_v43  ;;  %v6693_v43 = vld [vmem:[%s8288_s5 + $0x128] sm:$0xff]   ;;  %v5436_v54 = vld [vmem:[%s8283_s6 + $0x5] ss:$0 sm:$0xff] }
 0x658   :  { %v3901_v57 = vsel %vm3893_vm14, %v3885_v27, %v3897_v55  ;;  %vm3894_vm15 = vcmp.ge.f32.partialorder %v3888_v56, 0.0  ;;  %v3898_v58 = vmul.f32 0.01, %v3888_v56 }
 0x659   :  { %3910 = vst.msk [vmem:[#allocation2 + $0x12] sm:$0xff] %vm611_vm2, %v3901_v57 }
 0x65a   :  { %v3902_v51 = vsel %vm3894_vm15, %v3888_v56, %v3898_v58 }
 0x65b   :  { %3911 = vst.msk [vmem:[#allocation2 + $0x1a] sm:$0x1] %vm1263_vm13, %v3902_v51 }
 0x660   :  { %v3912_v0 = vld [vmem:[#allocation2] ss:$4 sm:$0xff]  ;;  %v3913_v1 = vld [vmem:[#allocation2 + $0x1] ss:$4 sm:$0xff]  ;;  %v3917_v5 = vld [vmem:[#allocation2 + $0x3] ss:$4 sm:$0xff] }
 0x661   :  { %v3914_v3 = vmax.f32 %v3912_v0, %v3913_v1  ;;  %4969 = vst.msk [vmem:[#allocation2] sm:$0x1] %vm1263_vm13, %v6731_v44  ;;  %4973 = vst.msk [vmem:[#allocation2 + $0x10] sm:$0x1] %vm1263_vm13, %v6731_v44  ;;  %v6702_v1 = vld [vmem:[%s8288_s5 + $0x170] sm:$0xff]  }
 0x662   :  { %v3915_v4 = vld [vmem:[#allocation2 + $0x2] ss:$4 sm:$0xff] }
 0x663   :  { %v3916_v6 = vmax.f32 %v3914_v3, %v3915_v4  ;;  %4970 = vst.msk [vmem:[#allocation2 + $0xd] sm:$0x7] %vm3922_vm7, %v6731_v44  ;;  %4974 = vst.msk [vmem:[#allocation2 + $0x1d] sm:$0x7] %vm3922_vm7, %v6731_v44 }
 0x665   :  { %v3918_v7 = vmax.f32 %v3916_v6, %v3917_v5 }
 0x667   :  { %3925 = vrot.lane.b32.xlu0 %v3918_v7, %s6733_s30  ;;  %3923 = vst.msk [vmem:[#allocation3 + $0x4] sm:$0x7] %vm3922_vm7, %v3918_v7  ;;  %vm4259_vm7 = vcmask 1046016  }
 0x668   :  { %3933 = vst.msk [vmem:[#allocation3 + $0x10] sm:$0x70] %vm3932_vm1, %v3918_v7 }
 0x6d9   :  { %v3926_v8 = vpop.permute.xlu0 %3925 }
 0x6da   :  { %3929 = vst.msk [vmem:[#allocation3 + $0x3] sm:$0x7] %vm3928_vm4, %v3926_v8  ;;  %vm4986_vm4 = vcmask 522240  }
 0x6db   :  { %3935 = vst.msk [vmem:[#allocation3 + $0xf] sm:$0x70] %vm3934_vm5, %v3926_v8 }
 0x6e1   :  { %v3940_v15 = vld [vmem:[#allocation3 + $0x2] sm:$0xff] }
 0x6e2   :  { %v3944_v44 = vld [vmem:[#allocation3 + $0x4] sm:$0xff]  ;;  %v3945_v16 = vld [vmem:[#allocation3 + $0xc] sm:$0xff]  ;;  %v3949_v17 = vpack.c.bf16 %v3941_v10, %v3940_v15  ;;  %v3946_v19 = vld [vmem:[#allocation3 + $0x14] sm:$0xff] }
 0x6e3   :  { %v3950_v18 = vpack.c.bf16 %v3945_v16, %v3944_v44  ;;  %v3936_v11 = vld [vmem:[#allocation3] sm:$0xff]  ;;  %4252 = vst [vmem:[#allocation3 + $0x9] sm:$0xf] %v6732_v49  ;;  %v3942_v20 = vld [vmem:[#allocation3 + $0x12] sm:$0xff]  ;;  %v3953_v22 = vpack.c.bf16 %v3947_v12, %v3946_v19 }
 0x6e4   :  { %v3948_v21 = vpack.c.bf16 %v3937_v9, %v3936_v11  ;;  %4251 = vst [vmem:[#allocation3] sm:$0xf] %v6732_v49  ;;  %v3938_v23 = vld [vmem:[#allocation3 + $0x10] sm:$0xff]  ;;  %4262 = vst [vmem:[#allocation3 + $0x19] sm:$0xf] %v6732_v49  ;;  %4182 = vmatprep.mubr.bf16.mxu0 %v3949_v17  ;;  %v3952_v28 = vpack.c.bf16 %v3943_v13, %v3942_v20 }
 0x6e5   :  { %6312 = vmatprep.mubr.bf16.mxu1 %v3950_v18  ;;  %4261 = vst [vmem:[#allocation3 + $0x10] sm:$0xf] %v6732_v49  ;;  %v3951_v29 = vpack.c.bf16 %v3939_v14, %v3938_v23 }
 0x6e6   :  { %4183 = vmatmul.mubr.bf16.vlgmr.msra.gmra.mrb[112].mxu0 %v3948_v21  ;;  %6313 = vmatmul.mubr.bf16.vlgmr.msra.gmra.mrb[104].mxu1 %v3953_v22 }
 0x6e7   :  { %4189 = vmatprep.mubr.bf16.mxu0 %v3952_v28  ;;  %6214 = vmatpush3.bf16.msra.mxu0 %v6681_v31 }
 0x6e8   :  { %6215 = vmatprep.subr.bf16.mxu0 %v6682_v32  ;;  %6317 = vmatpush3.bf16.msra.mxu1 %v6685_v33 }
 0x6e9   :  { %6318 = vmatprep.subr.bf16.mxu1 %v6688_v34 }
 0x6eb   :  { %6216 = vmatpush3.bf16.msra.mxu0 %v6683_v35  ;;  %v4276_v11 = vld [vmem:[#allocation3 + $0x1a] sm:$0xff] }
 0x6ec   :  { %6217 = vmatprep.subr.bf16.mxu0 %v6684_v36  ;;  %6319 = vmatpush3.bf16.msra.mxu1 %v6688_v34  ;;  %v4274_v13 = vld [vmem:[#allocation3 + $0xa] sm:$0xff]  ;;  %v4280_v31 = vld [vmem:[#allocation3 + $0x1c] sm:$0xff] }
 0x6ed   :  { %6320 = vmatprep.subr.bf16.mxu1 %v6691_v37  ;;  %v6704_v34 = vld [vmem:[%s8288_s5 + $0x1c0] sm:$0xff]  }
 0x6ee   :  { %4190 = vmatmul.mubr.bf16.gmra.mrb[116].mxu0 %v3951_v29  ;;  %v6705_v35 = vld [vmem:[%s8288_s5 + $0x200] sm:$0xff]  }
 0x6ef   :  { %6218 = vmatpush3.bf16.msra.mxu0 %v6686_v38  ;;  %v6706_v36 = vld [vmem:[%s8288_s5 + $0x180] sm:$0xff]   ;;  %v6708_v38 = vld [vmem:[%s8288_s5 + $0x208] sm:$0xff]  }
 0x6f0   :  { %6219 = vmatprep.subr.bf16.mxu0 %v6687_v40  ;;  %6321 = vmatpush3.bf16.msra.mxu1 %v6691_v37  ;;  %v6707_v37 = vld [vmem:[%s8288_s5 + $0x1c8] sm:$0xff]  }
 0x6f1   :  { %6322 = vmatprep.subr.bf16.mxu1 %v6694_v41  ;;  %v6709_v40 = vld [vmem:[%s8288_s5 + $0x188] sm:$0xff]  }
 0x6f3   :  { %6220 = vmatpush3.bf16.msra.mxu0 %v6689_v24  ;;  %v6711_v24 = vld [vmem:[%s8288_s5 + $0x210] sm:$0xff]  }
 0x6f4   :  { %6221 = vmatprep.subr.bf16.mxu0 %v6690_v42  ;;  %6323 = vmatpush3.bf16.msra.mxu1 %v6694_v41  ;;  %v6710_v41 = vld [vmem:[%s8288_s5 + $0x1d0] sm:$0xff]  }
 0x6f5   :  { %6324 = vmatprep.subr.bf16.mxu1 %v6697_v47  ;;  %v6712_v42 = vld [vmem:[%s8288_s5 + $0x190] sm:$0xff]  }
 0x6f7   :  { %6222 = vmatpush3.bf16.msra.mxu0 %v6692_v39  ;;  %v6713_v39 = vld [vmem:[%s8288_s5 + $0x1d8] sm:$0xff]  }
 0x6f8   :  { %6223 = vmatprep.subr.bf16.mxu0 %v6693_v43  ;;  %6325 = vmatpush3.bf16.msra.mxu1 %v6697_v47  ;;  %v6714_v43 = vld [vmem:[%s8288_s5 + $0x218] sm:$0xff]   ;;  %v6717_v47 = vld [vmem:[%s8288_s5 + $0x220] sm:$0xff]  }
 0x6f9   :  { %6326 = vmatprep.subr.bf16.mxu1 %v6700_v48 }
 0x6fb   :  { %6224 = vmatpush3.bf16.msra.mxu0 %v6695_v45  ;;  %v6715_v45 = vld [vmem:[%s8288_s5 + $0x198] sm:$0xff]  }
 0x6fc   :  { %6225 = vmatprep.subr.bf16.mxu0 %v6696_v46  ;;  %6327 = vmatpush3.bf16.msra.mxu1 %v6700_v48  ;;  %v6716_v46 = vld [vmem:[%s8288_s5 + $0x1e0] sm:$0xff]  }
 0x6fd   :  { %6328 = vmatprep.subr.bf16.mxu1 %v6702_v1  ;;  %v6718_v48 = vld [vmem:[%s8288_s5 + $0x1a0] sm:$0xff]  }
 0x6ff   :  { %6226 = vmatpush3.bf16.msra.mxu0 %v6698_v26 }
 0x700   :  { %6227 = vmatprep.subr.bf16.mxu0 %v6699_v53  ;;  %6329 = vmatpush3.bf16.msra.mxu1 %v6702_v1 }
 0x701   :  { %6330 = vmatprep.subr.bf16.mxu1 %v6703_v2 }
 0x703   :  { %6228 = vmatpush3.bf16.msra.mxu0 %v6701_v25 }
 0x704   :  { %6331 = vmatpush3.bf16.msra.mxu1 %v6703_v2  ;;  %6251 = vmatprep.subr.bf16.mxu0 %v6704_v34 }
 0x705   :  { %6336 = vmatprep.subr.bf16.mxu1 %v6732_v49 }
 0x7b9   :  { %v6191_v50 = vpop.f32.mrb[112].mxu0  ;;  %v6314_v52 = vpop.f32.mrb[104].mxu1 }
 0x7ba   :  { %v6192_v27 = vpop.f32.mrb[113].mxu0  ;;  %v4231_v55 = vpop.f32.mrb[105].mxu1 }
 0x7bb   :  { %v6193_v56 = vadd.f32 %v6192_v27, %v6191_v50  ;;  %v6194_v57 = vpop.f32.mrb[114].mxu0  ;;  %v6315_v58 = vpop.f32.mrb[106].mxu1  ;;  %v6719_v27 = vld [vmem:[%s8288_s5 + $0x1e8] sm:$0xff]  }
 0x7bc   :  { %v6195_v51 = vpop.f32.mrb[115].mxu0  ;;  %v4234_v59 = vpop.f32.mrb[107].mxu1  ;;  %v6721_v57 = vld [vmem:[%s8288_s5 + $0x1a8] sm:$0xff]   ;;  %v5509_v58 = vld [vmem:[%s8283_s6 + $0x6] ss:$0 sm:$0xff] }
 0x7bd   :  { %v4185_v60 = vadd.f32 %v6193_v56, %v5436_v54  ;;  %v6722_v51 = vld [vmem:[%s8288_s5 + $0x1f0] sm:$0xff]  }
 0x7be   :  { %v6723_v59 = vld [vmem:[%s8288_s5 + $0x230] sm:$0xff]  }
 0x7bf   :  { %v4232_v61 = vadd.f32 %v4231_v55, %v4185_v60 }
 0x7c1   :  { %v4246_v62 = vmul.f32 0.01, %v4232_v61  ;;  %v6197_v63 = vpop.f32.mrb[116].mxu0  ;;  %vm4244_vm6 = vcmp.ge.f32.partialorder %v4232_v61, 0.0 }
 0x7c2   :  { %v6198_v0 = vpop.f32.mrb[117].mxu0 }
 0x7c3   :  { %v6199_v3 = vadd.f32 %v6198_v0, %v6197_v63  ;;  %v6200_v4 = vpop.f32.mrb[118].mxu0  ;;  %v4248_v5 = vsel %vm4244_vm6, %v4232_v61, %v4246_v62  ;;  %v6724_v62 = vld [vmem:[%s8288_s5 + $0x1b0] sm:$0xff]   ;;  %v6725_v63 = vld [vmem:[%s8288_s5 + $0x1f8] sm:$0xff]  }
 0x7c4   :  { %v6201_v6 = vpop.f32.mrb[119].mxu0  ;;  %4256 = vrot.lane.b32.xlu1 %v4248_v5, %s6733_s30  ;;  %4254 = vst.msk [vmem:[#allocation3 + $0x4] sm:$0x3f] %vm4253_vm8, %v4248_v5  ;;  %v6726_v0 = vld [vmem:[%s8288_s5 + $0x238] sm:$0xff]  }
 0x7c5   :  { %v4192_v7 = vadd.f32 %v6199_v3, %v5436_v54  ;;  %v6720_v54 = vld [vmem:[%s8288_s5 + $0x228] sm:$0xff]  }
 0x7c7   :  { %v4239_v8 = vadd.f32 %v6314_v52, %v4192_v7 }
 0x7c9   :  { %vm4245_vm10 = vcmp.ge.f32.partialorder %v4239_v8, 0.0  ;;  %v4247_v10 = vmul.f32 0.01, %v4239_v8 }
 0x7cb   :  { %v4249_v9 = vsel %vm4245_vm10, %v4239_v8, %v4247_v10  ;;  %v6727_v8 = vld [vmem:[%s8288_s5 + $0x1b8] sm:$0xff]  }
 0x7cc   :  { %4265 = vrot.lane.b32.xlu0 %v4249_v9, %s6733_s30  ;;  %4263 = vst.msk [vmem:[#allocation3 + $0x14] sm:$0x3f] %vm4253_vm8, %v4249_v9 }
 0x836   :  { %v4257_v12 = vpop.permute.xlu1 %4256 }
 0x837   :  { %4260 = vst.msk [vmem:[#allocation3 + $0x3] sm:$0x3f] %vm4259_vm7, %v4257_v12 }
 0x83e   :  { %v4266_v14 = vpop.permute.xlu0 %4265  ;;  %v4273_v15 = vld [vmem:[#allocation3 + $0x2] sm:$0xff] }
 0x83f   :  { %v4269_v44 = vld [vmem:[#allocation3] sm:$0xff]  ;;  %v4270_v16 = vld [vmem:[#allocation3 + $0x8] sm:$0xff]  ;;  %v4282_v17 = vpack.c.bf16 %v4274_v13, %v4273_v15  ;;  %4268 = vst.msk [vmem:[#allocation3 + $0x13] sm:$0x3f] %vm4259_vm7, %v4266_v14 }
 0x840   :  { %v4281_v18 = vpack.c.bf16 %v4270_v16, %v4269_v44  ;;  %4595 = vst [vmem:[#allocation3] sm:$0xf] %v6732_v49  ;;  %v4277_v19 = vld [vmem:[#allocation3 + $0x4] sm:$0xff] }
 0x841   :  { %4516 = vmatprep.mubr.bf16.mxu0 %v4282_v17 }
 0x842   :  { %4517 = vmatmul.mubr.bf16.vlgmr.msra.gmra.mrb[120].mxu0 %v4281_v18 }
 0x843   :  { %6252 = vmatpush3.bf16.msra.mxu0 %v6706_v36 }
 0x844   :  { %6253 = vmatprep.subr.bf16.mxu0 %v6707_v37 }
 0x846   :  { %v4275_v20 = vld [vmem:[#allocation3 + $0x12] sm:$0xff] }
 0x847   :  { %v4278_v21 = vld [vmem:[#allocation3 + $0xc] sm:$0xff]  ;;  %v4285_v23 = vpack.c.bf16 %v4276_v11, %v4275_v20  ;;  %v4272_v29 = vld [vmem:[#allocation3 + $0x18] sm:$0xff]  ;;  %6254 = vmatpush3.bf16.msra.mxu0 %v6709_v40 }
 0x848   :  { %v8162_v22 = vld [vmem:[#allocation3 + $0x10] sm:$0xff]  ;;  %v4283_v28 = vpack.c.bf16 %v4278_v21, %v4277_v19  ;;  %4596 = vst [vmem:[#allocation3 + $0xc] sm:$0xf] %v6732_v49  ;;  %6255 = vmatprep.subr.bf16.mxu0 %v6710_v41 }
 0x849   :  { %v4279_v30 = vld [vmem:[#allocation3 + $0x14] sm:$0xff]  ;;  %v4284_v32 = vpack.c.bf16 %v4272_v29, %v8162_v22  ;;  %4524 = vmatprep.mubr.bf16.mxu0 %v4285_v23 }
 0x84a   :  { %v4286_v33 = vpack.c.bf16 %v4280_v31, %v4279_v30  ;;  %4609 = vst [vmem:[#allocation3 + $0x18] sm:$0xf] %v6732_v49  ;;  %6332 = vmatprep.mubr.bf16.mxu1 %v4283_v28 }
 0x84b   :  { %4525 = vmatmul.mubr.bf16.gmra.mrb[124].mxu0 %v4284_v32 }
 0x84c   :  { %6333 = vmatmul.mubr.bf16.vlgmr.msra.gmra.mrb[108].mxu1 %v4286_v33  ;;  %6256 = vmatpush3.bf16.msra.mxu0 %v6712_v42 }
 0x84d   :  { %6337 = vmatpush3.bf16.msra.mxu1 %v6705_v35  ;;  %6257 = vmatprep.subr.bf16.mxu0 %v6713_v39 }
 0x84e   :  { %6338 = vmatprep.subr.bf16.mxu1 %v6732_v49  ;;  %6352 = vmatprep.mubr.msk.bf16.mxu1 %vm6734_vm11, %v6732_v49 }
 0x850   :  { %6258 = vmatpush3.bf16.msra.mxu0 %v6715_v45 }
 0x851   :  { %6339 = vmatpush3.bf16.msra.mxu1 %v6708_v38  ;;  %6259 = vmatprep.subr.bf16.mxu0 %v6716_v46  ;;  %v4631_v42 = vld [vmem:[#allocation3 + $0x12] sm:$0xff] }
 0x852   :  { %6340 = vmatprep.subr.bf16.mxu1 %v6732_v49 }
 0x854   :  { %6260 = vmatpush3.bf16.msra.mxu0 %v6718_v48 }
 0x855   :  { %6341 = vmatpush3.bf16.msra.mxu1 %v6711_v24  ;;  %6261 = vmatprep.subr.bf16.mxu0 %v6719_v27 }
 0x856   :  { %6342 = vmatprep.subr.bf16.mxu1 %v6732_v49 }
 0x858   :  { %6262 = vmatpush3.bf16.msra.mxu0 %v6721_v57  ;;  %v4628_v57 = vld [vmem:[#allocation3 + $0x28] sm:$0xff] }
 0x859   :  { %6343 = vmatpush3.bf16.msra.mxu1 %v6714_v43  ;;  %6263 = vmatprep.subr.bf16.mxu0 %v6722_v51 }
 0x85a   :  { %6344 = vmatprep.subr.bf16.mxu1 %v6732_v49 }
 0x85c   :  { %6264 = vmatpush3.bf16.msra.mxu0 %v6724_v62 }
 0x85d   :  { %6345 = vmatpush3.bf16.msra.mxu1 %v6717_v47  ;;  %6265 = vmatprep.subr.bf16.mxu0 %v6725_v63 }
 0x85e   :  { %6346 = vmatprep.subr.bf16.mxu1 %v6732_v49 }
 0x860   :  { %6266 = vmatpush3.bf16.msra.mxu0 %v6727_v8 }
 0x861   :  { %6347 = vmatpush3.bf16.msra.mxu1 %v6720_v54 }
 0x862   :  { %6348 = vmatprep.subr.bf16.mxu1 %v6732_v49 }
 0x865   :  { %6349 = vmatpush3.bf16.msra.mxu1 %v6723_v59 }
 0x866   :  { %6350 = vmatprep.subr.bf16.mxu1 %v6732_v49 }
 0x869   :  { %6351 = vmatpush3.bf16.msra.mxu1 %v6726_v0 }
 0x915   :  { %v6229_v26 = vpop.f32.mrb[120].mxu0 }
 0x916   :  { %v6230_v50 = vpop.f32.mrb[121].mxu0 }
 0x917   :  { %v6231_v52 = vadd.f32 %v6230_v50, %v6229_v26  ;;  %v6232_v53 = vpop.f32.mrb[122].mxu0 }
 0x918   :  { %v6233_v55 = vpop.f32.mrb[123].mxu0 }
 0x919   :  { %v6234_v56 = vadd.f32 %v6233_v55, %v6232_v53  ;;  %v4519_v61 = vadd.f32 %v6231_v52, %v5509_v58  ;;  %v4634_v52 = vld [vmem:[#allocation3 + $0x2a] sm:$0xff] }
 0x91a   :  { %v4640_v55 = vld [vmem:[#allocation3 + $0x2c] sm:$0xff] }
 0x91b   :  { %v4522_v7 = vadd.f32 %v6234_v56, %v5509_v58 }
 0x91e   :  { %v6235_v60 = vpop.f32.mrb[124].mxu0 }
 0x91f   :  { %v6334_v25 = vpop.f32.mrb[108].mxu1  ;;  %v6236_v1 = vpop.f32.mrb[125].mxu0 }
 0x920   :  { %v4567_v2 = vpop.f32.mrb[109].mxu1  ;;  %v6237_v3 = vadd.f32 %v6236_v1, %v6235_v60  ;;  %v6238_v5 = vpop.f32.mrb[126].mxu0 }
 0x921   :  { %v4568_v4 = vadd.f32 %v4567_v2, %v4519_v61  ;;  %v6335_v6 = vpop.f32.mrb[110].mxu1  ;;  %v6239_v10 = vpop.f32.mrb[127].mxu0 }
 0x922   :  { %v4570_v9 = vpop.f32.mrb[111].mxu1  ;;  %v4527_v12 = vadd.f32 %v6237_v3, %v5509_v58  ;;  %v6240_v14 = vadd.f32 %v6239_v10, %v6238_v5 }
 0x923   :  { %v4586_v13 = vmul.f32 0.01, %v4568_v4  ;;  %v4571_v15 = vadd.f32 %v4570_v9, %v4522_v7  ;;  %vm4582_vm12 = vcmp.ge.f32.partialorder %v4568_v4, 0.0 }
 0x924   :  { %v4576_v44 = vadd.f32 %v6334_v25, %v4527_v12  ;;  %v4530_v16 = vadd.f32 %v6240_v14, %v5509_v58 }
 0x925   :  { %v4587_v17 = vmul.f32 0.01, %v4571_v15  ;;  %v4590_v18 = vsel %vm4582_vm12, %v4568_v4, %v4586_v13  ;;  %vm4583_vm14 = vcmp.ge.f32.partialorder %v4571_v15, 0.0 }
 0x926   :  { %4601 = vrot.lane.b32.xlu1 %v4590_v18, %s6733_s30  ;;  %4597 = vst.msk [vmem:[#allocation3 + $0x4] sm:$0xff] %vm611_vm2, %v4590_v18  ;;  %v4579_v11 = vadd.f32 %v6335_v6, %v4530_v16  ;;  %vm4584_vm15 = vcmp.ge.f32.partialorder %v4576_v44, 0.0  ;;  %v4588_v20 = vmul.f32 0.01, %v4576_v44 }
 0x927   :  { %v4591_v19 = vsel %vm4583_vm14, %v4571_v15, %v4587_v17 }
 0x928   :  { %4603 = vrot.lane.b32.xlu0 %v4591_v19, %s6733_s30  ;;  %4598 = vst.msk [vmem:[#allocation3 + $0xc] sm:$0x1] %vm1263_vm13, %v4591_v19  ;;  %v4592_v21 = vsel %vm4584_vm15, %v4576_v44, %v4588_v20  ;;  %vm4585_vm1 = vcmp.ge.f32.partialorder %v4579_v11, 0.0  ;;  %v4589_v23 = vmul.f32 0.01, %v4579_v11 }
 0x929   :  { %4611 = vst.msk [vmem:[#allocation3 + $0x1c] sm:$0xff] %vm611_vm2, %v4592_v21 }
 0x92a   :  { %4615 = vrot.lane.b32.xlu1 %v4592_v21, %s6733_s30  ;;  %v4593_v28 = vsel %vm4585_vm1, %v4579_v11, %v4589_v23 }
 0x92b   :  { %4612 = vst.msk [vmem:[#allocation3 + $0x24] sm:$0x1] %vm1263_vm13, %v4593_v28 }
 0x92c   :  { %4617 = vrot.lane.b32.xlu0 %v4593_v28, %s6733_s30 }
 0x92f   :  { %v4636_v34 = vld [vmem:[#allocation3 + $0xc] sm:$0xff] }
 0x932   :  { %v4639_v27 = vld [vmem:[#allocation3 + $0x24] sm:$0xff] }
 0x933   :  { %v4649_v56 = vpack.c.bf16 %v4640_v55, %v4639_v27 }
 0x998   :  { %v4602_v29 = vpop.permute.xlu1 %4601 }
 0x999   :  { %4607 = vst.msk [vmem:[#allocation3 + $0x3] sm:$0xff] %vm813_vm9, %v4602_v29 }
 0x99a   :  { %v4604_v30 = vpop.permute.xlu0 %4603 }
 0x99b   :  { %4608 = vst.msk [vmem:[#allocation3 + $0xb] sm:$0x1] %vm1279_vm3, %v4604_v30 }
 0x99c   :  { %v4616_v31 = vpop.permute.xlu1 %4615 }
 0x99d   :  { %4621 = vst.msk [vmem:[#allocation3 + $0x1b] sm:$0xff] %vm813_vm9, %v4616_v31 }
 0x99e   :  { %v4618_v32 = vpop.permute.xlu0 %4617 }
 0x99f   :  { %4622 = vst.msk [vmem:[#allocation3 + $0x23] sm:$0x1] %vm1279_vm3, %v4618_v32 }
 0x9a0   :  { %v4629_v33 = vld [vmem:[#allocation3 + $0x2] sm:$0xff] }
 0x9a1   :  { %v4623_v35 = vld [vmem:[#allocation3] sm:$0xff] }
 0x9a2   :  { %v4630_v36 = vld [vmem:[#allocation3 + $0xa] sm:$0xff] }
 0x9a3   :  { %v4635_v37 = vld [vmem:[#allocation3 + $0x4] sm:$0xff]  ;;  %v4642_v40 = vpack.c.bf16 %v4630_v36, %v4629_v33 }
 0x9a4   :  { %v4624_v38 = vld [vmem:[#allocation3 + $0x8] sm:$0xff]  ;;  %v4643_v41 = vpack.c.bf16 %v4636_v34, %v4635_v37  ;;  %v4632_v39 = vld [vmem:[#allocation3 + $0x1a] sm:$0xff] }
 0x9a5   :  { %v4641_v24 = vpack.c.bf16 %v4624_v38, %v4623_v35  ;;  %4879 = vmatprep.mubr.bf16.mxu0 %v4642_v40  ;;  %v4645_v43 = vpack.c.bf16 %v4632_v39, %v4631_v42  ;;  %v4626_v46 = vld [vmem:[#allocation3 + $0x18] sm:$0xff] }
 0x9a6   :  { %6353 = vmatmul.mubr.bf16.vlgmr.msra.gmra.mrb[112].mxu1 %v4643_v41  ;;  %v4638_v45 = vld [vmem:[#allocation3 + $0x1c] sm:$0xff]  ;;  %v4637_v47 = vld [vmem:[#allocation3 + $0x14] sm:$0xff]  ;;  %v4644_v50 = vpack.c.bf16 %v4626_v46, %v8162_v22 }
 0x9a7   :  { %4880 = vmatmul.mubr.bf16.vlgmr.msra.gmra.mrb[128].mxu0 %v4641_v24  ;;  %6356 = vmatprep.mubr.msk.bf16.mxu1 %vm6734_vm11, %v6732_v49  ;;  %v4633_v48 = vld [vmem:[#allocation3 + $0x22] sm:$0xff]  ;;  %v4646_v26 = vpack.c.bf16 %v4638_v45, %v4637_v47  ;;  %v5582_v22 = vld [vmem:[%s8283_s6 + $0x7] ss:$0 sm:$0xff] }
 0x9a8   :  { %4887 = vmatprep.mubr.bf16.mxu0 %v4645_v43  ;;  %v4648_v53 = vpack.c.bf16 %v4634_v52, %v4633_v48  ;;  %v4627_v54 = vld [vmem:[#allocation3 + $0x20] sm:$0xff] }
 0x9a9   :  { %v4647_v58 = vpack.c.bf16 %v4628_v57, %v4627_v54 }
 0x9ae   :  { %6357 = vmatmul.mubr.bf16.gmra.mrb[116].mxu1 %v4646_v26 }
 0x9af   :  { %4888 = vmatmul.mubr.bf16.gmra.mrb[132].mxu0 %v4644_v50  ;;  %6360 = vmatprep.mubr.msk.bf16.mxu1 %vm6734_vm11, %v6732_v49 }
 0x9b0   :  { %4894 = vmatprep.mubr.bf16.mxu0 %v4648_v53 }
 0x9b6   :  { %6361 = vmatmul.mubr.bf16.gmra.mrb[120].mxu1 %v4649_v56 }
 0x9b7   :  { %4895 = vmatmul.mubr.bf16.gmra.mrb[136].mxu0 %v4647_v58 }
 0xa79   :  { %v4936_v51 = vpop.f32.mrb[112].mxu1 }
 0xa7a   :  { %v6267_v59 = vpop.f32.mrb[128].mxu0  ;;  %v6354_v60 = vpop.f32.mrb[113].mxu1 }
 0xa7b   :  { %v6268_v25 = vpop.f32.mrb[129].mxu0  ;;  %v4939_v61 = vpop.f32.mrb[114].mxu1 }
 0xa7c   :  { %v6269_v62 = vadd.f32 %v6268_v25, %v6267_v59  ;;  %v6270_v49 = vpop.f32.mrb[130].mxu0  ;;  %v6355_v63 = vpop.f32.mrb[115].mxu1 }
 0xa7d   :  { %v6271_v0 = vpop.f32.mrb[131].mxu0 }
 0xa7e   :  { %v4882_v1 = vadd.f32 %v6269_v62, %v5582_v22  ;;  %v6272_v2 = vadd.f32 %v6271_v0, %v6270_v49 }
 0xa80   :  { %v4937_v3 = vadd.f32 %v4936_v51, %v4882_v1  ;;  %v4885_v4 = vadd.f32 %v6272_v2, %v5582_v22 }
 0xa81   :  { %v4944_v5 = vpop.f32.mrb[116].mxu1 }
 0xa82   :  { %vm4957_vm9 = vcmp.ge.f32.partialorder %v4937_v3, 0.0  ;;  %v4961_v6 = vmul.f32 0.01, %v4937_v3  ;;  %v4940_v7 = vadd.f32 %v4939_v61, %v4885_v4  ;;  %v6273_v8 = vpop.f32.mrb[132].mxu0  ;;  %v6358_v10 = vpop.f32.mrb[117].mxu1 }
 0xa83   :  { %v6274_v9 = vpop.f32.mrb[133].mxu0  ;;  %v4946_v12 = vpop.f32.mrb[118].mxu1 }
 0xa84   :  { %v4965_v13 = vsel %vm4957_vm9, %v4937_v3, %v4961_v6  ;;  %vm4958_vm13 = vcmp.ge.f32.partialorder %v4940_v7, 0.0  ;;  %v4962_v14 = vmul.f32 0.01, %v4940_v7  ;;  %v6276_v15 = vpop.f32.mrb[134].mxu0  ;;  %v6359_v44 = vpop.f32.mrb[119].mxu1 }
 0xa85   :  { %4971 = vst.msk [vmem:[#allocation2 + $0x1] sm:$0xff] %vm611_vm2, %v4965_v13  ;;  %v6277_v16 = vpop.f32.mrb[135].mxu0 }
 0xa86   :  { %v4966_v17 = vsel %vm4958_vm13, %v4940_v7, %v4962_v14  ;;  %v6278_v18 = vadd.f32 %v6277_v16, %v6276_v15 }
 0xa87   :  { %4972 = vst.msk [vmem:[#allocation2 + $0x9] sm:$0xf] %vm609_vm0, %v4966_v17 }
 0xa88   :  { %v4892_v11 = vadd.f32 %v6278_v18, %v5582_v22 }
 0xa89   :  { %v4951_v19 = vpop.f32.mrb[120].mxu1 }
 0xa8a   :  { %v4947_v20 = vadd.f32 %v4946_v12, %v4892_v11  ;;  %v6279_v21 = vpop.f32.mrb[136].mxu0  ;;  %v6362_v23 = vpop.f32.mrb[121].mxu1 }
 0xa8b   :  { %v6280_v28 = vpop.f32.mrb[137].mxu0  ;;  %v4954_v29 = vpop.f32.mrb[122].mxu1 }
 0xa8c   :  { %vm4959_vm3 = vcmp.ge.f32.partialorder %v4947_v20, 0.0  ;;  %v4963_v30 = vmul.f32 0.01, %v4947_v20  ;;  %v6281_v31 = vadd.f32 %v6280_v28, %v6279_v21  ;;  %v6282_v32 = vpop.f32.mrb[138].mxu0  ;;  %v6363_v33 = vpop.f32.mrb[123].mxu1 }
 0xa8d   :  { %v6283_v34 = vpop.f32.mrb[139].mxu0 }
 0xa8e   :  { %v4977_v35 = vld [vmem:[#allocation2] ss:$2 sm:$0xff]  ;;  %v4980_v36 = vld [vmem:[#allocation2 + $0x1] ss:$2 sm:$0xff]  ;;  %v4967_v37 = vsel %vm4959_vm3, %v4947_v20, %v4963_v30  ;;  %v4897_v38 = vadd.f32 %v6281_v31, %v5582_v22 }
 0xa8f   :  { %v4983_v40 = vmax.f32 %v4977_v35, %v4980_v36  ;;  %4975 = vst.msk [vmem:[#allocation2 + $0x11] sm:$0xff] %vm611_vm2, %v4967_v37 }
 0xa90   :  { %v4952_v41 = vadd.f32 %v4951_v19, %v4897_v38 }
 0xa91   :  { %4987 = vst.msk [vmem:[%s8287_s7 + $0x5] sm:$0x7f] %vm4986_vm4, %v4983_v40 }
 0xa92   :  { %vm4960_vm5 = vcmp.ge.f32.partialorder %v4952_v41, 0.0  ;;  %v4964_v24 = vmul.f32 0.01, %v4952_v41 }
 0xa94   :  { %v4968_v42 = vsel %vm4960_vm5, %v4952_v41, %v4964_v24 }
 0xa95   :  { %4976 = vst.msk [vmem:[#allocation2 + $0x19] sm:$0xf] %vm609_vm0, %v4968_v42 }
 0xa9c   :  { %v4979_v39 = vld [vmem:[#allocation2 + $0x10] ss:$2 sm:$0xff]  ;;  %v4982_v43 = vld [vmem:[#allocation2 + $0x11] ss:$2 sm:$0xff] }
 0xa9d   :  { %v4984_v45 = vmax.f32 %v4979_v39, %v4982_v43 }
 0xa9f   :  { %5609 = vst.msk [vmem:[%s8287_s7 + $0x15] sm:$0x7f] %vm4986_vm4, %v4984_v45 }

</bundles_post_ra>
